<compile_context>
chip_gen: v6e
topology: v6e:2x2x1
jax: 0.10.0
libtpu: 0.0.40
codegen_flags: <defaults>
</compile_context>

<pallas_src>
import functools
import itertools

import jax
import jax.numpy as jnp
from jax.experimental import pallas as pl
from jax.experimental.pallas import tpu as pltpu


# ----------------------------------------------------------------------------
# Pallas kernel: TD depth slabs of the 2x-upsampling transposed conv per step.
# ----------------------------------------------------------------------------
def _convT_kernel(xm_ref, xh_ref, w_ref, b_ref, o_ref, *, TD, H, W, Cin):
    # xm_ref: (1, TD, H+1, W+1, Cin) bf16 main depth block (trailing H/W halo)
    # xh_ref: (1, 1,  H+1, W+1, Cin) bf16 depth-halo slab (depth == block end)
    # w_ref : (8*Cin, 8*Cp)          bf16 packed (tap, parity) weights
    # b_ref : (1, 8*Cp)              f32  packed bias
    # o_ref : (1, TD, H*W, 8*Cp)     bf16 output (8 parity sub-grids on lanes)
    xall = jnp.concatenate([xm_ref[0], xh_ref[0]], axis=0)  # (TD+1, H+1, W+1, Cin)

    # Build the (TD*H*W, 8*Cin) bf16 patch matrix in VMEM.
    # TODO(synk): lane-sparse at tiny Cin (demo Cin=4); acceptable here, use the
    # 8-accumulated-matmul variant once Cin is large.
    cols = []
    for ad in (0, 1):
        xd = xall[ad:ad + TD]                                # (TD, H+1, W+1, Cin)
        for ah in (0, 1):
            for aw in (0, 1):
                cols.append(xd[:, ah:ah + H, aw:aw + W, :])  # (TD, H, W, Cin)
    patch = jnp.concatenate(cols, axis=-1).reshape(TD * H * W, 8 * Cin)

    # One dense MXU matmul produces all 8 output parities (f32 accumulation),
    # bias fused, bf16 cast only at the store.
    y = jnp.dot(patch, w_ref[...], preferred_element_type=jnp.float32)
    y = y + b_ref[...]
    o_ref[0] = y.reshape(TD, H * W, -1).astype(o_ref.dtype)


def _pick_depth_tile(D, H, W, Cin, NC, budget_bytes=8 * 1024 * 1024):
    """Largest divisor of D whose per-step VMEM footprint fits the budget."""
    per_d = (2 * H * W * NC * 2                 # bf16 output block (double buffered)
             + H * W * NC * 4                   # f32 matmul result
             + H * W * 8 * Cin * 2              # bf16 patch
             + 2 * (H + 1) * (W + 1) * Cin * 2)  # bf16 input slab (double buffered)
    td = max(1, min(D, budget_bytes // max(per_d, 1)))
    while D % td:
        td -= 1
    return td


# ----------------------------------------------------------------------------
# Wrapper: NCDHW in -> NCDHW out (PyTorch layout), stride=2 upsampling.
# ----------------------------------------------------------------------------
def conv_transpose3d_up2(x_ncdhw, w_pt, bias, *, stride=2):
    """x: (N, Cin, D, H, W); w_pt: (Cin, Cout, 3, 3, 3); bias: (Cout,)."""
    assert stride == 2, "only the module-default stride=2 is implemented"
    N, Cin, D, H, W = x_ncdhw.shape
    Cout = w_pt.shape[1]
    Cp = ((Cout + 15) // 16) * 16        # pad so 8*Cp is a multiple of 128
    KC = 8 * Cin                         # packed contraction dim (8 taps)
    NC = 8 * Cp                          # packed lane dim (8 parities)
    TD = _pick_depth_tile(D, H, W, Cin, NC)

    # ---- pack weights/bias: row block a=(ad,ah,aw) taps, col block r=(rd,rh,rw)
    # parities; out[2i+rd,2j+rh,2k+rw] = sum_{a<=r} x_pad[i+ad,j+ah,k+aw] . W[:,:,k(r,a)]
    # with k(r,a) = 1 if r==0 else (2 - 2a) per spatial dim.
    wb = jnp.zeros((KC, NC), jnp.float32)
    bb = jnp.zeros((1, NC), jnp.float32)
    for a_idx, (ad, ah, aw) in enumerate(itertools.product((0, 1), repeat=3)):
        for r_idx, (rd, rh, rw) in enumerate(itertools.product((0, 1), repeat=3)):
            if ad <= rd and ah <= rh and aw <= rw:
                kd = 1 if rd == 0 else 2 - 2 * ad
                kh = 1 if rh == 0 else 2 - 2 * ah
                kw = 1 if rw == 0 else 2 - 2 * aw
                wb = wb.at[a_idx * Cin:(a_idx + 1) * Cin,
                           r_idx * Cp:r_idx * Cp + Cout].set(w_pt[:, :, kd, kh, kw])
    for r_idx in range(8):
        bb = bb.at[0, r_idx * Cp:r_idx * Cp + Cout].set(bias)
    wb = wb.astype(jnp.bfloat16)

    # ---- channels-last + bf16 cast (halves input DMA) + trailing zero halo.
    x = jnp.transpose(x_ncdhw, (0, 2, 3, 4, 1)).astype(jnp.bfloat16)   # NDHWC
    xp = jnp.pad(x, ((0, 0), (0, 1), (0, 1), (0, 1), (0, 0)))          # (N,D+1,H+1,W+1,Cin)

    kernel = functools.partial(_convT_kernel, TD=TD, H=H, W=W, Cin=Cin)
    main_blk = (1, TD, H + 1, W + 1, Cin)
    halo_blk = (1, 1, H + 1, W + 1, Cin)

    y = pl.pallas_call(
        kernel,
        out_shape=jax.ShapeDtypeStruct((N, D, H * W, NC), jnp.bfloat16),
        grid_spec=pltpu.PrefetchScalarGridSpec(
            num_scalar_prefetch=0,
            grid=(N, D // TD),
            in_specs=[
                # main TD-deep block (block index along depth)
                pl.BlockSpec(main_blk, lambda n, dt: (n, dt, 0, 0, 0)),
                # 1-deep depth halo right after the main block (element index,
                # since the depth block size is 1)
                pl.BlockSpec(halo_blk, lambda n, dt: (n, (dt + 1) * TD, 0, 0, 0)),
                pl.BlockSpec((KC, NC), lambda n, dt: (0, 0)),   # resident weights
                pl.BlockSpec((1, NC), lambda n, dt: (0, 0)),    # resident bias
            ],
            out_specs=pl.BlockSpec((1, TD, H * W, NC), lambda n, dt: (n, dt, 0, 0)),
        ),
        compiler_params=pltpu.CompilerParams(
            dimension_semantics=("parallel", "parallel"),
            # Tiny footprint at these shapes; safe on v5e/v6e/v7x.  Raise
            # together with larger TD / H tiles on 128 MiB-VMEM parts.
            vmem_limit_bytes=32 * 1024 * 1024,
        ),
    )(xp, xp, wb, bb)

    # ---- interleave parities + drop channel pad + NCDHW (transpose in bf16),
    # cast back to the input dtype only at the end.
    y = y.reshape(N, D, H, W, 2, 2, 2, Cp)[..., :Cout]   # (n,i,j,k,rd,rh,rw,c)
    y = jnp.transpose(y, (0, 7, 1, 4, 2, 5, 3, 6))       # (n,c,i,rd,j,rh,k,rw)
    return y.reshape(N, Cout, 2 * D, 2 * H, 2 * W).astype(x_ncdhw.dtype)


# ----------------------------------------------------------------------------
# Pure-JAX reference (fractionally-strided conv) for the correctness check.
# ----------------------------------------------------------------------------
def ref_conv_transpose(x_ncdhw, w_pt, bias):
    w_flip = w_pt[:, :, ::-1, ::-1, ::-1]                    # flip spatial dims
    y = jax.lax.conv_general_dilated(
        x_ncdhw,
        jnp.transpose(w_flip, (1, 0, 2, 3, 4)),              # (Cout, Cin, 3,3,3)
        window_strides=(1, 1, 1),
        padding=((1, 2),) * 3,                               # k-1-p, k-1-p+out_pad
        lhs_dilation=(2, 2, 2),
        dimension_numbers=("NCDHW", "OIDHW", "NCDHW"),
        precision=jax.lax.Precision.HIGHEST,
    )
    return y + bias.reshape(1, -1, 1, 1, 1)


if __name__ == "__main__":
    N, Cin, Cout = 2, 4, 8
    D = H = W = 8
    stride = 2

    key = jax.random.PRNGKey(0)
    kx, kw, kb = jax.random.split(key, 3)
    x = jax.random.normal(kx, (N, Cin, D, H, W), jnp.float32)       # NCDHW
    fan_in = Cin * 27
    w = jax.random.normal(kw, (Cin, Cout, 3, 3, 3), jnp.float32) * fan_in**-0.5
    b = 0.1 * jax.random.normal(kb, (Cout,), jnp.float32)

    fwd = jax.jit(lambda xx, ww, bb: conv_transpose3d_up2(xx, ww, bb, stride=2))
    out = jax.block_until_ready(fwd(x, w, b))

    assert out.shape == (N, Cout, 2 * D, 2 * H, 2 * W), out.shape

    ref = ref_conv_transpose(x, w, b)
    # bf16 matmul inputs + bf16 output store, f32 accumulation in-kernel.
    if not jnp.allclose(out, ref, rtol=2e-2, atol=3e-2):
        max_err = float(jnp.max(jnp.abs(out - ref)))
        raise AssertionError(f"Pallas output mismatch, max abs err = {max_err}")

    print("KERNEL_OK")
</pallas_src>

<mosaic_0001>
module attributes {stable_mosaic.version = 11 : i64} {
  func.func @_convT_kernel(%arg0: i32, %arg1: i32, %arg2: memref<1x8x9x9x4xbf16, #tpu.memory_space<vmem>>, %arg3: memref<1x1x9x9x4xbf16, #tpu.memory_space<vmem>>, %arg4: memref<32x128xbf16, #tpu.memory_space<vmem>>, %arg5: memref<1x128xf32, #tpu.memory_space<vmem>>, %arg6: memref<1x8x64x128xbf16, #tpu.memory_space<vmem>>) attributes {dimension_semantics = [#tpu.dimension_semantics<parallel>, #tpu.dimension_semantics<parallel>], iteration_bounds = array<i64: 2, 1>, scalar_prefetch = 0 : i64, scratch_operands = 0 : i64, tpu.core_type = #tpu.core_type<tc>, window_params = [{transform_indices = @transform_0, window_bounds = array<i64: 1, 8, 9, 9, 4>}, {transform_indices = @transform_1, window_bounds = array<i64: 1, 1, 9, 9, 4>}, {pipeline_mode = #tpu.pipeline_mode<synchronous>, transform_indices = @transform_2, window_bounds = array<i64: 32, 128>}, {pipeline_mode = #tpu.pipeline_mode<synchronous>, transform_indices = @transform_3, window_bounds = array<i64: 1, 128>}, {transform_indices = @transform_4, window_bounds = array<i64: 1, 8, 64, 128>}]} {
    %c0 = arith.constant 0 : index
    %c0_0 = arith.constant 0 : index
    %c0_1 = arith.constant 0 : index
    %c0_2 = arith.constant 0 : index
    %c0_3 = arith.constant 0 : index
    %0 = vector.load %arg2[%c0, %c0_0, %c0_1, %c0_2, %c0_3] : memref<1x8x9x9x4xbf16, #tpu.memory_space<vmem>>, vector<1x8x9x9x4xbf16>
    %1 = vector.shape_cast %0 : vector<1x8x9x9x4xbf16> to vector<8x9x9x4xbf16>
    %c0_4 = arith.constant 0 : index
    %c0_5 = arith.constant 0 : index
    %c0_6 = arith.constant 0 : index
    %c0_7 = arith.constant 0 : index
    %c0_8 = arith.constant 0 : index
    %2 = vector.load %arg3[%c0_4, %c0_5, %c0_6, %c0_7, %c0_8] : memref<1x1x9x9x4xbf16, #tpu.memory_space<vmem>>, vector<1x1x9x9x4xbf16>
    %3 = vector.shape_cast %2 : vector<1x1x9x9x4xbf16> to vector<1x9x9x4xbf16>
    %4 = tpu.concatenate %1, %3 in 0 : vector<8x9x9x4xbf16>, vector<1x9x9x4xbf16> -> vector<9x9x9x4xbf16>
    %5 = vector.extract_strided_slice %4 {offsets = [0, 0, 0, 0], sizes = [8, 9, 9, 4], strides = [1, 1, 1, 1]} : vector<9x9x9x4xbf16> to vector<8x9x9x4xbf16>
    %6 = vector.extract_strided_slice %5 {offsets = [0, 0, 0, 0], sizes = [8, 8, 8, 4], strides = [1, 1, 1, 1]} : vector<8x9x9x4xbf16> to vector<8x8x8x4xbf16>
    %7 = vector.extract_strided_slice %5 {offsets = [0, 0, 1, 0], sizes = [8, 8, 8, 4], strides = [1, 1, 1, 1]} : vector<8x9x9x4xbf16> to vector<8x8x8x4xbf16>
    %8 = vector.extract_strided_slice %5 {offsets = [0, 1, 0, 0], sizes = [8, 8, 8, 4], strides = [1, 1, 1, 1]} : vector<8x9x9x4xbf16> to vector<8x8x8x4xbf16>
    %9 = vector.extract_strided_slice %5 {offsets = [0, 1, 1, 0], sizes = [8, 8, 8, 4], strides = [1, 1, 1, 1]} : vector<8x9x9x4xbf16> to vector<8x8x8x4xbf16>
    %10 = vector.extract_strided_slice %4 {offsets = [1, 0, 0, 0], sizes = [8, 9, 9, 4], strides = [1, 1, 1, 1]} : vector<9x9x9x4xbf16> to vector<8x9x9x4xbf16>
    %11 = vector.extract_strided_slice %10 {offsets = [0, 0, 0, 0], sizes = [8, 8, 8, 4], strides = [1, 1, 1, 1]} : vector<8x9x9x4xbf16> to vector<8x8x8x4xbf16>
    %12 = vector.extract_strided_slice %10 {offsets = [0, 0, 1, 0], sizes = [8, 8, 8, 4], strides = [1, 1, 1, 1]} : vector<8x9x9x4xbf16> to vector<8x8x8x4xbf16>
    %13 = vector.extract_strided_slice %10 {offsets = [0, 1, 0, 0], sizes = [8, 8, 8, 4], strides = [1, 1, 1, 1]} : vector<8x9x9x4xbf16> to vector<8x8x8x4xbf16>
    %14 = vector.extract_strided_slice %10 {offsets = [0, 1, 1, 0], sizes = [8, 8, 8, 4], strides = [1, 1, 1, 1]} : vector<8x9x9x4xbf16> to vector<8x8x8x4xbf16>
    %15 = tpu.concatenate %6, %7, %8, %9, %11, %12, %13, %14 in 3 : vector<8x8x8x4xbf16>, vector<8x8x8x4xbf16>, vector<8x8x8x4xbf16>, vector<8x8x8x4xbf16>, vector<8x8x8x4xbf16>, vector<8x8x8x4xbf16>, vector<8x8x8x4xbf16>, vector<8x8x8x4xbf16> -> vector<8x8x8x32xbf16>
    %16 = vector.shape_cast %15 : vector<8x8x8x32xbf16> to vector<512x32xbf16>
    %c0_9 = arith.constant 0 : index
    %c0_10 = arith.constant 0 : index
    %17 = vector.load %arg4[%c0_9, %c0_10] : memref<32x128xbf16, #tpu.memory_space<vmem>>, vector<32x128xbf16>
    %cst = arith.constant dense<0.000000e+00> : vector<512x128xf32>
    %18 = tpu.matmul %16, %17, %cst {dimension_numbers = #tpu.dot_dimension_numbers<[1], [0], [0], [1], [0, 0, 1, 1], [], []>} : vector<512x32xbf16>, vector<32x128xbf16>, vector<512x128xf32> -> vector<512x128xf32>
    %c0_11 = arith.constant 0 : index
    %c0_12 = arith.constant 0 : index
    %19 = vector.load %arg5[%c0_11, %c0_12] : memref<1x128xf32, #tpu.memory_space<vmem>>, vector<1x128xf32>
    %20 = vector.broadcast %19 : vector<1x128xf32> to vector<512x128xf32>
    %21 = arith.addf %18, %20 : vector<512x128xf32>
    %22 = vector.shape_cast %21 : vector<512x128xf32> to vector<8x64x128xf32>
    %23 = arith.truncf %22 : vector<8x64x128xf32> to vector<8x64x128xbf16>
    %c0_13 = arith.constant 0 : index
    %c0_14 = arith.constant 0 : index
    %c0_15 = arith.constant 0 : index
    %c0_16 = arith.constant 0 : index
    %24 = vector.load %arg6[%c0_13, %c0_14, %c0_15, %c0_16] : memref<1x8x64x128xbf16, #tpu.memory_space<vmem>>, vector<1x8x64x128xbf16>
    %25 = vector.shape_cast %24 : vector<1x8x64x128xbf16> to vector<8x64x128xbf16>
    %26 = vector.shape_cast %23 : vector<8x64x128xbf16> to vector<1x8x64x128xbf16>
    tpu.vector_store %arg6[%c0_13, %c0_14, %c0_15, %c0_16], %26 {strides = array<i32>} : memref<1x8x64x128xbf16, #tpu.memory_space<vmem>>, vector<1x8x64x128xbf16>,
    return
  }
  func.func @transform_0(%arg0: i32, %arg1: i32) -> (i32, i32, i32, i32, i32) {
    %c0_i32 = arith.constant 0 : i32
    %c0_i32_0 = arith.constant 0 : i32
    %c0_i32_1 = arith.constant 0 : i32
    %c0_i32_2 = arith.constant 0 : i32
    return %arg0, %arg1, %c0_i32, %c0_i32_0, %c0_i32_1 : i32, i32, i32, i32, i32
  }
  func.func @transform_1(%arg0: i32, %arg1: i32) -> (i32, i32, i32, i32, i32) {
    %c1_i32 = arith.constant 1 : i32
    %0 = arith.addi %arg1, %c1_i32 : i32
    %c8_i32 = arith.constant 8 : i32
    %1 = arith.muli %0, %c8_i32 : i32
    %c0_i32 = arith.constant 0 : i32
    %c0_i32_0 = arith.constant 0 : i32
    %c0_i32_1 = arith.constant 0 : i32
    %c0_i32_2 = arith.constant 0 : i32
    return %arg0, %1, %c0_i32, %c0_i32_0, %c0_i32_1 : i32, i32, i32, i32, i32
  }
  func.func @transform_2(%arg0: i32, %arg1: i32) -> (i32, i32) {
    %c0_i32 = arith.constant 0 : i32
    %c0_i32_0 = arith.constant 0 : i32
    %c0_i32_1 = arith.constant 0 : i32
    return %c0_i32, %c0_i32_0 : i32, i32
  }
  func.func @transform_3(%arg0: i32, %arg1: i32) -> (i32, i32) {
    %c0_i32 = arith.constant 0 : i32
    %c0_i32_0 = arith.constant 0 : i32
    %c0_i32_1 = arith.constant 0 : i32
    return %c0_i32, %c0_i32_0 : i32, i32
  }
  func.func @transform_4(%arg0: i32, %arg1: i32) -> (i32, i32, i32, i32) {
    %c0_i32 = arith.constant 0 : i32
    %c0_i32_0 = arith.constant 0 : i32
    %c0_i32_1 = arith.constant 0 : i32
    return %arg0, %arg1, %c0_i32, %c0_i32_0 : i32, i32, i32, i32
  }
}

</mosaic_0001>

<bundles_post_ra>
// kernel: _lambda_.1
= control target key start
LH: loop header
LB: loop body
LE: loop exit
PB: predicated region body
PF: predicated region fallthrough
CT: control target
= control target key end

     0   :  { %s5405_s15 = smov 0   ;;  %s5407_s16 = smov 0   ;;  %s8813_s0 = inlined_call_operand.vmem [shape: bf16[2,9,9,9,4], index: 0, kind: input, shape index: {}, may-alias: {0,1}]   ;;  %s8814_s1 = inlined_call_operand.vmem [shape: bf16[2,9,9,9,4], index: 1, kind: input, shape index: {}, may-alias: {0,1}]   ;;  %s8815_s2 = inlined_call_operand.vmem [shape: bf16[32,128], index: 2, kind: input, shape index: {}]   ;;  %s8816_s3 = inlined_call_operand.vmem [shape: f32[1,128], index: 3, kind: input, shape index: {}]   ;;  %s8817_s4 = inlined_call_operand.vmem [shape: bf16[2,8,64,128], index: 4, kind: output, shape index: {}]  }
   0x1   :  { %s5409_s17 = smov 0  }
   0x2 LB: > { %s26_s18 = sadd.s32 1, %s5367_s16  ;;  %p4408_p0 = scmp.ge.s32.totalorder %s5371_s17, 1  ;;  %s5371_s17 = sphi %s5409_s17, %s14_s17   ;;  %s5367_s16 = sphi %s5407_s16, %s9808_s16   ;;  %s5363_s15 = sphi %s5405_s15, %s9807_s15  }
   0x3   : > { %p28_p1 = scmp.ge.s32.totalorder %s26_s18, 2  ;;  %p220_p2 = scmp.lt.s32.totalorder %s5371_s17, 3 }
   0x5   : > { %s9810_s18 = smov (%p28_p1, %s26_s18), 0  ;;  %p221_p3 = pnand %p4408_p0, %p220_p2 }
   0x7   : > { %224 = sbr.rel (%p221_p3) target bundleno = 1243 (0x4db), region = 36 }
   0xc   : > { %p280_p4 = scmp.lt.s32.totalorder %s5363_s15, 1  ;;  %s5373_s23 = smov 4   ;;  %vm2431_vm0 = vcmask 31744   ;;  %vm2624_vm1 = vcmask 64512   ;;  %vm2753_vm2 = vcmask 97280   ;;  %vm2882_vm3 = vcmask 130048  }
   0xd   : > { %s5374_s24 = smov 8   ;;  %s5375_s25 = smov 12   ;;  %vm3011_vm4 = vcmask 162816   ;;  %vm3140_vm5 = vcmask 195584   ;;  %vm3269_vm6 = vcmask 228352   ;;  %vm3581_vm7 = vcmask 261120  }
   0xe   : > { %s9812_s15 = smov (!%p280_p4, %s5363_s15), 1  ;;  %s5376_s26 = smov 16  }
   0xf   : > { %s5071_s19 = smul.u32 648, %s9812_s15  ;;  %s5377_s5 = smov 20  }
  0x10   : > { %s5378_s6 = smov 24   ;;  %s5379_s11 = smov 28  }
  0x11   : > { %s5431_s22 = scalar_lea.vmem %s8813_s0, %s5071_s19  ;;  %s4708_s27 = sadd.s32 576, %s5071_s19 }
  0x12   : > { %v325_v0 = vld [vmem:[%s5431_s22 + $0x10] sm:$0xf]  ;;  %v326_v1 = vld [vmem:[%s5431_s22 + $0x14] sm:$0x1]  ;;  %v321_v2 = vld [vmem:[%s5431_s22] sm:$0xf]  ;;  %s6990_s30 = scalar_lea.vmem %s8814_s1, %s4708_s27 }
  0x13   : > { %v4415_v3 = vcombine.low %v325_v0, %v326_v1  ;;  %v322_v4 = vld [vmem:[%s5431_s22 + $0x4] sm:$0x1]  ;;  %v327_v5 = vld [vmem:[%s5431_s22 + $0x18] sm:$0xf]  ;;  %v328_v6 = vld [vmem:[%s5431_s22 + $0x1c] sm:$0x1] }
  0x14   : > { %v4413_v7 = vcombine.low %v321_v2, %v322_v4  ;;  %v4416_v8 = vcombine.low %v327_v5, %v328_v6  ;;  %v323_v9 = vld [vmem:[%s5431_s22 + $0x8] sm:$0xf]  ;;  %v324_v10 = vld [vmem:[%s5431_s22 + $0xc] sm:$0x1]  ;;  %v5444_v16 = vld [vmem:[%s5431_s22 + $0x20] sm:$0xf] }
  0x15   : > { %v331_v11 = vld [vmem:[%s5431_s22 + $0x28] sm:$0xf]  ;;  %v818_v12 = vshrl.u32 %v4415_v3, 16  ;;  %v820_v13 = vshll.u32 %v4415_v3, 16  ;;  %v4414_v14 = vcombine.low %v323_v9, %v324_v10  ;;  %v332_v15 = vld [vmem:[%s5431_s22 + $0x2c] sm:$0x1] }
  0x16   : > { %v804_v17 = vshrl.u32 %v4413_v7, 16  ;;  %v806_v18 = vshll.u32 %v4413_v7, 16  ;;  %v825_v19 = vshrl.u32 %v4416_v8, 16  ;;  %v827_v20 = vshll.u32 %v4416_v8, 16  ;;  %v330_v21 = vld [vmem:[%s5431_s22 + $0x24] sm:$0x1] }
  0x17   : > { %v822_v22 = vrot.slane %v820_v13, 1  ;;  %v811_v23 = vshrl.u32 %v4414_v14, 16  ;;  %v813_v24 = vshll.u32 %v4414_v14, 16  ;;  %v4418_v25 = vcombine.low %v331_v11, %v332_v15  ;;  %v335_v26 = vld [vmem:[%s5431_s22 + $0x38] sm:$0xf]  ;;  %s4709_s14 = sshll.u32 %s9812_s15, 8 }
  0x18   : > { %v808_v27 = vrot.slane %v806_v18, 1  ;;  %v829_v28 = vrot.slane %v827_v20, 1  ;;  %v4417_v29 = vcombine.low %v5444_v16, %v330_v21  ;;  %v336_v30 = vld [vmem:[%s5431_s22 + $0x3c] sm:$0x1]  ;;  %v5451_v31 = vld [vmem:[%s5431_s22 + $0x30] sm:$0xf]  ;;  %s8445_s20 = scalar_lea.vmem %s8817_s4, %s4709_s14 }
  0x19   : > { %v5453_v32 = vor.u32 %v822_v22, %v818_v12  ;;  %v815_v33 = vrot.slane %v813_v24, 1  ;;  %v841_v34 = vshll.u32 %v4418_v25, 16  ;;  %v334_v35 = vld [vmem:[%s5431_s22 + $0x34] sm:$0x1]  ;;  %v839_v38 = vshrl.u32 %v4418_v25, 16 }
  0x1a   : > { %v809_v36 = vor.u32 %v808_v27, %v804_v17  ;;  %v5456_v37 = vor.u32 %v829_v28, %v825_v19  ;;  %v834_v39 = vshll.u32 %v4417_v29, 16  ;;  %v5459_v40 = vld [vmem:[%s5431_s22 + $0x50] sm:$0xf]  ;;  %v342_v41 = vld [vmem:[%s5431_s22 + $0x54] sm:$0x1]  ;;  %v832_v43 = vshrl.u32 %v4417_v29, 16 }
  0x1b   : > { %9003 = vst [vmem:[#allocation2_spill] sm:$0xff] %v5453_v32  ;;  %1255 = vrot.lane.b32.xlu1 %v5453_v32, %s5373_s23  ;;  %v843_v42 = vrot.slane %v841_v34, 1  ;;  %v4420_v44 = vcombine.low %v335_v26, %v336_v30  ;;  %v4419_v45 = vcombine.low %v5451_v31, %v334_v35  ;;  %v339_v46 = vld [vmem:[%s5431_s22 + $0x48] sm:$0xf]  ;;  %v340_v47 = vld [vmem:[%s5431_s22 + $0x4c] sm:$0x1]  ;;  %v5468_v48 = vor.u32 %v815_v33, %v811_v23 }
  0x1c   : > { %9004 = vst [vmem:[#allocation3_spill] sm:$0xff] %v5456_v37  ;;  %1251 = vrot.lane.b32.xlu0 %v809_v36, %s5373_s23  ;;  %v836_v49 = vrot.slane %v834_v39, 1  ;;  %v4422_v50 = vcombine.low %v5459_v40, %v342_v41  ;;  %v4421_v51 = vcombine.low %v339_v46, %v340_v47  ;;  %v5472_v52 = vld [vmem:[%s5431_s22 + $0x60] sm:$0xf]  ;;  %v346_v53 = vld [vmem:[%s5431_s22 + $0x64] sm:$0x1] }
  0x1d   : > { %9005 = vst [vmem:[#allocation4_spill] sm:$0xff] %v5468_v48  ;;  %v855_v54 = vshll.u32 %v4420_v44, 16  ;;  %v5476_v55 = vld [vmem:[%s5431_s22 + $0x58] sm:$0xf]  ;;  %v5478_v56 = vor.u32 %v843_v42, %v839_v38  ;;  %v853_v57 = vshrl.u32 %v4420_v44, 16  ;;  %v848_v58 = vshll.u32 %v4419_v45, 16 }
  0x1e   : > { %v344_v59 = vld [vmem:[%s5431_s22 + $0x5c] sm:$0x1]  ;;  %v846_v61 = vshrl.u32 %v4419_v45, 16  ;;  %v869_v62 = vshll.u32 %v4422_v50, 16  ;;  %v4424_v63 = vcombine.low %v5472_v52, %v346_v53  ;;  %v5486_v0 = vor.u32 %v836_v49, %v832_v43  ;;  %v5490_v4 = vld [vmem:[%s5431_s22 + $0x70] sm:$0xf] }
  0x1f   : > { %9006 = vst [vmem:[#allocation5_spill] sm:$0xff] %v5478_v56  ;;  %1257 = vrot.lane.b32.xlu1 %v5456_v37, %s5373_s23  ;;  %v857_v60 = vrot.slane %v855_v54, 1  ;;  %v850_v1 = vrot.slane %v848_v58, 1  ;;  %v862_v2 = vshll.u32 %v4421_v51, 16  ;;  %v4423_v3 = vcombine.low %v5476_v55, %v344_v59  ;;  %v350_v5 = vld [vmem:[%s5431_s22 + $0x74] sm:$0x1] }
  0x20   : > { %1253 = vrot.lane.b32.xlu0 %v5468_v48, %s5373_s23  ;;  %9007 = vst [vmem:[#allocation6_spill] sm:$0xff] %v5486_v0  ;;  %v5494_v6 = vld [vmem:[%s5431_s22 + $0x68] sm:$0xf]  ;;  %v348_v7 = vld [vmem:[%s5431_s22 + $0x6c] sm:$0x1]  ;;  %v867_v8 = vshrl.u32 %v4422_v50, 16  ;;  %v4426_v13 = vcombine.low %v5490_v4, %v350_v5 }
  0x21   : > { %v883_v9 = vshll.u32 %v4424_v63, 16  ;;  %v5499_v10 = vor.u32 %v857_v60, %v853_v57  ;;  %v871_v11 = vrot.slane %v869_v62, 1  ;;  %v860_v12 = vshrl.u32 %v4421_v51, 16  ;;  %v5508_v19 = vld [vmem:[%s5431_s22 + $0x80] sm:$0xf] }
  0x22   : > { %v5504_v14 = vor.u32 %v850_v1, %v846_v61  ;;  %v864_v15 = vrot.slane %v862_v2, 1  ;;  %v876_v17 = vshll.u32 %v4423_v3, 16  ;;  %v4425_v18 = vcombine.low %v5494_v6, %v348_v7  ;;  %v354_v20 = vld [vmem:[%s5431_s22 + $0x84] sm:$0x1]  ;;  %v5512_v21 = vld [vmem:[%s5431_s22 + $0x78] sm:$0xf] }
  0x23   : > { %1261 = vrot.lane.b32.xlu1 %v5478_v56, %s5373_s23  ;;  %9008 = vst [vmem:[#allocation7_spill] sm:$0xff] %v5499_v10  ;;  %v352_v22 = vld [vmem:[%s5431_s22 + $0x7c] sm:$0x1]  ;;  %v881_v23 = vshrl.u32 %v4424_v63, 16  ;;  %v885_v24 = vrot.slane %v883_v9, 1  ;;  %v5517_v25 = vor.u32 %v871_v11, %v867_v8  ;;  %v874_v26 = vshrl.u32 %v4423_v3, 16 }
  0x24   : > { %1259 = vrot.lane.b32.xlu0 %v5486_v0, %s5373_s23  ;;  %9009 = vst [vmem:[#allocation8_spill] sm:$0xff] %v5504_v14  ;;  %v897_v27 = vshll.u32 %v4426_v13, 16  ;;  %v4428_v28 = vcombine.low %v5508_v19, %v354_v20  ;;  %v5521_v29 = vld [vmem:[%s5431_s22 + $0x98] sm:$0xf]  ;;  %v360_v30 = vld [vmem:[%s5431_s22 + $0x9c] sm:$0x1]  ;;  %v5526_v33 = vor.u32 %v864_v15, %v860_v12  ;;  %v4427_v36 = vcombine.low %v5512_v21, %v352_v22 }
  0x25   : > { %9010 = vst [vmem:[#allocation9_spill] sm:$0xff] %v5517_v25  ;;  %v878_v34 = vrot.slane %v876_v17, 1  ;;  %v890_v35 = vshll.u32 %v4425_v18, 16  ;;  %v357_v38 = vld [vmem:[%s5431_s22 + $0x90] sm:$0xf]  ;;  %v5531_v41 = vor.u32 %v885_v24, %v881_v23  ;;  %v4430_v42 = vcombine.low %v5521_v29, %v360_v30 }
  0x26   : > { %9011 = vst [vmem:[#allocation10_spill] sm:$0xff] %v5526_v33  ;;  %v358_v39 = vld [vmem:[%s5431_s22 + $0x94] sm:$0x1]  ;;  %v895_v43 = vshrl.u32 %v4426_v13, 16  ;;  %v899_v44 = vrot.slane %v897_v27, 1  ;;  %v888_v45 = vshrl.u32 %v4425_v18, 16 }
  0x27   : > { %1265 = vrot.lane.b32.xlu1 %v5499_v10, %s5373_s23  ;;  %9012 = vst [vmem:[#allocation11_spill] sm:$0xff] %v5531_v41  ;;  %v911_v46 = vshll.u32 %v4428_v28, 16  ;;  %v5538_v47 = vor.u32 %v878_v34, %v874_v26  ;;  %v892_v49 = vrot.slane %v890_v35, 1  ;;  %v904_v50 = vshll.u32 %v4427_v36, 16  ;;  %v5541_v53 = vld [vmem:[%s5431_s22 + $0xa8] sm:$0xf] }
  0x28   : > { %1263 = vrot.lane.b32.xlu0 %v5504_v14, %s5373_s23  ;;  %v4429_v51 = vcombine.low %v357_v38, %v358_v39  ;;  %v364_v54 = vld [vmem:[%s5431_s22 + $0xac] sm:$0x1]  ;;  %v5545_v57 = vld [vmem:[%s5431_s22 + $0xa0] sm:$0xf]  ;;  %v362_v58 = vld [vmem:[%s5431_s22 + $0xa4] sm:$0x1]  ;;  %v5550_v61 = vor.u32 %v899_v44, %v895_v43 }
  0x29   : > { %9013 = vst [vmem:[#allocation12_spill] sm:$0xff] %v5538_v47  ;;  %v909_v59 = vshrl.u32 %v4428_v28, 16  ;;  %v925_v60 = vshll.u32 %v4430_v42, 16  ;;  %v913_v62 = vrot.slane %v911_v46, 1  ;;  %v902_v63 = vshrl.u32 %v4427_v36, 16 }
  0x2a   : > { %9014 = vst [vmem:[#allocation13_spill] sm:$0xff] %v5550_v61  ;;  %v4432_v1 = vcombine.low %v5541_v53, %v364_v54  ;;  %v5555_v2 = vor.u32 %v892_v49, %v888_v45  ;;  %v906_v3 = vrot.slane %v904_v50, 1  ;;  %v918_v5 = vshll.u32 %v4429_v51, 16  ;;  %v5559_v8 = vld [vmem:[%s5431_s22 + $0xb8] sm:$0xf] }
  0x2b   : > { %1269 = vrot.lane.b32.xlu1 %v5517_v25, %s5373_s23  ;;  %v4431_v7 = vcombine.low %v5545_v57, %v362_v58  ;;  %v368_v9 = vld [vmem:[%s5431_s22 + $0xbc] sm:$0x1]  ;;  %v5563_v11 = vld [vmem:[%s5431_s22 + $0xb0] sm:$0xf]  ;;  %v366_v12 = vld [vmem:[%s5431_s22 + $0xb4] sm:$0x1]  ;;  %v5568_v17 = vor.u32 %v913_v62, %v909_v59 }
  0x2c   : > { %1267 = vrot.lane.b32.xlu0 %v5526_v33, %s5373_s23  ;;  %9015 = vst [vmem:[#allocation14_spill] sm:$0xff] %v5555_v2  ;;  %v923_v13 = vshrl.u32 %v4430_v42, 16  ;;  %v927_v15 = vrot.slane %v925_v60, 1  ;;  %v916_v18 = vshrl.u32 %v4429_v51, 16  ;;  %v939_v20 = vshll.u32 %v4432_v1, 16 }
  0x2d   : > { %9016 = vst [vmem:[#allocation15_spill] sm:$0xff] %v5568_v17  ;;  %v4434_v22 = vcombine.low %v5559_v8, %v368_v9  ;;  %v5572_v23 = vld [vmem:[%s5431_s22 + $0xc8] sm:$0xf]  ;;  %v372_v24 = vld [vmem:[%s5431_s22 + $0xcc] sm:$0x1]  ;;  %v5577_v26 = vor.u32 %v906_v3, %v902_v63  ;;  %v920_v27 = vrot.slane %v918_v5, 1  ;;  %v4433_v30 = vcombine.low %v5563_v11, %v366_v12 }
  0x2e   : > { %v932_v28 = vshll.u32 %v4431_v7, 16  ;;  %v5581_v34 = vld [vmem:[%s5431_s22 + $0xc0] sm:$0xf]  ;;  %v370_v35 = vld [vmem:[%s5431_s22 + $0xc4] sm:$0x1]  ;;  %v5584_v36 = vor.u32 %v927_v15, %v923_v13  ;;  %v4436_v38 = vcombine.low %v5572_v23, %v372_v24  ;;  %v937_v39 = vshrl.u32 %v4432_v1, 16 }
  0x2f   : > { %1273 = vrot.lane.b32.xlu1 %v5531_v41, %s5373_s23  ;;  %9017 = vst [vmem:[#allocation16_spill] sm:$0xff] %v5577_v26  ;;  %v941_v42 = vrot.slane %v939_v20, 1  ;;  %v930_v43 = vshrl.u32 %v4431_v7, 16  ;;  %v953_v44 = vshll.u32 %v4434_v22, 16  ;;  %v5591_v45 = vor.u32 %v920_v27, %v916_v18  ;;  %v5595_v51 = vld [vmem:[%s5431_s22 + $0xe0] sm:$0xf] }
  0x30   : > { %1271 = vrot.lane.b32.xlu0 %v5538_v47, %s5373_s23  ;;  %9018 = vst [vmem:[#allocation17_spill] sm:$0xff] %v5584_v36  ;;  %v934_v46 = vrot.slane %v932_v28, 1  ;;  %v946_v49 = vshll.u32 %v4433_v30, 16  ;;  %v4435_v50 = vcombine.low %v5581_v34, %v370_v35  ;;  %v378_v54 = vld [vmem:[%s5431_s22 + $0xe4] sm:$0x1]  ;;  %v951_v60 = vshrl.u32 %v4434_v22, 16 }
  0x31   : > { %9019 = vst [vmem:[#allocation18_spill] sm:$0xff] %v5591_v45  ;;  %v375_v58 = vld [vmem:[%s5431_s22 + $0xd8] sm:$0xf]  ;;  %v376_v59 = vld [vmem:[%s5431_s22 + $0xdc] sm:$0x1]  ;;  %v967_v62 = vshll.u32 %v4436_v38, 16  ;;  %v5602_v63 = vor.u32 %v941_v42, %v937_v39  ;;  %v4438_v5 = vcombine.low %v5595_v51, %v378_v54 }
  0x32   : > { %v955_v1 = vrot.slane %v953_v44, 1  ;;  %v944_v3 = vshrl.u32 %v4433_v30, 16  ;;  %v5607_v7 = vor.u32 %v934_v46, %v930_v43  ;;  %v948_v9 = vrot.slane %v946_v49, 1  ;;  %v5610_v15 = vld [vmem:[%s5431_s22 + $0xf0] sm:$0xf] }
  0x33   : > { %1277 = vrot.lane.b32.xlu1 %v5550_v61, %s5373_s23  ;;  %9020 = vst [vmem:[#allocation19_spill] sm:$0xff] %v5602_v63  ;;  %v960_v12 = vshll.u32 %v4435_v50, 16  ;;  %v4437_v13 = vcombine.low %v375_v58, %v376_v59  ;;  %v382_v18 = vld [vmem:[%s5431_s22 + $0xf4] sm:$0x1]  ;;  %v5614_v20 = vld [vmem:[%s5431_s22 + $0xe8] sm:$0xf] }
  0x34   : > { %1275 = vrot.lane.b32.xlu0 %v5555_v2, %s5373_s23  ;;  %9021 = vst [vmem:[#allocation20_spill] sm:$0xff] %v5607_v7  ;;  %v380_v22 = vld [vmem:[%s5431_s22 + $0xec] sm:$0x1]  ;;  %v965_v24 = vshrl.u32 %v4436_v38, 16  ;;  %v969_v27 = vrot.slane %v967_v62, 1  ;;  %v5619_v28 = vor.u32 %v955_v1, %v951_v60  ;;  %v958_v30 = vshrl.u32 %v4435_v50, 16 }
  0x35   : > { %v981_v35 = vshll.u32 %v4438_v5, 16  ;;  %v4440_v39 = vcombine.low %v5610_v15, %v382_v18  ;;  %v5623_v42 = vld [vmem:[%s5431_s22 + $0x100] sm:$0xf]  ;;  %v386_v43 = vld [vmem:[%s5431_s22 + $0x104] sm:$0x1]  ;;  %v5628_v44 = vor.u32 %v948_v9, %v944_v3  ;;  %v962_v46 = vrot.slane %v960_v12, 1 }
  0x36   : > { %9022 = vst [vmem:[#allocation21_spill] sm:$0xff] %v5619_v28  ;;  %v974_v38 = vshll.u32 %v4437_v13, 16  ;;  %v4439_v49 = vcombine.low %v5614_v20, %v380_v22  ;;  %v5632_v54 = vld [vmem:[%s5431_s22 + $0xf8] sm:$0xf]  ;;  %v384_v50 = vld [vmem:[%s5431_s22 + $0xfc] sm:$0x1]  ;;  %v5635_v58 = vor.u32 %v969_v27, %v965_v24  ;;  %v4442_v59 = vcombine.low %v5623_v42, %v386_v43 }
  0x37   : > { %1281 = vrot.lane.b32.xlu1 %v5568_v17, %s5373_s23  ;;  %9023 = vst [vmem:[#allocation22_spill] sm:$0xff] %v5628_v44  ;;  %v979_v60 = vshrl.u32 %v4438_v5, 16  ;;  %v983_v62 = vrot.slane %v981_v35, 1  ;;  %v972_v1 = vshrl.u32 %v4437_v13, 16  ;;  %v995_v3 = vshll.u32 %v4440_v39, 16 }
  0x38   : > { %1279 = vrot.lane.b32.xlu0 %v5577_v26, %s5373_s23  ;;  %9024 = vst [vmem:[#allocation23_spill] sm:$0xff] %v5635_v58  ;;  %v5642_v9 = vor.u32 %v962_v46, %v958_v30  ;;  %v976_v12 = vrot.slane %v974_v38, 1  ;;  %v988_v18 = vshll.u32 %v4439_v49, 16  ;;  %v4441_v22 = vcombine.low %v5632_v54, %v384_v50  ;;  %v5646_v24 = vld [vmem:[%s5431_s22 + $0x110] sm:$0xf] }
  0x39   : > { %v390_v27 = vld [vmem:[%s5431_s22 + $0x114] sm:$0x1]  ;;  %v5650_v43 = vld [vmem:[%s5431_s22 + $0x108] sm:$0xf]  ;;  %v388_v5 = vld [vmem:[%s5431_s22 + $0x10c] sm:$0x1]  ;;  %v5655_v30 = vor.u32 %v983_v62, %v979_v60 }
  0x3a   : > { %9025 = vst [vmem:[#allocation24_spill] sm:$0xff] %v5642_v9  ;;  %v993_v13 = vshrl.u32 %v4440_v39, 16  ;;  %v1009_v35 = vshll.u32 %v4442_v59, 16  ;;  %v997_v46 = vrot.slane %v995_v3, 1  ;;  %v986_v38 = vshrl.u32 %v4439_v49, 16 }
  0x3b   : > { %1285 = vrot.lane.b32.xlu1 %v5584_v36, %s5373_s23  ;;  %9026 = vst [vmem:[#allocation25_spill] sm:$0xff] %v5655_v30  ;;  %v4444_v50 = vcombine.low %v5646_v24, %v390_v27  ;;  %v990_v33 = vrot.slane %v988_v18, 1  ;;  %v4443_v39 = vcombine.low %v5650_v43, %v388_v5  ;;  %v393_v60 = vld [vmem:[%s5431_s22 + $0x120] sm:$0xf]  ;;  %v394_v62 = vld [vmem:[%s5431_s22 + $0x124] sm:$0x1] }
  0x3c   : > { %1283 = vrot.lane.b32.xlu0 %v5591_v45, %s5373_s23  ;;  %v5660_v45 = vor.u32 %v976_v12, %v972_v1  ;;  %v1007_v49 = vshrl.u32 %v4442_v59, 16  ;;  %v1011_v3 = vrot.slane %v1009_v35, 1  ;;  %v5671_v27 = vor.u32 %v997_v46, %v993_v13  ;;  %v400_v5 = vld [vmem:[%s5431_s22 + $0x13c] sm:$0x1]  ;;  %v5715_v61 = vld [vmem:[%s5431_s22 + $0x158] sm:$0xf] }
  0x3d   : > { %v1000_v1 = vshrl.u32 %v4441_v22, 16  ;;  %v1023_v12 = vshll.u32 %v4444_v50, 16  ;;  %v1016_v59 = vshll.u32 %v4443_v39, 16  ;;  %v4445_v35 = vcombine.low %v393_v60, %v394_v62  ;;  %v5748_v47 = vld [vmem:[%s5431_s22 + $0x180] sm:$0xf] }
  0x3e   : > { %9027 = vst [vmem:[#allocation26_spill] sm:$0xff] %v5660_v45  ;;  %9028 = vst [vmem:[#allocation27_spill] sm:$0xff] %v5671_v27  ;;  %v5686_v13 = vor.u32 %v1011_v3, %v1007_v49  ;;  %v1021_v46 = vshrl.u32 %v4444_v50, 16  ;;  %v5697_v49 = vld [vmem:[%s5431_s22 + $0x148] sm:$0xf] }
  0x3f   : > { %1289 = vrot.lane.b32.xlu1 %v5602_v63, %s5373_s23  ;;  %v5664_v63 = vld [vmem:[%s5431_s22 + $0x128] sm:$0xf]  ;;  %v1018_v62 = vrot.slane %v1016_v59, 1  ;;  %v404_v3 = vld [vmem:[%s5431_s22 + $0x14c] sm:$0x1]  ;;  %v1028_v59 = vshrl.u32 %v4445_v35, 16 }
  0x40   : > { %1287 = vrot.lane.b32.xlu0 %v5607_v7, %s5373_s23  ;;  %9030 = vst [vmem:[#allocation29_spill] sm:$0xff] %v5686_v13  ;;  %v402_v50 = vld [vmem:[%s5431_s22 + $0x144] sm:$0x1]  ;;  %v5817_v48 = vld [vmem:[%s5431_s22 + $0x1c8] sm:$0xf] }
  0x41   : > { %9047 = vst [vmem:[#allocation46_spill] sm:$0xff] %v5817_v48  ;;  %v436_v32 = vld [vmem:[%s5431_s22 + $0x1cc] sm:$0x1] }
  0x43   : > { %1293 = vrot.lane.b32.xlu1 %v5619_v28, %s5373_s23  ;;  %v1002_v28 = vshll.u32 %v4441_v22, 16  ;;  %v398_v22 = vld [vmem:[%s5431_s22 + $0x134] sm:$0x1] }
  0x44   : > { %1291 = vrot.lane.b32.xlu0 %v5628_v44, %s5373_s23  ;;  %v5680_v44 = vor.u32 %v990_v33, %v986_v38  ;;  %v1025_v33 = vrot.slane %v1023_v12, 1  ;;  %v1014_v38 = vshrl.u32 %v4443_v39, 16 }
  0x45   : > { %v1004_v36 = vrot.slane %v1002_v28, 1 }
  0x46   : > { %9029 = vst [vmem:[#allocation28_spill] sm:$0xff] %v5680_v44 }
  0x47   : > { %1297 = vrot.lane.b32.xlu1 %v5635_v58, %s5373_s23  ;;  %v396_v58 = vld [vmem:[%s5431_s22 + $0x12c] sm:$0x1]  ;;  %v5693_v60 = vor.u32 %v1004_v36, %v1000_v1  ;;  %v5706_v36 = vor.u32 %v1025_v33, %v1021_v46  ;;  %v5719_v46 = vld [vmem:[%s5431_s22 + $0x150] sm:$0xf] }
  0x48   : > { %1295 = vrot.lane.b32.xlu0 %v5642_v9, %s5373_s23  ;;  %v4446_v18 = vcombine.low %v5664_v63, %v396_v58  ;;  %v5675_v9 = vld [vmem:[%s5431_s22 + $0x138] sm:$0xf] }
  0x49   : > { %v4448_v58 = vcombine.low %v5675_v9, %v400_v5  ;;  %9031 = vst [vmem:[#allocation30_spill] sm:$0xff] %v5693_v60  ;;  %v5701_v5 = vld [vmem:[%s5431_s22 + $0x140] sm:$0xf]  ;;  %9032 = vst [vmem:[#allocation31_spill] sm:$0xff] %v5706_v36 }
  0x4a   : > { %v1037_v28 = vshll.u32 %v4446_v18, 16  ;;  %v1035_v39 = vshrl.u32 %v4446_v18, 16  ;;  %v4449_v18 = vcombine.low %v5701_v5, %v402_v50  ;;  %v5728_v50 = vld [vmem:[%s5431_s22 + $0x170] sm:$0xf] }
  0x4b   : > { %1301 = vrot.lane.b32.xlu1 %v5655_v30, %s5373_s23  ;;  %v5683_v30 = vld [vmem:[%s5431_s22 + $0x130] sm:$0xf]  ;;  %v1051_v12 = vshll.u32 %v4448_v58, 16  ;;  %v1049_v33 = vshrl.u32 %v4448_v58, 16 }
  0x4c   : > { %1299 = vrot.lane.b32.xlu0 %v5660_v45, %s5373_s23  ;;  %v1030_v45 = vshll.u32 %v4445_v35, 16  ;;  %v4447_v7 = vcombine.low %v5683_v30, %v398_v22  ;;  %v1039_v1 = vrot.slane %v1037_v28, 1  ;;  %v4450_v22 = vcombine.low %v5697_v49, %v404_v3  ;;  %v406_v35 = vld [vmem:[%s5431_s22 + $0x154] sm:$0x1] }
  0x4d   : > { %v1053_v28 = vrot.slane %v1051_v12, 1  ;;  %v1058_v58 = vshll.u32 %v4449_v18, 16  ;;  %v4451_v12 = vcombine.low %v5719_v46, %v406_v35 }
  0x4e   : > { %v1044_v17 = vshll.u32 %v4447_v7, 16 }
  0x4f   : > { %1305 = vrot.lane.b32.xlu1 %v5671_v27, %s5373_s23  ;;  %v5711_v27 = vor.u32 %v1018_v62, %v1014_v38  ;;  %v5724_v38 = vor.u32 %v1039_v1, %v1035_v39  ;;  %v1042_v62 = vshrl.u32 %v4447_v7, 16  ;;  %v411_v39 = vld [vmem:[%s5431_s22 + $0x168] sm:$0xf]  ;;  %v412_v7 = vld [vmem:[%s5431_s22 + $0x16c] sm:$0x1]  ;;  %v5738_v1 = vor.u32 %v1053_v28, %v1049_v33 }
  0x50   : > { %1303 = vrot.lane.b32.xlu0 %v5680_v44, %s5373_s23  ;;  %v1032_v44 = vrot.slane %v1030_v45, 1  ;;  %v1065_v45 = vshll.u32 %v4450_v22, 16  ;;  %v1046_v41 = vrot.slane %v1044_v17, 1  ;;  %v1072_v2 = vshll.u32 %v4451_v12, 16  ;;  %v418_v33 = vld [vmem:[%s5431_s22 + $0x184] sm:$0x1] }
  0x51   : > { %9033 = vst [vmem:[#allocation32_spill] sm:$0xff] %v5711_v27  ;;  %9034 = vst [vmem:[#allocation33_spill] sm:$0xff] %v5724_v38  ;;  %v4453_v25 = vcombine.low %v411_v39, %v412_v7 }
  0x52   : > { %v5733_v26 = vor.u32 %v1032_v44, %v1028_v59  ;;  %9036 = vst [vmem:[#allocation35_spill] sm:$0xff] %v5738_v1  ;;  %v1067_v44 = vrot.slane %v1065_v45, 1  ;;  %v1056_v59 = vshrl.u32 %v4449_v18, 16  ;;  %v5745_v35 = vor.u32 %v1046_v41, %v1042_v62 }
  0x53   : > { %1309 = vrot.lane.b32.xlu1 %v5686_v13, %s5373_s23  ;;  %v408_v13 = vld [vmem:[%s5431_s22 + $0x15c] sm:$0x1]  ;;  %v1070_v45 = vshrl.u32 %v4451_v12, 16  ;;  %v1074_v7 = vrot.slane %v1072_v2, 1  ;;  %v420_v12 = vld [vmem:[%s5431_s22 + $0x18c] sm:$0x1] }
  0x54   : > { %1307 = vrot.lane.b32.xlu0 %v5693_v60, %s5373_s23  ;;  %v4452_v3 = vcombine.low %v5715_v61, %v408_v13  ;;  %v414_v60 = vld [vmem:[%s5431_s22 + $0x174] sm:$0x1]  ;;  %9035 = vst [vmem:[#allocation34_spill] sm:$0xff] %v5733_v26  ;;  %9037 = vst [vmem:[#allocation36_spill] sm:$0xff] %v5745_v35 }
  0x55   : > { %v4454_v13 = vcombine.low %v5728_v50, %v414_v60  ;;  %v5752_v60 = vld [vmem:[%s5431_s22 + $0x178] sm:$0xf]  ;;  %v5784_v10 = vor.u32 %v1074_v7, %v1070_v45 }
  0x56   : > { %v1079_v17 = vshll.u32 %v4452_v3, 16  ;;  %v1077_v18 = vshrl.u32 %v4452_v3, 16 }
  0x57   : > { %1313 = vrot.lane.b32.xlu1 %v5706_v36, %s5373_s23  ;;  %v1063_v36 = vshrl.u32 %v4450_v22, 16  ;;  %v416_v22 = vld [vmem:[%s5431_s22 + $0x17c] sm:$0x1]  ;;  %v1093_v28 = vshll.u32 %v4454_v13, 16  ;;  %9041 = vst [vmem:[#allocation40_spill] sm:$0xff] %v5784_v10 }
  0x58   : > { %1311 = vrot.lane.b32.xlu0 %v5711_v27, %s5373_s23  ;;  %v1060_v27 = vrot.slane %v1058_v58, 1  ;;  %v1081_v62 = vrot.slane %v1079_v17, 1  ;;  %v4456_v58 = vcombine.low %v5748_v47, %v418_v33  ;;  %v4455_v3 = vcombine.low %v5752_v60, %v416_v22  ;;  %v5779_v22 = vld [vmem:[%s5431_s22 + $0x1a0] sm:$0xf] }
  0x59   : > { %v5757_v41 = vor.u32 %v1067_v44, %v1063_v36  ;;  %v5770_v36 = vld [vmem:[%s5431_s22 + $0x188] sm:$0xf]  ;;  %v1091_v44 = vshrl.u32 %v4454_v13, 16  ;;  %v1095_v17 = vrot.slane %v1093_v28, 1 }
  0x5a   : > { %v5762_v39 = vor.u32 %v1060_v27, %v1056_v59  ;;  %v5775_v27 = vor.u32 %v1081_v62, %v1077_v18  ;;  %v1084_v59 = vshrl.u32 %v4453_v25, 16  ;;  %v1107_v2 = vshll.u32 %v4456_v58, 16  ;;  %v5788_v18 = vld [vmem:[%s5431_s22 + $0x198] sm:$0xf] }
  0x5b   : > { %1317 = vrot.lane.b32.xlu1 %v5724_v38, %s5373_s23  ;;  %9038 = vst [vmem:[#allocation37_spill] sm:$0xff] %v5757_v41  ;;  %v5766_v38 = vld [vmem:[%s5431_s22 + $0x190] sm:$0xf]  ;;  %v1100_v13 = vshll.u32 %v4455_v3, 16  ;;  %v4457_v28 = vcombine.low %v5770_v36, %v420_v12  ;;  %v1105_v45 = vshrl.u32 %v4456_v58, 16 }
  0x5c   : > { %1315 = vrot.lane.b32.xlu0 %v5733_v26, %s5373_s23  ;;  %9039 = vst [vmem:[#allocation38_spill] sm:$0xff] %v5762_v39  ;;  %v1086_v26 = vshll.u32 %v4453_v25, 16  ;;  %9040 = vst [vmem:[#allocation39_spill] sm:$0xff] %v5775_v27  ;;  %v424_v25 = vld [vmem:[%s5431_s22 + $0x19c] sm:$0x1]  ;;  %v1109_v7 = vrot.slane %v1107_v2, 1 }
  0x5d   : > { %v1114_v14 = vshll.u32 %v4457_v28, 16  ;;  %v4459_v37 = vcombine.low %v5788_v18, %v424_v25  ;;  %v430_v58 = vld [vmem:[%s5431_s22 + $0x1b4] sm:$0x1] }
  0x5e   : > { %v1088_v56 = vrot.slane %v1086_v26, 1  ;;  %v1098_v26 = vshrl.u32 %v4455_v3, 16 }
  0x5f   : > { %1321 = vrot.lane.b32.xlu1 %v5738_v1, %s5373_s23  ;;  %v422_v1 = vld [vmem:[%s5431_s22 + $0x194] sm:$0x1]  ;;  %v1128_v0 = vshll.u32 %v4459_v37, 16 }
  0x60   : > { %1319 = vrot.lane.b32.xlu0 %v5745_v35, %s5373_s23  ;;  %v4458_v33 = vcombine.low %v5766_v38, %v422_v1  ;;  %v426_v35 = vld [vmem:[%s5431_s22 + $0x1a4] sm:$0x1]  ;;  %v5791_v1 = vor.u32 %v1095_v17, %v1091_v44  ;;  %v5798_v12 = vor.u32 %v1088_v56, %v1084_v59  ;;  %v5802_v44 = vld [vmem:[%s5431_s22 + $0x1b8] sm:$0xf]  ;;  %v429_v17 = vld [vmem:[%s5431_s22 + $0x1b0] sm:$0xf]  ;;  %v5809_v56 = vor.u32 %v1109_v7, %v1105_v45 }
  0x61   : > { %v4460_v62 = vcombine.low %v5779_v22, %v426_v35  ;;  %9044 = vst [vmem:[#allocation43_spill] sm:$0xff] %v5802_v44  ;;  %v432_v35 = vld [vmem:[%s5431_s22 + $0x1bc] sm:$0x1] }
  0x62   : > { %9042 = vst [vmem:[#allocation41_spill] sm:$0xff] %v5791_v1  ;;  %9043 = vst [vmem:[#allocation42_spill] sm:$0xff] %v5798_v12  ;;  %v1119_v3 = vshrl.u32 %v4458_v33, 16  ;;  %v4462_v25 = vcombine.low %v5802_v44, %v432_v35  ;;  %v5830_v35 = vld [vmem:[%s5431_s22 + $0x1d8] sm:$0xf] }
  0x63   : > { %1325 = vrot.lane.b32.xlu1 %v5757_v41, %s5373_s23  ;;  %v1121_v41 = vshll.u32 %v4458_v33, 16  ;;  %v1135_v2 = vshll.u32 %v4460_v62, 16  ;;  %9045 = vst [vmem:[#allocation44_spill] sm:$0xff] %v5809_v56  ;;  %v4461_v33 = vcombine.low %v429_v17, %v430_v58  ;;  %9050 = vst [vmem:[#allocation49_spill] sm:$0xff] %v5830_v35  ;;  %v440_v17 = vld [vmem:[%s5431_s22 + $0x1dc] sm:$0x1] }
  0x64   : > { %1323 = vrot.lane.b32.xlu0 %v5762_v39, %s5373_s23  ;;  %v1102_v39 = vrot.slane %v1100_v13, 1  ;;  %v1112_v13 = vshrl.u32 %v4457_v28, 16  ;;  %v1133_v28 = vshrl.u32 %v4460_v62, 16 }
  0x65   : > { %v1123_v59 = vrot.slane %v1121_v41, 1  ;;  %v434_v41 = vld [vmem:[%s5431_s22 + $0x1c4] sm:$0x1]  ;;  %v1137_v45 = vrot.slane %v1135_v2, 1  ;;  %v1142_v62 = vshll.u32 %v4461_v33, 16 }
  0x67   : > { %1329 = vrot.lane.b32.xlu1 %v5775_v27, %s5373_s23  ;;  %v5814_v27 = vor.u32 %v1102_v39, %v1098_v26  ;;  %v5826_v7 = vor.u32 %v1123_v59, %v1119_v3  ;;  %v1126_v39 = vshrl.u32 %v4459_v37, 16  ;;  %v1149_v26 = vshll.u32 %v4462_v25, 16  ;;  %v5839_v3 = vld [vmem:[%s5431_s22 + $0x1d0] sm:$0xf]  ;;  %v438_v37 = vld [vmem:[%s5431_s22 + $0x1d4] sm:$0x1] }
  0x68   : > { %1327 = vrot.lane.b32.xlu0 %v5784_v10, %s5373_s23  ;;  %v1116_v10 = vrot.slane %v1114_v14, 1  ;;  %v4464_v14 = vcombine.low %v5817_v48, %v436_v32  ;;  %9052 = vst [vmem:[#allocation51_spill] sm:$0xff] %v5839_v3  ;;  %v5842_v32 = vor.u32 %v1137_v45, %v1133_v28  ;;  %v4466_v59 = vcombine.low %v5830_v35, %v440_v17  ;;  %v5853_v45 = vld [vmem:[%s5431_s22 + $0x1e8] sm:$0xf]  ;;  %v444_v17 = vld [vmem:[%s5431_s22 + $0x1ec] sm:$0x1] }
  0x69   : > { %9046 = vst [vmem:[#allocation45_spill] sm:$0xff] %v5814_v27  ;;  %9049 = vst [vmem:[#allocation48_spill] sm:$0xff] %v5826_v7  ;;  %v4465_v28 = vcombine.low %v5839_v3, %v438_v37  ;;  %v5857_v35 = vld [vmem:[%s5431_s22 + $0x1e0] sm:$0xf] }
  0x6a   : > { %v5835_v58 = vor.u32 %v1116_v10, %v1112_v13  ;;  %9053 = vst [vmem:[#allocation52_spill] sm:$0xff] %v5842_v32  ;;  %v1147_v10 = vshrl.u32 %v4462_v25, 16  ;;  %v1151_v13 = vrot.slane %v1149_v26, 1  ;;  %9055 = vst [vmem:[#allocation54_spill] sm:$0xff] %v5853_v45  ;;  %v442_v25 = vld [vmem:[%s5431_s22 + $0x1e4] sm:$0x1] }
  0x6b   : > { %1333 = vrot.lane.b32.xlu1 %v5791_v1, %s5373_s23  ;;  %v5821_v1 = vld [vmem:[%s5431_s22 + $0x1c0] sm:$0xf]  ;;  %9056 = vst [vmem:[#allocation55_spill] sm:$0xff] %v5857_v35  ;;  %v1177_v26 = vshll.u32 %v4466_v59, 16 }
  0x6c   : > { %1331 = vrot.lane.b32.xlu0 %v5798_v12, %s5373_s23  ;;  %9048 = vst [vmem:[#allocation47_spill] sm:$0xff] %v5821_v1  ;;  %9051 = vst [vmem:[#allocation50_spill] sm:$0xff] %v5835_v58  ;;  %v1130_v12 = vrot.slane %v1128_v0, 1  ;;  %v4463_v2 = vcombine.low %v5821_v1, %v434_v41  ;;  %v1140_v0 = vshrl.u32 %v4461_v33, 16  ;;  %v1161_v33 = vshrl.u32 %v4464_v14, 16 }
  0x6d   : > { %v5866_v37 = vld [vmem:[%s5431_s22 + $0x200] sm:$0xf]  ;;  %v4467_v1 = vcombine.low %v5857_v35, %v442_v25  ;;  %v5886_v35 = vld [vmem:[%s5431_s22 + $0x210] sm:$0xf] }
  0x6e   : > { %v5849_v41 = vor.u32 %v1130_v12, %v1126_v39  ;;  %v1156_v48 = vshll.u32 %v4463_v2, 16  ;;  %v5862_v12 = vor.u32 %v1151_v13, %v1147_v10  ;;  %9058 = vst [vmem:[#allocation57_spill] sm:$0xff] %v5866_v37  ;;  %v447_v10 = vld [vmem:[%s5431_s22 + $0x1f8] sm:$0xf]  ;;  %v1179_v13 = vrot.slane %v1177_v26, 1  ;;  %9062 = vst [vmem:[#allocation61_spill] sm:$0xff] %v5886_v35 }
  0x6f   : > { %1337 = vrot.lane.b32.xlu1 %v5809_v56, %s5373_s23  ;;  %v1163_v56 = vshll.u32 %v4464_v14, 16  ;;  %v1170_v14 = vshll.u32 %v4465_v28, 16 }
  0x70   : > { %1335 = vrot.lane.b32.xlu0 %v5814_v27, %s5373_s23  ;;  %9054 = vst [vmem:[#allocation53_spill] sm:$0xff] %v5849_v41  ;;  %v1144_v27 = vrot.slane %v1142_v62, 1  ;;  %9057 = vst [vmem:[#allocation56_spill] sm:$0xff] %v5862_v12  ;;  %v1154_v62 = vshrl.u32 %v4463_v2, 16  ;;  %v1158_v44 = vrot.slane %v1156_v48, 1  ;;  %v1175_v2 = vshrl.u32 %v4466_v59, 16 }
  0x71   : > { %v1165_v39 = vrot.slane %v1163_v56, 1  ;;  %v448_v56 = vld [vmem:[%s5431_s22 + $0x1fc] sm:$0x1]  ;;  %v1172_v25 = vrot.slane %v1170_v14, 1  ;;  %v454_v59 = vld [vmem:[%s5431_s22 + $0x214] sm:$0x1] }
  0x72   : > { %v5871_v3 = vor.u32 %v1144_v27, %v1140_v0  ;;  %v1168_v27 = vshrl.u32 %v4465_v28, 16  ;;  %v5883_v0 = vor.u32 %v1158_v44, %v1154_v62  ;;  %v5893_v28 = vor.u32 %v1179_v13, %v1175_v2  ;;  %v5904_v2 = vld [vmem:[%s5431_s22 + $0x220] sm:$0xf]  ;;  %v458_v13 = vld [vmem:[%s5431_s22 + $0x224] sm:$0x1] }
  0x73   : > { %1341 = vrot.lane.b32.xlu1 %v5826_v7, %s5373_s23  ;;  %v4468_v7 = vcombine.low %v5853_v45, %v444_v17  ;;  %v4469_v45 = vcombine.low %v447_v10, %v448_v56  ;;  %v1182_v62 = vshrl.u32 %v4467_v1, 16  ;;  %v4472_v14 = vcombine.low %v5886_v35, %v454_v59  ;;  %9066 = vst [vmem:[#allocation65_spill] sm:$0xff] %v5904_v2 }
  0x74   : > { %1339 = vrot.lane.b32.xlu0 %v5835_v58, %s5373_s23  ;;  %v450_v58 = vld [vmem:[%s5431_s22 + $0x204] sm:$0x1]  ;;  %9059 = vst [vmem:[#allocation58_spill] sm:$0xff] %v5871_v3  ;;  %9061 = vst [vmem:[#allocation60_spill] sm:$0xff] %v5883_v0  ;;  %v5900_v10 = vor.u32 %v1172_v25, %v1168_v27  ;;  %v4474_v59 = vcombine.low %v5904_v2, %v458_v13 }
  0x75   : > { %v4470_v17 = vcombine.low %v5866_v37, %v450_v58  ;;  %v1191_v48 = vshll.u32 %v4468_v7, 16  ;;  %v5890_v58 = vld [vmem:[%s5431_s22 + $0x208] sm:$0xf]  ;;  %9064 = vst [vmem:[#allocation63_spill] sm:$0xff] %v5893_v28  ;;  %v1189_v44 = vshrl.u32 %v4468_v7, 16  ;;  %v1219_v25 = vshll.u32 %v4472_v14, 16 }
  0x76   : > { %9063 = vst [vmem:[#allocation62_spill] sm:$0xff] %v5890_v58  ;;  %9065 = vst [vmem:[#allocation64_spill] sm:$0xff] %v5900_v10 }
  0x77   : > { %1345 = vrot.lane.b32.xlu1 %v5842_v32, %s5373_s23  ;;  %v5879_v32 = vor.u32 %v1165_v39, %v1161_v33  ;;  %v452_v33 = vld [vmem:[%s5431_s22 + $0x20c] sm:$0x1]  ;;  %v1205_v26 = vshll.u32 %v4470_v17, 16  ;;  %v1193_v39 = vrot.slane %v1191_v48, 1  ;;  %v1203_v7 = vshrl.u32 %v4470_v17, 16 }
  0x78   : > { %1343 = vrot.lane.b32.xlu0 %v5849_v41, %s5373_s23  ;;  %v1184_v41 = vshll.u32 %v4467_v1, 16  ;;  %v456_v1 = vld [vmem:[%s5431_s22 + $0x21c] sm:$0x1]  ;;  %v5922_v17 = vld [vmem:[%s5431_s22 + $0x230] sm:$0xf]  ;;  %v1221_v13 = vrot.slane %v1219_v25, 1 }
  0x79   : > { %9060 = vst [vmem:[#allocation59_spill] sm:$0xff] %v5879_v32  ;;  %v1207_v48 = vrot.slane %v1205_v26, 1  ;;  %v5913_v27 = vor.u32 %v1193_v39, %v1189_v44  ;;  %v462_v26 = vld [vmem:[%s5431_s22 + $0x234] sm:$0x1]  ;;  %v460_v44 = vld [vmem:[%s5431_s22 + $0x22c] sm:$0x1] }
  0x7a   : > { %v1186_v56 = vrot.slane %v1184_v41, 1  ;;  %v1196_v41 = vshrl.u32 %v4469_v45, 16 }
  0x7b   : > { %1349 = vrot.lane.b32.xlu1 %v5862_v12, %s5373_s23  ;;  %v4471_v12 = vcombine.low %v5890_v58, %v452_v33  ;;  %9067 = vst [vmem:[#allocation66_spill] sm:$0xff] %v5913_v27  ;;  %v5926_v58 = vld [vmem:[%s5431_s22 + $0x228] sm:$0xf]  ;;  %v5929_v39 = vor.u32 %v1207_v48, %v1203_v7  ;;  %v1231_v7 = vshrl.u32 %v4474_v59, 16 }
  0x7c   : > { %1347 = vrot.lane.b32.xlu0 %v5871_v3, %s5373_s23  ;;  %v1198_v3 = vshll.u32 %v4469_v45, 16  ;;  %v5918_v33 = vor.u32 %v1186_v56, %v1182_v62  ;;  %v1217_v45 = vshrl.u32 %v4472_v14, 16  ;;  %v1233_v62 = vshll.u32 %v4474_v59, 16 }
  0x7d   : > { %v1212_v35 = vshll.u32 %v4471_v12, 16  ;;  %9068 = vst [vmem:[#allocation67_spill] sm:$0xff] %v5929_v39  ;;  %v4475_v2 = vcombine.low %v5926_v58, %v460_v44 }
  0x7e   : > { %v5941_v14 = vor.u32 %v1221_v13, %v1217_v45  ;;  %v1235_v48 = vrot.slane %v1233_v62, 1 }
  0x7f   : > { %1353 = vrot.lane.b32.xlu1 %v5879_v32, %s5373_s23  ;;  %v5908_v32 = vld [vmem:[%s5431_s22 + $0x218] sm:$0xf] }
  0x80   : > { %1351 = vrot.lane.b32.xlu0 %v5883_v0, %s5373_s23  ;;  %v1200_v0 = vrot.slane %v1198_v3, 1  ;;  %v4473_v37 = vcombine.low %v5908_v32, %v456_v1  ;;  %v4476_v3 = vcombine.low %v5922_v17, %v462_v26  ;;  %v1214_v1 = vrot.slane %v1212_v35, 1  ;;  %9070 = vst [vmem:[#allocation69_spill] sm:$0xff] %v5941_v14 }
  0x81   : > { %v5953_v44 = vor.u32 %v1235_v48, %v1231_v7 }
  0x82   : > { %v5936_v56 = vor.u32 %v1200_v0, %v1196_v41  ;;  %v1224_v26 = vshrl.u32 %v4473_v37, 16  ;;  %v1240_v41 = vshll.u32 %v4475_v2, 16  ;;  %v1245_v59 = vshrl.u32 %v4476_v3, 16 }
  0x83   : > { %1357 = vrot.lane.b32.xlu1 %v5893_v28, %s5373_s23  ;;  %v1210_v28 = vshrl.u32 %v4471_v12, 16  ;;  %v1247_v12 = vshll.u32 %v4476_v3, 16  ;;  %9074 = vst [vmem:[#allocation73_spill] sm:$0xff] %v5953_v44 }
  0x84   : > { %1355 = vrot.lane.b32.xlu0 %v5900_v10, %s5373_s23  ;;  %9069 = vst [vmem:[#allocation68_spill] sm:$0xff] %v5936_v56  ;;  %v1226_v10 = vshll.u32 %v4473_v37, 16  ;;  %v1238_v37 = vshrl.u32 %v4475_v2, 16  ;;  %v5268_v2 = vld [vmem:[%s5431_s22 + $0x10] sm:$0xf] }
  0x85   : > { %v5945_v25 = vor.u32 %v1214_v1, %v1210_v28  ;;  %v1249_v45 = vrot.slane %v1247_v12, 1  ;;  %v4478_v12 = vcombine.low %v5268_v2, %v5268_v2 }
  0x86   : > { %v1228_v0 = vrot.slane %v1226_v10, 1  ;;  %v1242_v10 = vrot.slane %v1240_v41, 1 }
  0x87   : > { %1361 = vrot.lane.b32.xlu1 %v5913_v27, %s5373_s23  ;;  %9071 = vst [vmem:[#allocation70_spill] sm:$0xff] %v5945_v25  ;;  %v5965_v1 = vor.u32 %v1249_v45, %v1245_v59  ;;  %v4480_v45 = vcombine.low %v5444_v16, %v5444_v16 }
  0x88   : > { %1359 = vrot.lane.b32.xlu0 %v5918_v33, %s5373_s23  ;;  %v5957_v28 = vor.u32 %v1228_v0, %v1224_v26  ;;  %v5969_v3 = vor.u32 %v1242_v10, %v1238_v37  ;;  %v5269_v26 = vld [vmem:[%s5431_s22 + $0x8] sm:$0xf]  ;;  %v5270_v37 = vld [vmem:[%s5431_s22 + $0x18] sm:$0xf] }
  0x89   : > { %9078 = vst [vmem:[#allocation77_spill] sm:$0xff] %v5965_v1  ;;  %v4477_v0 = vcombine.low %v5269_v26, %v5269_v26  ;;  %v4479_v10 = vcombine.low %v5270_v37, %v5270_v37  ;;  %v4482_v26 = vcombine.low %v5451_v31, %v5451_v31 }
  0x8a   : > { %9075 = vst [vmem:[#allocation74_spill] sm:$0xff] %v5957_v28  ;;  %9079 = vst [vmem:[#allocation78_spill] sm:$0xff] %v5969_v3 }
  0x8b   : > { %1365 = vrot.lane.b32.xlu1 %v5929_v39, %s5373_s23 }
  0x8c   : > { %1363 = vrot.lane.b32.xlu0 %v5936_v56, %s5373_s23 }
  0x8d   : > { %v5947_v35 = vpop.permute.xlu1 %1255 }
  0x8e   : > { %9072 = vst [vmem:[#allocation71_spill] sm:$0xff] %v5947_v35  ;;  %v5949_v27 = vpop.permute.xlu0 %1251 }
  0x8f   : > { %9073 = vst [vmem:[#allocation72_spill] sm:$0xff] %v5949_v27  ;;  %1369 = vrot.lane.b32.xlu1 %v5941_v14, %s5373_s23 }
  0x90   : > { %1367 = vrot.lane.b32.xlu0 %v5945_v25, %s5373_s23 }
  0x91   : > { %v5959_v13 = vpop.permute.xlu1 %1257 }
  0x92   : > { %9076 = vst [vmem:[#allocation75_spill] sm:$0xff] %v5959_v13  ;;  %v5961_v62 = vpop.permute.xlu0 %1253 }
  0x93   : > { %9077 = vst [vmem:[#allocation76_spill] sm:$0xff] %v5961_v62  ;;  %1373 = vrot.lane.b32.xlu1 %v5953_v44, %s5373_s23 }
  0x94   : > { %1371 = vrot.lane.b32.xlu0 %v5957_v28, %s5373_s23 }
  0x95   : > { %v5971_v7 = vpop.permute.xlu1 %1261 }
  0x96   : > { %9080 = vst [vmem:[#allocation79_spill] sm:$0xff] %v5971_v7  ;;  %v5973_v48 = vpop.permute.xlu0 %1259 }
  0x97   : > { %9081 = vst [vmem:[#allocation80_spill] sm:$0xff] %v5973_v48  ;;  %1377 = vrot.lane.b32.xlu1 %v5965_v1, %s5373_s23 }
  0x98   : > { %1375 = vrot.lane.b32.xlu0 %v5969_v3, %s5373_s23 }
  0x99   : > { %v5981_v41 = vpop.permute.xlu1 %1265 }
  0x9a   : > { %9082 = vst [vmem:[#allocation81_spill] sm:$0xff] %v5981_v41  ;;  %v5983_v59 = vpop.permute.xlu0 %1263  ;;  %v6000_v41 = vld [vmem:[%s5431_s22 + $0x40] sm:$0xf] }
  0x9b   : > { %9083 = vst [vmem:[#allocation82_spill] sm:$0xff] %v5983_v59  ;;  %1461 = vrot.lane.b32.xlu1 %v4478_v12, %s5374_s24  ;;  %v5271_v12 = vld [vmem:[%s5431_s22 + $0x28] sm:$0xf]  ;;  %v4484_v37 = vcombine.low %v6000_v41, %v6000_v41 }
  0x9c   : > { %1459 = vrot.lane.b32.xlu0 %v4477_v0, %s5374_s24  ;;  %v4481_v59 = vcombine.low %v5271_v12, %v5271_v12  ;;  %v6018_v12 = vcombine.low %v5476_v55, %v5476_v55  ;;  %v6039_v55 = vcombine.low %v5472_v52, %v5472_v52  ;;  %v6058_v52 = vld [vmem:[%s5431_s22 + $0x88] sm:$0xf] }
  0x9d   : > { %v5990_v2 = vpop.permute.xlu1 %1269 }
  0x9e   : > { %9084 = vst [vmem:[#allocation83_spill] sm:$0xff] %v5990_v2  ;;  %v5992_v48 = vpop.permute.xlu0 %1267 }
  0x9f   : > { %9085 = vst [vmem:[#allocation84_spill] sm:$0xff] %v5992_v48  ;;  %1465 = vrot.lane.b32.xlu1 %v4480_v45, %s5374_s24  ;;  %v5272_v45 = vld [vmem:[%s5431_s22 + $0x38] sm:$0xf] }
  0xa0   : > { %1463 = vrot.lane.b32.xlu0 %v4479_v10, %s5374_s24  ;;  %v4483_v48 = vcombine.low %v5272_v45, %v5272_v45 }
  0xa1   : > { %v6002_v16 = vpop.permute.xlu1 %1273 }
  0xa2   : > { %9086 = vst [vmem:[#allocation85_spill] sm:$0xff] %v6002_v16  ;;  %v6004_v0 = vpop.permute.xlu0 %1271 }
  0xa3   : > { %9087 = vst [vmem:[#allocation86_spill] sm:$0xff] %v6004_v0  ;;  %1469 = vrot.lane.b32.xlu1 %v4482_v26, %s5374_s24  ;;  %v6023_v26 = vcombine.low %v5459_v40, %v5459_v40 }
  0xa4   : > { %1467 = vrot.lane.b32.xlu0 %v4481_v59, %s5374_s24 }
  0xa5   : > { %v6011_v31 = vpop.permute.xlu1 %1277 }
  0xa6   : > { %9088 = vst [vmem:[#allocation87_spill] sm:$0xff] %v6011_v31  ;;  %v6013_v10 = vpop.permute.xlu0 %1275 }
  0xa7   : > { %9089 = vst [vmem:[#allocation88_spill] sm:$0xff] %v6013_v10  ;;  %1473 = vrot.lane.b32.xlu1 %v4484_v37, %s5374_s24  ;;  %v6033_v37 = vcombine.low %v5494_v6, %v5494_v6  ;;  %v6055_v6 = vcombine.low %v5490_v4, %v5490_v4  ;;  %v6074_v4 = vcombine.low %v5508_v19, %v5508_v19 }
  0xa8   : > { %1471 = vrot.lane.b32.xlu0 %v4483_v48, %s5374_s24 }
  0xa9   : > { %v6025_v59 = vpop.permute.xlu1 %1281 }
  0xaa   : > { %9090 = vst [vmem:[#allocation89_spill] sm:$0xff] %v6025_v59  ;;  %v6027_v45 = vpop.permute.xlu0 %1279 }
  0xab   : > { %9091 = vst [vmem:[#allocation90_spill] sm:$0xff] %v6027_v45  ;;  %1477 = vrot.lane.b32.xlu1 %v6018_v12, %s5374_s24  ;;  %v6049_v45 = vcombine.low %v5512_v21, %v5512_v21  ;;  %v6068_v21 = vcombine.low %v6058_v52, %v6058_v52 }
  0xac   : > { %1475 = vrot.lane.b32.xlu0 %v6023_v26, %s5374_s24 }
  0xad   : > { %v6041_v40 = vpop.permute.xlu1 %1285  ;;  %9096 = vst [vmem:[#allocation95_spill] sm:$0xff] %v6068_v21 }
  0xae   : > { %9092 = vst [vmem:[#allocation91_spill] sm:$0xff] %v6041_v40  ;;  %v6043_v48 = vpop.permute.xlu0 %1283 }
  0xaf   : > { %9093 = vst [vmem:[#allocation92_spill] sm:$0xff] %v6043_v48  ;;  %1481 = vrot.lane.b32.xlu1 %v6033_v37, %s5374_s24 }
  0xb0   : > { %1479 = vrot.lane.b32.xlu0 %v6039_v55, %s5374_s24 }
  0xb1   : > { %v6060_v59 = vpop.permute.xlu1 %1289 }
  0xb2   : > { %9094 = vst [vmem:[#allocation93_spill] sm:$0xff] %v6060_v59  ;;  %v6062_v40 = vpop.permute.xlu0 %1287  ;;  %v6090_v59 = vcombine.low %v5521_v29, %v5521_v29 }
  0xb3   : > { %9095 = vst [vmem:[#allocation94_spill] sm:$0xff] %v6062_v40  ;;  %1485 = vrot.lane.b32.xlu1 %v6049_v45, %s5374_s24  ;;  %v6084_v40 = vcombine.low %v5545_v57, %v5545_v57  ;;  %v6106_v57 = vcombine.low %v5541_v53, %v5541_v53  ;;  %v6125_v53 = vld [vmem:[%s5431_s22 + $0xd0] sm:$0xf] }
  0xb4   : > { %1483 = vrot.lane.b32.xlu0 %v6055_v6, %s5374_s24 }
  0xb5   : > { %v6076_v48 = vpop.permute.xlu1 %1293 }
  0xb6   : > { %9097 = vst [vmem:[#allocation96_spill] sm:$0xff] %v6076_v48  ;;  %v6078_v10 = vpop.permute.xlu0 %1291 }
  0xb7   : > { %9098 = vst [vmem:[#allocation97_spill] sm:$0xff] %v6078_v10  ;;  %1489 = vrot.lane.b32.xlu1 %v6068_v21, %s5374_s24  ;;  %v6100_v10 = vcombine.low %v5563_v11, %v5563_v11  ;;  %v6122_v11 = vcombine.low %v5559_v8, %v5559_v8  ;;  %v6141_v8 = vcombine.low %v5572_v23, %v5572_v23 }
  0xb8   : > { %1487 = vrot.lane.b32.xlu0 %v6074_v4, %s5374_s24 }
  0xb9   : > { %v6092_v19 = vpop.permute.xlu1 %1297 }
  0xba   : > { %9099 = vst [vmem:[#allocation98_spill] sm:$0xff] %v6092_v19  ;;  %v6094_v48 = vpop.permute.xlu0 %1295 }
  0xbb   : > { %9100 = vst [vmem:[#allocation99_spill] sm:$0xff] %v6094_v48  ;;  %1493 = vrot.lane.b32.xlu1 %v6084_v40, %s5374_s24  ;;  %v6116_v48 = vcombine.low %v5581_v34, %v5581_v34  ;;  %v6135_v34 = vcombine.low %v6125_v53, %v6125_v53 }
  0xbc   : > { %1491 = vrot.lane.b32.xlu0 %v6090_v59, %s5374_s24 }
  0xbd   : > { %v6108_v29 = vpop.permute.xlu1 %1301  ;;  %9105 = vst [vmem:[#allocation104_spill] sm:$0xff] %v6135_v34 }
  0xbe   : > { %9101 = vst [vmem:[#allocation100_spill] sm:$0xff] %v6108_v29  ;;  %v6110_v31 = vpop.permute.xlu0 %1299 }
  0xbf   : > { %9102 = vst [vmem:[#allocation101_spill] sm:$0xff] %v6110_v31  ;;  %1497 = vrot.lane.b32.xlu1 %v6100_v10, %s5374_s24 }
  0xc0   : > { %1495 = vrot.lane.b32.xlu0 %v6106_v57, %s5374_s24 }
  0xc1   : > { %v6127_v19 = vpop.permute.xlu1 %1305 }
  0xc2   : > { %9103 = vst [vmem:[#allocation102_spill] sm:$0xff] %v6127_v19  ;;  %v6129_v29 = vpop.permute.xlu0 %1303  ;;  %v6157_v19 = vcombine.low %v5595_v51, %v5595_v51 }
  0xc3   : > { %9104 = vst [vmem:[#allocation103_spill] sm:$0xff] %v6129_v29  ;;  %1501 = vrot.lane.b32.xlu1 %v6116_v48, %s5374_s24  ;;  %v6151_v29 = vcombine.low %v5614_v20, %v5614_v20  ;;  %v6173_v20 = vcombine.low %v5610_v15, %v5610_v15  ;;  %v6192_v15 = vld [vmem:[%s5431_s22 + $0x118] sm:$0xf] }
  0xc4   : > { %1499 = vrot.lane.b32.xlu0 %v6122_v11, %s5374_s24  ;;  %9109 = vst [vmem:[#allocation108_spill] sm:$0xff] %v6157_v19 }
  0xc5   : > { %v6143_v31 = vpop.permute.xlu1 %1309  ;;  %9108 = vst [vmem:[#allocation107_spill] sm:$0xff] %v6151_v29  ;;  %9113 = vst [vmem:[#allocation112_spill] sm:$0xff] %v6173_v20 }
  0xc6   : > { %9106 = vst [vmem:[#allocation105_spill] sm:$0xff] %v6143_v31  ;;  %v6145_v0 = vpop.permute.xlu0 %1307 }
  0xc7   : > { %9107 = vst [vmem:[#allocation106_spill] sm:$0xff] %v6145_v0  ;;  %1505 = vrot.lane.b32.xlu1 %v6135_v34, %s5374_s24  ;;  %v6167_v0 = vcombine.low %v5632_v54, %v5632_v54  ;;  %v6189_v54 = vcombine.low %v5623_v42, %v5623_v42  ;;  %v6208_v42 = vcombine.low %v5646_v24, %v5646_v24 }
  0xc8   : > { %1503 = vrot.lane.b32.xlu0 %v6141_v8, %s5374_s24 }
  0xc9   : > { %v6159_v23 = vpop.permute.xlu1 %1313  ;;  %9112 = vst [vmem:[#allocation111_spill] sm:$0xff] %v6167_v0  ;;  %9117 = vst [vmem:[#allocation116_spill] sm:$0xff] %v6189_v54 }
  0xca   : > { %9110 = vst [vmem:[#allocation109_spill] sm:$0xff] %v6159_v23  ;;  %v6161_v31 = vpop.permute.xlu0 %1311  ;;  %9121 = vst [vmem:[#allocation120_spill] sm:$0xff] %v6208_v42 }
  0xcb   : > { %9111 = vst [vmem:[#allocation110_spill] sm:$0xff] %v6161_v31  ;;  %1509 = vrot.lane.b32.xlu1 %v6151_v29, %s5374_s24  ;;  %v6183_v31 = vcombine.low %v5650_v43, %v5650_v43  ;;  %v6202_v43 = vcombine.low %v6192_v15, %v6192_v15 }
  0xcc   : > { %1507 = vrot.lane.b32.xlu0 %v6157_v19, %s5374_s24 }
  0xcd   : > { %v6175_v51 = vpop.permute.xlu1 %1317  ;;  %9116 = vst [vmem:[#allocation115_spill] sm:$0xff] %v6183_v31  ;;  %9120 = vst [vmem:[#allocation119_spill] sm:$0xff] %v6202_v43 }
  0xce   : > { %9114 = vst [vmem:[#allocation113_spill] sm:$0xff] %v6175_v51  ;;  %v6177_v16 = vpop.permute.xlu0 %1315 }
  0xcf   : > { %9115 = vst [vmem:[#allocation114_spill] sm:$0xff] %v6177_v16  ;;  %1513 = vrot.lane.b32.xlu1 %v6167_v0, %s5374_s24  ;;  %v9151_v16 = vld [vmem:[#allocation43_spill] sm:$0xff] }
  0xd0   : > { %1511 = vrot.lane.b32.xlu0 %v6173_v20, %s5374_s24  ;;  %v6358_v34 = vcombine.low %v9151_v16, %v9151_v16 }
  0xd1   : > { %v6194_v23 = vpop.permute.xlu1 %1321 }
  0xd2   : > { %9118 = vst [vmem:[#allocation117_spill] sm:$0xff] %v6194_v23  ;;  %v6196_v2 = vpop.permute.xlu0 %1319  ;;  %v6224_v23 = vcombine.low %v5664_v63, %v5664_v63 }
  0xd3   : > { %9119 = vst [vmem:[#allocation118_spill] sm:$0xff] %v6196_v2  ;;  %1517 = vrot.lane.b32.xlu1 %v6183_v31, %s5374_s24  ;;  %v6218_v2 = vcombine.low %v5683_v30, %v5683_v30  ;;  %v6240_v30 = vcombine.low %v5675_v9, %v5675_v9  ;;  %v6259_v9 = vld [vmem:[%s5431_s22 + $0x160] sm:$0xf] }
  0xd4   : > { %1515 = vrot.lane.b32.xlu0 %v6189_v54, %s5374_s24  ;;  %9125 = vst [vmem:[#allocation124_spill] sm:$0xff] %v6224_v23 }
  0xd5   : > { %v6210_v7 = vpop.permute.xlu1 %1325  ;;  %9124 = vst [vmem:[#allocation123_spill] sm:$0xff] %v6218_v2  ;;  %9129 = vst [vmem:[#allocation128_spill] sm:$0xff] %v6240_v30 }
  0xd6   : > { %9122 = vst [vmem:[#allocation121_spill] sm:$0xff] %v6210_v7  ;;  %v6212_v56 = vpop.permute.xlu0 %1323 }
  0xd7   : > { %9123 = vst [vmem:[#allocation122_spill] sm:$0xff] %v6212_v56  ;;  %1521 = vrot.lane.b32.xlu1 %v6202_v43, %s5374_s24  ;;  %v6234_v43 = vcombine.low %v5701_v5, %v5701_v5  ;;  %v6256_v5 = vcombine.low %v5697_v49, %v5697_v49  ;;  %v6275_v49 = vcombine.low %v5715_v61, %v5715_v61 }
  0xd8   : > { %1519 = vrot.lane.b32.xlu0 %v6208_v42, %s5374_s24 }
  0xd9   : > { %v6226_v24 = vpop.permute.xlu1 %1329  ;;  %9128 = vst [vmem:[#allocation127_spill] sm:$0xff] %v6234_v43  ;;  %9133 = vst [vmem:[#allocation132_spill] sm:$0xff] %v6256_v5 }
  0xda   : > { %9126 = vst [vmem:[#allocation125_spill] sm:$0xff] %v6226_v24  ;;  %v6228_v7 = vpop.permute.xlu0 %1327  ;;  %9137 = vst [vmem:[#allocation136_spill] sm:$0xff] %v6275_v49 }
  0xdb   : > { %9127 = vst [vmem:[#allocation126_spill] sm:$0xff] %v6228_v7  ;;  %1525 = vrot.lane.b32.xlu1 %v6218_v2, %s5374_s24  ;;  %v6250_v7 = vcombine.low %v5719_v46, %v5719_v46  ;;  %v6269_v46 = vcombine.low %v6259_v9, %v6259_v9 }
  0xdc   : > { %1523 = vrot.lane.b32.xlu0 %v6224_v23, %s5374_s24 }
  0xdd   : > { %v6242_v63 = vpop.permute.xlu1 %1333  ;;  %9132 = vst [vmem:[#allocation131_spill] sm:$0xff] %v6250_v7  ;;  %9136 = vst [vmem:[#allocation135_spill] sm:$0xff] %v6269_v46 }
  0xde   : > { %9130 = vst [vmem:[#allocation129_spill] sm:$0xff] %v6242_v63  ;;  %v6244_v56 = vpop.permute.xlu0 %1331 }
  0xdf   : > { %9131 = vst [vmem:[#allocation130_spill] sm:$0xff] %v6244_v56  ;;  %1529 = vrot.lane.b32.xlu1 %v6234_v43, %s5374_s24 }
  0xe0   : > { %1527 = vrot.lane.b32.xlu0 %v6240_v30, %s5374_s24 }
  0xe1   : > { %v6261_v24 = vpop.permute.xlu1 %1337 }
  0xe2   : > { %9134 = vst [vmem:[#allocation133_spill] sm:$0xff] %v6261_v24  ;;  %v6263_v63 = vpop.permute.xlu0 %1335  ;;  %v6291_v24 = vcombine.low %v5728_v50, %v5728_v50 }
  0xe3   : > { %9135 = vst [vmem:[#allocation134_spill] sm:$0xff] %v6263_v63  ;;  %1533 = vrot.lane.b32.xlu1 %v6250_v7, %s5374_s24  ;;  %v6285_v63 = vcombine.low %v5752_v60, %v5752_v60  ;;  %v6307_v60 = vcombine.low %v5748_v47, %v5748_v47  ;;  %v6326_v47 = vld [vmem:[%s5431_s22 + $0x1a8] sm:$0xf] }
  0xe4   : > { %1531 = vrot.lane.b32.xlu0 %v6256_v5, %s5374_s24 }
  0xe5   : > { %v6277_v56 = vpop.permute.xlu1 %1341 }
  0xe6   : > { %9138 = vst [vmem:[#allocation137_spill] sm:$0xff] %v6277_v56  ;;  %v6279_v13 = vpop.permute.xlu0 %1339 }
  0xe7   : > { %9139 = vst [vmem:[#allocation138_spill] sm:$0xff] %v6279_v13  ;;  %1537 = vrot.lane.b32.xlu1 %v6269_v46, %s5374_s24  ;;  %v6301_v46 = vcombine.low %v5770_v36, %v5770_v36  ;;  %v6323_v36 = vcombine.low %v5766_v38, %v5766_v38  ;;  %v6342_v38 = vcombine.low %v5779_v22, %v5779_v22 }
  0xe8   : > { %1535 = vrot.lane.b32.xlu0 %v6275_v49, %s5374_s24 }
  0xe9   : > { %v6293_v61 = vpop.permute.xlu1 %1345 }
  0xea   : > { %9140 = vst [vmem:[#allocation139_spill] sm:$0xff] %v6293_v61  ;;  %v6295_v56 = vpop.permute.xlu0 %1343 }
  0xeb   : > { %9141 = vst [vmem:[#allocation140_spill] sm:$0xff] %v6295_v56  ;;  %1541 = vrot.lane.b32.xlu1 %v6285_v63, %s5374_s24  ;;  %v6317_v56 = vcombine.low %v5788_v18, %v5788_v18  ;;  %v6336_v18 = vcombine.low %v6326_v47, %v6326_v47 }
  0xec   : > { %1539 = vrot.lane.b32.xlu0 %v6291_v24, %s5374_s24 }
  0xed   : > { %v6309_v50 = vpop.permute.xlu1 %1349  ;;  %9146 = vst [vmem:[#allocation145_spill] sm:$0xff] %v6336_v18 }
  0xee   : > { %9142 = vst [vmem:[#allocation141_spill] sm:$0xff] %v6309_v50  ;;  %v6311_v13 = vpop.permute.xlu0 %1347 }
  0xef   : > { %9143 = vst [vmem:[#allocation142_spill] sm:$0xff] %v6311_v13  ;;  %1545 = vrot.lane.b32.xlu1 %v6301_v46, %s5374_s24 }
  0xf0   : > { %1543 = vrot.lane.b32.xlu0 %v6307_v60, %s5374_s24 }
  0xf1   : > { %v6328_v61 = vpop.permute.xlu1 %1353 }
  0xf2   : > { %9144 = vst [vmem:[#allocation143_spill] sm:$0xff] %v6328_v61  ;;  %v6330_v50 = vpop.permute.xlu0 %1351 }
  0xf3   : > { %9145 = vst [vmem:[#allocation144_spill] sm:$0xff] %v6330_v50  ;;  %1549 = vrot.lane.b32.xlu1 %v6317_v56, %s5374_s24  ;;  %v9149_v50 = vld [vmem:[#allocation47_spill] sm:$0xff] }
  0xf4   : > { %1547 = vrot.lane.b32.xlu0 %v6323_v36, %s5374_s24  ;;  %v6352_v61 = vcombine.low %v9149_v50, %v9149_v50  ;;  %v9156_v50 = vld [vmem:[#allocation46_spill] sm:$0xff] }
  0xf5   : > { %v6344_v13 = vpop.permute.xlu1 %1357  ;;  %v6374_v62 = vcombine.low %v9156_v50, %v9156_v50  ;;  %v6393_v50 = vld [vmem:[%s5431_s22 + $0x1f0] sm:$0xf] }
  0xf6   : > { %9147 = vst [vmem:[#allocation146_spill] sm:$0xff] %v6344_v13  ;;  %v6346_v35 = vpop.permute.xlu0 %1355  ;;  %9150 = vst [vmem:[#allocation47_spill] sm:$0xff] %v6352_v61 }
  0xf7   : > { %9148 = vst [vmem:[#allocation147_spill] sm:$0xff] %v6346_v35  ;;  %1553 = vrot.lane.b32.xlu1 %v6336_v18, %s5374_s24  ;;  %v9154_v35 = vld [vmem:[#allocation51_spill] sm:$0xff]  ;;  %9157 = vst [vmem:[#allocation46_spill] sm:$0xff] %v6374_v62 }
  0xf8   : > { %1551 = vrot.lane.b32.xlu0 %v6342_v38, %s5374_s24  ;;  %v6368_v51 = vcombine.low %v9154_v35, %v9154_v35  ;;  %v9162_v35 = vld [vmem:[#allocation49_spill] sm:$0xff] }
  0xf9   : > { %v6360_v22 = vpop.permute.xlu1 %1361  ;;  %v6390_v18 = vcombine.low %v9162_v35, %v9162_v35 }
  0xfa   : > { %9152 = vst [vmem:[#allocation43_spill] sm:$0xff] %v6360_v22  ;;  %v6362_v13 = vpop.permute.xlu0 %1359  ;;  %9155 = vst [vmem:[#allocation51_spill] sm:$0xff] %v6368_v51 }
  0xfb   : > { %9153 = vst [vmem:[#allocation148_spill] sm:$0xff] %v6362_v13  ;;  %1557 = vrot.lane.b32.xlu1 %v6352_v61, %s5374_s24  ;;  %v9160_v13 = vld [vmem:[#allocation55_spill] sm:$0xff]  ;;  %9163 = vst [vmem:[#allocation49_spill] sm:$0xff] %v6390_v18 }
  0xfc   : > { %1555 = vrot.lane.b32.xlu0 %v6358_v34, %s5374_s24  ;;  %v6384_v22 = vcombine.low %v9160_v13, %v9160_v13  ;;  %v6403_v13 = vcombine.low %v6393_v50, %v6393_v50 }
  0xfd   : > { %v6376_v16 = vpop.permute.xlu1 %1365 }
  0xfe   : > { %9158 = vst [vmem:[#allocation149_spill] sm:$0xff] %v6376_v16  ;;  %v6378_v27 = vpop.permute.xlu0 %1363  ;;  %9161 = vst [vmem:[#allocation55_spill] sm:$0xff] %v6384_v22 }
  0xff   : > { %9159 = vst [vmem:[#allocation150_spill] sm:$0xff] %v6378_v27  ;;  %1561 = vrot.lane.b32.xlu1 %v6368_v51, %s5374_s24  ;;  %9166 = vst [vmem:[#allocation153_spill] sm:$0xff] %v6403_v13  ;;  %v9167_v27 = vld [vmem:[#allocation54_spill] sm:$0xff] }
 0x100   : > { %1559 = vrot.lane.b32.xlu0 %v6374_v62, %s5374_s24  ;;  %v6409_v35 = vcombine.low %v9167_v27, %v9167_v27  ;;  %v356_v62 = vld [vmem:[%s5431_s22 + $0x8c] sm:$0x1] }
 0x101   : > { %v6395_v21 = vpop.permute.xlu1 %1369 }
 0x102   : > { %9164 = vst [vmem:[#allocation151_spill] sm:$0xff] %v6395_v21  ;;  %v6397_v16 = vpop.permute.xlu0 %1367  ;;  %9168 = vst [vmem:[#allocation54_spill] sm:$0xff] %v6409_v35 }
 0x103   : > { %9165 = vst [vmem:[#allocation152_spill] sm:$0xff] %v6397_v16  ;;  %1565 = vrot.lane.b32.xlu1 %v6384_v22, %s5374_s24  ;;  %v9171_v16 = vld [vmem:[#allocation62_spill] sm:$0xff]  ;;  %v9173_v22 = vld [vmem:[#allocation57_spill] sm:$0xff] }
 0x104   : > { %1563 = vrot.lane.b32.xlu0 %v6390_v18, %s5374_s24  ;;  %v6419_v21 = vcombine.low %v9171_v16, %v9171_v16  ;;  %v6425_v18 = vcombine.low %v9173_v22, %v9173_v22  ;;  %v9178_v16 = vld [vmem:[#allocation61_spill] sm:$0xff] }
 0x105   : > { %v6411_v51 = vpop.permute.xlu1 %1373 }
 0x106   : > { %9169 = vst [vmem:[#allocation154_spill] sm:$0xff] %v6411_v51  ;;  %v6413_v61 = vpop.permute.xlu0 %1371  ;;  %9172 = vst [vmem:[#allocation62_spill] sm:$0xff] %v6419_v21 }
 0x107   : > { %9170 = vst [vmem:[#allocation155_spill] sm:$0xff] %v6413_v61  ;;  %1569 = vrot.lane.b32.xlu1 %v6403_v13, %s5374_s24  ;;  %9174 = vst [vmem:[#allocation57_spill] sm:$0xff] %v6425_v18  ;;  %v6435_v61 = vcombine.low %v5908_v32, %v5908_v32  ;;  %v6441_v13 = vcombine.low %v9178_v16, %v9178_v16  ;;  %v9183_v32 = vld [vmem:[#allocation65_spill] sm:$0xff] }
 0x108   : > { %1567 = vrot.lane.b32.xlu0 %v6409_v35, %s5374_s24  ;;  %v6460_v16 = vld [vmem:[%s5431_s22 + $0x238] sm:$0xf] }
 0x109   : > { %v6427_v27 = vpop.permute.xlu1 %1377  ;;  %9177 = vst [vmem:[#allocation158_spill] sm:$0xff] %v6435_v61  ;;  %9179 = vst [vmem:[#allocation61_spill] sm:$0xff] %v6441_v13 }
 0x10a   : > { %9175 = vst [vmem:[#allocation156_spill] sm:$0xff] %v6427_v27  ;;  %v6429_v51 = vpop.permute.xlu0 %1375 }
 0x10b   : > { %9176 = vst [vmem:[#allocation157_spill] sm:$0xff] %v6429_v51  ;;  %1573 = vrot.lane.b32.xlu1 %v6419_v21, %s5374_s24  ;;  %v6451_v51 = vcombine.low %v5926_v58, %v5926_v58  ;;  %v6457_v21 = vcombine.low %v9183_v32, %v9183_v32  ;;  %v6470_v58 = vcombine.low %v6460_v16, %v6460_v16 }
 0x10c   : > { %1571 = vrot.lane.b32.xlu0 %v6425_v18, %s5374_s24  ;;  %v6477_v32 = vcombine.low %v5922_v17, %v5922_v17  ;;  %v9193_v17 = vld [vmem:[#allocation2_spill] sm:$0xff] }
 0x10d   : > { %v6443_v22 = vpop.permute.xlu1 %1461  ;;  %9182 = vst [vmem:[#allocation161_spill] sm:$0xff] %v6451_v51  ;;  %9184 = vst [vmem:[#allocation65_spill] sm:$0xff] %v6457_v21 }
 0x10e   : > { %9180 = vst [vmem:[#allocation159_spill] sm:$0xff] %v6443_v22  ;;  %v6445_v27 = vpop.permute.xlu0 %1459  ;;  %9187 = vst [vmem:[#allocation164_spill] sm:$0xff] %v6470_v58 }
 0x10f   : > { %9181 = vst [vmem:[#allocation160_spill] sm:$0xff] %v6445_v27  ;;  %1577 = vrot.lane.b32.xlu1 %v6435_v61, %s5374_s24  ;;  %v338_v27 = vld [vmem:[%s5431_s22 + $0x44] sm:$0x1]  ;;  %9188 = vst [vmem:[#allocation165_spill] sm:$0xff] %v6477_v32 }
 0x110   : > { %1575 = vrot.lane.b32.xlu0 %v6441_v13, %s5374_s24 }
 0x111   : > { %v6462_v18 = vpop.permute.xlu1 %1465 }
 0x112   : > { %9185 = vst [vmem:[#allocation162_spill] sm:$0xff] %v6462_v18  ;;  %v6464_v22 = vpop.permute.xlu0 %1463 }
 0x113   : > { %9186 = vst [vmem:[#allocation163_spill] sm:$0xff] %v6464_v22  ;;  %1581 = vrot.lane.b32.xlu1 %v6451_v51, %s5374_s24  ;;  %v4541_v22 = vcombine.low %v6000_v41, %v338_v27 }
 0x114   : > { %1579 = vrot.lane.b32.xlu0 %v6457_v21, %s5374_s24 }
 0x115   : > { %v6479_v61 = vpop.permute.xlu1 %1469  ;;  %v1614_v13 = vshll.u32 %v4541_v22, 16 }
 0x116   : > { %9189 = vst [vmem:[#allocation166_spill] sm:$0xff] %v6479_v61  ;;  %v6481_v18 = vpop.permute.xlu0 %1467 }
 0x117   : > { %9190 = vst [vmem:[#allocation167_spill] sm:$0xff] %v6481_v18  ;;  %1585 = vrot.lane.b32.xlu1 %v6470_v58, %s5374_s24  ;;  %v9194_v18 = vld [vmem:[#allocation4_spill] sm:$0xff]  ;;  %v1612_v58 = vshrl.u32 %v4541_v22, 16  ;;  %v1616_v61 = vrot.slane %v1614_v13, 1 }
 0x118   : > { %1583 = vrot.lane.b32.xlu0 %v6477_v32, %s5374_s24  ;;  %v9197_v32 = vld [vmem:[#allocation6_spill] sm:$0xff] }
 0x119   : > { %v6488_v51 = vpop.permute.xlu1 %1473 }
 0x11a   : > { %9191 = vst [vmem:[#allocation168_spill] sm:$0xff] %v6488_v51  ;;  %v6490_v21 = vpop.permute.xlu0 %1471  ;;  %v9198_v51 = vld [vmem:[#allocation3_spill] sm:$0xff] }
 0x11b   : > { %9192 = vst [vmem:[#allocation169_spill] sm:$0xff] %v6490_v21  ;;  %1669 = vrot.lane.b32.xlu1 %v9193_v17, %s5375_s25  ;;  %v9201_v17 = vld [vmem:[#allocation8_spill] sm:$0xff] }
 0x11c   : > { %1667 = vrot.lane.b32.xlu0 %v9194_v18, %s5375_s25  ;;  %v1617_v18 = vor.u32 %v1616_v61, %v1612_v58  ;;  %v9208_v58 = vld [vmem:[#allocation12_spill] sm:$0xff] }
 0x11d   : > { %v6496_v41 = vpop.permute.xlu1 %1477 }
 0x11e   : > { %9195 = vst [vmem:[#allocation2_spill] sm:$0xff] %v6496_v41  ;;  %v6498_v27 = vpop.permute.xlu0 %1475  ;;  %v9202_v41 = vld [vmem:[#allocation5_spill] sm:$0xff] }
 0x11f   : > { %9196 = vst [vmem:[#allocation4_spill] sm:$0xff] %v6498_v27  ;;  %1673 = vrot.lane.b32.xlu1 %v9197_v32, %s5375_s25  ;;  %v4542_v32 = vcombine.low %v6058_v52, %v356_v62 }
 0x120   : > { %1671 = vrot.lane.b32.xlu0 %v9198_v51, %s5375_s25  ;;  %v9205_v51 = vld [vmem:[#allocation7_spill] sm:$0xff] }
 0x121   : > { %v6504_v21 = vpop.permute.xlu1 %1481  ;;  %v1621_v61 = vshll.u32 %v4542_v32, 16  ;;  %v1619_v52 = vshrl.u32 %v4542_v32, 16 }
 0x122   : > { %9199 = vst [vmem:[#allocation6_spill] sm:$0xff] %v6504_v21  ;;  %v6506_v35 = vpop.permute.xlu0 %1479  ;;  %v9216_v21 = vld [vmem:[#allocation16_spill] sm:$0xff] }
 0x123   : > { %9200 = vst [vmem:[#allocation3_spill] sm:$0xff] %v6506_v35  ;;  %1677 = vrot.lane.b32.xlu1 %v9201_v17, %s5375_s25 }
 0x124   : > { %1675 = vrot.lane.b32.xlu0 %v9202_v41, %s5375_s25  ;;  %v9209_v41 = vld [vmem:[#allocation9_spill] sm:$0xff] }
 0x125   : > { %v6513_v22 = vpop.permute.xlu1 %1485 }
 0x126   : > { %9203 = vst [vmem:[#allocation8_spill] sm:$0xff] %v6513_v22  ;;  %v6515_v13 = vpop.permute.xlu0 %1483 }
 0x127   : > { %9204 = vst [vmem:[#allocation5_spill] sm:$0xff] %v6515_v13  ;;  %1681 = vrot.lane.b32.xlu1 %v1617_v18, %s5375_s25  ;;  %v1623_v18 = vrot.slane %v1621_v61, 1 }
 0x128   : > { %1679 = vrot.lane.b32.xlu0 %v9205_v51, %s5375_s25  ;;  %v9212_v51 = vld [vmem:[#allocation14_spill] sm:$0xff] }
 0x129   : > { %v6521_v35 = vpop.permute.xlu1 %1489  ;;  %v6543_v27 = vor.u32 %v1623_v18, %v1619_v52 }
 0x12a   : > { %9206 = vst [vmem:[#allocation7_spill] sm:$0xff] %v6521_v35  ;;  %v6523_v17 = vpop.permute.xlu0 %1487  ;;  %v9213_v35 = vld [vmem:[#allocation11_spill] sm:$0xff] }
 0x12b   : > { %9207 = vst [vmem:[#allocation170_spill] sm:$0xff] %v6523_v17  ;;  %1685 = vrot.lane.b32.xlu1 %v9208_v58, %s5375_s25  ;;  %9217 = vst [vmem:[#allocation172_spill] sm:$0xff] %v6543_v27 }
 0x12c   : > { %1683 = vrot.lane.b32.xlu0 %v9209_v41, %s5375_s25 }
 0x12d   : > { %v6529_v13 = vpop.permute.xlu1 %1493 }
 0x12e   : > { %9210 = vst [vmem:[#allocation12_spill] sm:$0xff] %v6529_v13  ;;  %v6531_v62 = vpop.permute.xlu0 %1491  ;;  %v374_v13 = vld [vmem:[%s5431_s22 + $0xd4] sm:$0x1] }
 0x12f   : > { %9211 = vst [vmem:[#allocation9_spill] sm:$0xff] %v6531_v62  ;;  %1689 = vrot.lane.b32.xlu1 %v9212_v51, %s5375_s25  ;;  %v9218_v62 = vld [vmem:[#allocation13_spill] sm:$0xff]  ;;  %v4543_v51 = vcombine.low %v6125_v53, %v374_v13 }
 0x130   : > { %1687 = vrot.lane.b32.xlu0 %v9213_v35, %s5375_s25 }
 0x131   : > { %v6537_v17 = vpop.permute.xlu1 %1497  ;;  %v1628_v18 = vshll.u32 %v4543_v51, 16  ;;  %v1626_v13 = vshrl.u32 %v4543_v51, 16 }
 0x132   : > { %9214 = vst [vmem:[#allocation11_spill] sm:$0xff] %v6537_v17  ;;  %v6539_v22 = vpop.permute.xlu0 %1495 }
 0x133   : > { %9215 = vst [vmem:[#allocation171_spill] sm:$0xff] %v6539_v22  ;;  %1693 = vrot.lane.b32.xlu1 %v9216_v21, %s5375_s25  ;;  %v9221_v22 = vld [vmem:[#allocation15_spill] sm:$0xff]  ;;  %v9224_v21 = vld [vmem:[#allocation20_spill] sm:$0xff] }
 0x134   : > { %1691 = vrot.lane.b32.xlu0 %v9218_v62, %s5375_s25 }
 0x135   : > { %v6548_v32 = vpop.permute.xlu1 %1501 }
 0x136   : > { %9219 = vst [vmem:[#allocation173_spill] sm:$0xff] %v6548_v32  ;;  %v6550_v61 = vpop.permute.xlu0 %1499  ;;  %v9225_v32 = vld [vmem:[#allocation17_spill] sm:$0xff] }
 0x137   : > { %9220 = vst [vmem:[#allocation174_spill] sm:$0xff] %v6550_v61  ;;  %1697 = vrot.lane.b32.xlu1 %v6543_v27, %s5375_s25  ;;  %v1630_v27 = vrot.slane %v1628_v18, 1 }
 0x138   : > { %1695 = vrot.lane.b32.xlu0 %v9221_v22, %s5375_s25  ;;  %v9228_v22 = vld [vmem:[#allocation22_spill] sm:$0xff] }
 0x139   : > { %v6557_v17 = vpop.permute.xlu1 %1505 }
 0x13a   : > { %9222 = vst [vmem:[#allocation175_spill] sm:$0xff] %v6557_v17  ;;  %v6559_v52 = vpop.permute.xlu0 %1503  ;;  %v9229_v17 = vld [vmem:[#allocation19_spill] sm:$0xff] }
 0x13b   : > { %9223 = vst [vmem:[#allocation176_spill] sm:$0xff] %v6559_v52  ;;  %1701 = vrot.lane.b32.xlu1 %v9224_v21, %s5375_s25  ;;  %v9232_v21 = vld [vmem:[#allocation24_spill] sm:$0xff] }
 0x13c   : > { %1699 = vrot.lane.b32.xlu0 %v9225_v32, %s5375_s25  ;;  %v6579_v32 = vor.u32 %v1630_v27, %v1626_v13 }
 0x13d   : > { %v6565_v61 = vpop.permute.xlu1 %1509 }
 0x13e   : > { %9226 = vst [vmem:[#allocation177_spill] sm:$0xff] %v6565_v61  ;;  %v6567_v53 = vpop.permute.xlu0 %1507  ;;  %9233 = vst [vmem:[#allocation180_spill] sm:$0xff] %v6579_v32  ;;  %v392_v61 = vld [vmem:[%s5431_s22 + $0x11c] sm:$0x1] }
 0x13f   : > { %9227 = vst [vmem:[#allocation178_spill] sm:$0xff] %v6567_v53  ;;  %1705 = vrot.lane.b32.xlu1 %v9228_v22, %s5375_s25  ;;  %v9234_v53 = vld [vmem:[#allocation21_spill] sm:$0xff]  ;;  %v4544_v22 = vcombine.low %v6192_v15, %v392_v61 }
 0x140   : > { %1703 = vrot.lane.b32.xlu0 %v9229_v17, %s5375_s25 }
 0x141   : > { %v6573_v52 = vpop.permute.xlu1 %1513  ;;  %v1635_v13 = vshll.u32 %v4544_v22, 16  ;;  %v1633_v61 = vshrl.u32 %v4544_v22, 16 }
 0x142   : > { %9230 = vst [vmem:[#allocation19_spill] sm:$0xff] %v6573_v52  ;;  %v6575_v62 = vpop.permute.xlu0 %1511 }
 0x143   : > { %9231 = vst [vmem:[#allocation179_spill] sm:$0xff] %v6575_v62  ;;  %1709 = vrot.lane.b32.xlu1 %v9232_v21, %s5375_s25  ;;  %v9237_v62 = vld [vmem:[#allocation23_spill] sm:$0xff]  ;;  %v9240_v21 = vld [vmem:[#allocation28_spill] sm:$0xff] }
 0x144   : > { %1707 = vrot.lane.b32.xlu0 %v9234_v53, %s5375_s25 }
 0x145   : > { %v6584_v51 = vpop.permute.xlu1 %1517 }
 0x146   : > { %9235 = vst [vmem:[#allocation181_spill] sm:$0xff] %v6584_v51  ;;  %v6586_v18 = vpop.permute.xlu0 %1515  ;;  %v9241_v51 = vld [vmem:[#allocation25_spill] sm:$0xff] }
 0x147   : > { %9236 = vst [vmem:[#allocation182_spill] sm:$0xff] %v6586_v18  ;;  %1713 = vrot.lane.b32.xlu1 %v6579_v32, %s5375_s25  ;;  %v1637_v32 = vrot.slane %v1635_v13, 1 }
 0x148   : > { %1711 = vrot.lane.b32.xlu0 %v9237_v62, %s5375_s25  ;;  %v9244_v62 = vld [vmem:[#allocation30_spill] sm:$0xff] }
 0x149   : > { %v6593_v52 = vpop.permute.xlu1 %1521 }
 0x14a   : > { %9238 = vst [vmem:[#allocation183_spill] sm:$0xff] %v6593_v52  ;;  %v6595_v27 = vpop.permute.xlu0 %1519  ;;  %v9245_v52 = vld [vmem:[#allocation27_spill] sm:$0xff] }
 0x14b   : > { %9239 = vst [vmem:[#allocation184_spill] sm:$0xff] %v6595_v27  ;;  %1717 = vrot.lane.b32.xlu1 %v9240_v21, %s5375_s25  ;;  %v9248_v21 = vld [vmem:[#allocation32_spill] sm:$0xff] }
 0x14c   : > { %1715 = vrot.lane.b32.xlu0 %v9241_v51, %s5375_s25  ;;  %v6615_v51 = vor.u32 %v1637_v32, %v1633_v61  ;;  %v9256_v61 = vld [vmem:[#allocation36_spill] sm:$0xff] }
 0x14d   : > { %v6601_v18 = vpop.permute.xlu1 %1525 }
 0x14e   : > { %9242 = vst [vmem:[#allocation185_spill] sm:$0xff] %v6601_v18  ;;  %v6603_v15 = vpop.permute.xlu0 %1523  ;;  %9249 = vst [vmem:[#allocation189_spill] sm:$0xff] %v6615_v51  ;;  %v410_v18 = vld [vmem:[%s5431_s22 + $0x164] sm:$0x1] }
 0x14f   : > { %9243 = vst [vmem:[#allocation186_spill] sm:$0xff] %v6603_v15  ;;  %1721 = vrot.lane.b32.xlu1 %v9244_v62, %s5375_s25  ;;  %v9250_v15 = vld [vmem:[#allocation29_spill] sm:$0xff]  ;;  %v4545_v62 = vcombine.low %v6259_v9, %v410_v18  ;;  %v9260_v18 = vld [vmem:[#allocation38_spill] sm:$0xff] }
 0x150   : > { %1719 = vrot.lane.b32.xlu0 %v9245_v52, %s5375_s25 }
 0x151   : > { %v6609_v27 = vpop.permute.xlu1 %1529 }
 0x152   : > { %9246 = vst [vmem:[#allocation187_spill] sm:$0xff] %v6609_v27  ;;  %v6611_v53 = vpop.permute.xlu0 %1527 }
 0x153   : > { %9247 = vst [vmem:[#allocation188_spill] sm:$0xff] %v6611_v53  ;;  %1725 = vrot.lane.b32.xlu1 %v9248_v21, %s5375_s25  ;;  %v9253_v53 = vld [vmem:[#allocation31_spill] sm:$0xff]  ;;  %v1642_v21 = vshll.u32 %v4545_v62, 16 }
 0x154   : > { %1723 = vrot.lane.b32.xlu0 %v9250_v15, %s5375_s25 }
 0x155   : > { %v6620_v22 = vpop.permute.xlu1 %1533 }
 0x156   : > { %9251 = vst [vmem:[#allocation190_spill] sm:$0xff] %v6620_v22  ;;  %v6622_v13 = vpop.permute.xlu0 %1531  ;;  %v9257_v22 = vld [vmem:[#allocation33_spill] sm:$0xff] }
 0x157   : > { %9252 = vst [vmem:[#allocation191_spill] sm:$0xff] %v6622_v13  ;;  %1729 = vrot.lane.b32.xlu1 %v6615_v51, %s5375_s25  ;;  %v1640_v51 = vshrl.u32 %v4545_v62, 16 }
 0x158   : > { %1727 = vrot.lane.b32.xlu0 %v9253_v53, %s5375_s25  ;;  %v1644_v53 = vrot.slane %v1642_v21, 1 }
 0x159   : > { %v6629_v27 = vpop.permute.xlu1 %1537 }
 0x15a   : > { %9254 = vst [vmem:[#allocation192_spill] sm:$0xff] %v6629_v27  ;;  %v6631_v32 = vpop.permute.xlu0 %1535  ;;  %v9261_v27 = vld [vmem:[#allocation35_spill] sm:$0xff] }
 0x15b   : > { %9255 = vst [vmem:[#allocation193_spill] sm:$0xff] %v6631_v32  ;;  %1733 = vrot.lane.b32.xlu1 %v9256_v61, %s5375_s25  ;;  %v9264_v61 = vld [vmem:[#allocation40_spill] sm:$0xff] }
 0x15c   : > { %1731 = vrot.lane.b32.xlu0 %v9257_v22, %s5375_s25  ;;  %v6651_v22 = vor.u32 %v1644_v53, %v1640_v51  ;;  %v9272_v51 = vld [vmem:[#allocation45_spill] sm:$0xff] }
 0x15d   : > { %v6637_v13 = vpop.permute.xlu1 %1541 }
 0x15e   : > { %9258 = vst [vmem:[#allocation194_spill] sm:$0xff] %v6637_v13  ;;  %v6639_v9 = vpop.permute.xlu0 %1539  ;;  %9265 = vst [vmem:[#allocation198_spill] sm:$0xff] %v6651_v22  ;;  %v428_v13 = vld [vmem:[%s5431_s22 + $0x1ac] sm:$0x1] }
 0x15f   : > { %9259 = vst [vmem:[#allocation195_spill] sm:$0xff] %v6639_v9  ;;  %1737 = vrot.lane.b32.xlu1 %v9260_v18, %s5375_s25  ;;  %v9266_v9 = vld [vmem:[#allocation37_spill] sm:$0xff]  ;;  %v4546_v21 = vcombine.low %v6326_v47, %v428_v13  ;;  %v9276_v13 = vld [vmem:[#allocation50_spill] sm:$0xff] }
 0x160   : > { %1735 = vrot.lane.b32.xlu0 %v9261_v27, %s5375_s25 }
 0x161   : > { %v6645_v32 = vpop.permute.xlu1 %1545 }
 0x162   : > { %9262 = vst [vmem:[#allocation196_spill] sm:$0xff] %v6645_v32  ;;  %v6647_v15 = vpop.permute.xlu0 %1543 }
 0x163   : > { %9263 = vst [vmem:[#allocation197_spill] sm:$0xff] %v6647_v15  ;;  %1741 = vrot.lane.b32.xlu1 %v9264_v61, %s5375_s25  ;;  %v9269_v15 = vld [vmem:[#allocation39_spill] sm:$0xff]  ;;  %v1649_v61 = vshll.u32 %v4546_v21, 16 }
 0x164   : > { %1739 = vrot.lane.b32.xlu0 %v9266_v9, %s5375_s25 }
 0x165   : > { %v6656_v52 = vpop.permute.xlu1 %1549 }
 0x166   : > { %9267 = vst [vmem:[#allocation199_spill] sm:$0xff] %v6656_v52  ;;  %v6658_v62 = vpop.permute.xlu0 %1547  ;;  %v9273_v52 = vld [vmem:[#allocation41_spill] sm:$0xff] }
 0x167   : > { %9268 = vst [vmem:[#allocation200_spill] sm:$0xff] %v6658_v62  ;;  %1745 = vrot.lane.b32.xlu1 %v6651_v22, %s5375_s25  ;;  %v1647_v22 = vshrl.u32 %v4546_v21, 16 }
 0x168   : > { %1743 = vrot.lane.b32.xlu0 %v9269_v15, %s5375_s25  ;;  %v1651_v15 = vrot.slane %v1649_v61, 1 }
 0x169   : > { %v6665_v32 = vpop.permute.xlu1 %1553 }
 0x16a   : > { %9270 = vst [vmem:[#allocation201_spill] sm:$0xff] %v6665_v32  ;;  %v6667_v53 = vpop.permute.xlu0 %1551  ;;  %v9277_v32 = vld [vmem:[#allocation44_spill] sm:$0xff] }
 0x16b   : > { %9271 = vst [vmem:[#allocation202_spill] sm:$0xff] %v6667_v53  ;;  %1749 = vrot.lane.b32.xlu1 %v9272_v51, %s5375_s25  ;;  %v9280_v51 = vld [vmem:[#allocation53_spill] sm:$0xff] }
 0x16c   : > { %1747 = vrot.lane.b32.xlu0 %v9273_v52, %s5375_s25  ;;  %v6687_v52 = vor.u32 %v1651_v15, %v1647_v22  ;;  %v9288_v22 = vld [vmem:[#allocation60_spill] sm:$0xff] }
 0x16d   : > { %v6673_v62 = vpop.permute.xlu1 %1557 }
 0x16e   : > { %9274 = vst [vmem:[#allocation203_spill] sm:$0xff] %v6673_v62  ;;  %v6675_v47 = vpop.permute.xlu0 %1555  ;;  %9281 = vst [vmem:[#allocation205_spill] sm:$0xff] %v6687_v52  ;;  %v446_v62 = vld [vmem:[%s5431_s22 + $0x1f4] sm:$0x1] }
 0x16f   : > { %9275 = vst [vmem:[#allocation204_spill] sm:$0xff] %v6675_v47  ;;  %1753 = vrot.lane.b32.xlu1 %v9276_v13, %s5375_s25  ;;  %v9282_v47 = vld [vmem:[#allocation48_spill] sm:$0xff]  ;;  %v4547_v61 = vcombine.low %v6393_v50, %v446_v62 }
 0x170   : > { %1751 = vrot.lane.b32.xlu0 %v9277_v32, %s5375_s25  ;;  %v9292_v62 = vld [vmem:[#allocation64_spill] sm:$0xff] }
 0x171   : > { %v6681_v53 = vpop.permute.xlu1 %1561 }
 0x172   : > { %9278 = vst [vmem:[#allocation50_spill] sm:$0xff] %v6681_v53  ;;  %v6683_v18 = vpop.permute.xlu0 %1559 }
 0x173   : > { %9279 = vst [vmem:[#allocation44_spill] sm:$0xff] %v6683_v18  ;;  %1757 = vrot.lane.b32.xlu1 %v9280_v51, %s5375_s25  ;;  %v9285_v18 = vld [vmem:[#allocation52_spill] sm:$0xff] }
 0x174   : > { %1755 = vrot.lane.b32.xlu0 %v9282_v47, %s5375_s25  ;;  %v1656_v47 = vshll.u32 %v4547_v61, 16 }
 0x175   : > { %v6692_v9 = vpop.permute.xlu1 %1565 }
 0x176   : > { %9283 = vst [vmem:[#allocation206_spill] sm:$0xff] %v6692_v9  ;;  %v6694_v21 = vpop.permute.xlu0 %1563  ;;  %v9289_v9 = vld [vmem:[#allocation56_spill] sm:$0xff] }
 0x177   : > { %9284 = vst [vmem:[#allocation207_spill] sm:$0xff] %v6694_v21  ;;  %1761 = vrot.lane.b32.xlu1 %v6687_v52, %s5375_s25  ;;  %v1654_v52 = vshrl.u32 %v4547_v61, 16 }
 0x178   : > { %1759 = vrot.lane.b32.xlu0 %v9285_v18, %s5375_s25  ;;  %v1658_v18 = vrot.slane %v1656_v47, 1 }
 0x179   : > { %v6701_v53 = vpop.permute.xlu1 %1569 }
 0x17a   : > { %9286 = vst [vmem:[#allocation208_spill] sm:$0xff] %v6701_v53  ;;  %v6703_v15 = vpop.permute.xlu0 %1567  ;;  %v9293_v53 = vld [vmem:[#allocation59_spill] sm:$0xff] }
 0x17b   : > { %9287 = vst [vmem:[#allocation209_spill] sm:$0xff] %v6703_v15  ;;  %1765 = vrot.lane.b32.xlu1 %v9288_v22, %s5375_s25 }
 0x17c   : > { %1763 = vrot.lane.b32.xlu0 %v9289_v9, %s5375_s25  ;;  %v6723_v9 = vor.u32 %v1658_v18, %v1654_v52 }
 0x17d   : > { %v6709_v21 = vpop.permute.xlu1 %1573 }
 0x17e   : > { %9290 = vst [vmem:[#allocation210_spill] sm:$0xff] %v6709_v21  ;;  %v6711_v50 = vpop.permute.xlu0 %1571  ;;  %9296 = vst [vmem:[#allocation212_spill] sm:$0xff] %v6723_v9  ;;  %v464_v21 = vld [vmem:[%s5431_s22 + $0x23c] sm:$0x1] }
 0x17f   : > { %9291 = vst [vmem:[#allocation211_spill] sm:$0xff] %v6711_v50  ;;  %1769 = vrot.lane.b32.xlu1 %v9292_v62, %s5375_s25  ;;  %v9297_v50 = vld [vmem:[#allocation63_spill] sm:$0xff]  ;;  %v4548_v47 = vcombine.low %v6460_v16, %v464_v21 }
 0x180   : > { %1767 = vrot.lane.b32.xlu0 %v9293_v53, %s5375_s25 }
 0x181   : > { %v6717_v15 = vpop.permute.xlu1 %1577  ;;  %v1663_v18 = vshll.u32 %v4548_v47, 16  ;;  %v1661_v21 = vshrl.u32 %v4548_v47, 16  ;;  %v5273_v47 = vld [vmem:[%s5431_s22 + $0x48] sm:$0xf] }
 0x182   : > { %9294 = vst [vmem:[#allocation64_spill] sm:$0xff] %v6717_v15  ;;  %v6719_v51 = vpop.permute.xlu0 %1575 }
 0x183   : > { %9295 = vst [vmem:[#allocation59_spill] sm:$0xff] %v6719_v51  ;;  %1773 = vrot.lane.b32.xlu1 %v5918_v33, %s5375_s25  ;;  %v9300_v51 = vld [vmem:[#allocation66_spill] sm:$0xff] }
 0x184   : > { %1771 = vrot.lane.b32.xlu0 %v9297_v50, %s5375_s25 }
 0x185   : > { %v6728_v22 = vpop.permute.xlu1 %1581 }
 0x186   : > { %9298 = vst [vmem:[#allocation63_spill] sm:$0xff] %v6728_v22  ;;  %v6730_v61 = vpop.permute.xlu0 %1579  ;;  %v1665_v22 = vrot.slane %v1663_v18, 1  ;;  %v4549_v18 = vcombine.low %v5273_v47, %v5273_v47 }
 0x187   : > { %9299 = vst [vmem:[#allocation213_spill] sm:$0xff] %v6730_v61  ;;  %1777 = vrot.lane.b32.xlu1 %v6723_v9, %s5375_s25 }
 0x188   : > { %1775 = vrot.lane.b32.xlu0 %v9300_v51, %s5375_s25 }
 0x189   : > { %v6737_v15 = vpop.permute.xlu1 %1585 }
 0x18a   : > { %9301 = vst [vmem:[#allocation66_spill] sm:$0xff] %v6737_v15  ;;  %v6739_v52 = vpop.permute.xlu0 %1583 }
 0x18b   : > { %9302 = vst [vmem:[#allocation214_spill] sm:$0xff] %v6739_v52  ;;  %1781 = vrot.lane.b32.xlu1 %v5945_v25, %s5375_s25 }
 0x18c   : > { %1779 = vrot.lane.b32.xlu0 %v5929_v39, %s5375_s25  ;;  %v6759_v39 = vor.u32 %v1665_v22, %v1661_v21 }
 0x18d   : > { %v6745_v61 = vpop.permute.xlu1 %1669 }
 0x18e   : > { %v6747_v16 = vpop.permute.xlu0 %1667  ;;  %9305 = vst [vmem:[#allocation217_spill] sm:$0xff] %v6759_v39 }
 0x18f   : > { %1785 = vrot.lane.b32.xlu1 %v5957_v28, %s5375_s25 }
 0x190   : > { %1783 = vrot.lane.b32.xlu0 %v5941_v14, %s5375_s25 }
 0x191   : > { %v6753_v52 = vpop.permute.xlu1 %1673 }
 0x192   : > { %9303 = vst [vmem:[#allocation215_spill] sm:$0xff] %v6753_v52  ;;  %v6755_v15 = vpop.permute.xlu0 %1671 }
 0x193   : > { %9304 = vst [vmem:[#allocation216_spill] sm:$0xff] %v6755_v15  ;;  %1789 = vrot.lane.b32.xlu1 %v5969_v3, %s5375_s25  ;;  %v9421_v15 = vld [vmem:[#allocation26_spill] sm:$0xff] }
 0x194   : > { %1787 = vrot.lane.b32.xlu0 %v5953_v44, %s5375_s25  ;;  %v9351_v44 = vld [vmem:[#allocation47_spill] sm:$0xff] }
 0x195   : > { %v6763_v25 = vpop.permute.xlu1 %1677 }
 0x196   : > { %9306 = vst [vmem:[#allocation218_spill] sm:$0xff] %v6763_v25  ;;  %v6765_v28 = vpop.permute.xlu0 %1675 }
 0x197   : > { %9307 = vst [vmem:[#allocation219_spill] sm:$0xff] %v6765_v28  ;;  %1793 = vrot.lane.b32.xlu1 %v6759_v39, %s5375_s25  ;;  %v9374_v28 = vld [vmem:[#allocation165_spill] sm:$0xff] }
 0x198   : > { %1791 = vrot.lane.b32.xlu0 %v5965_v1, %s5375_s25 }
 0x199   : > { %v6772_v14 = vpop.permute.xlu1 %1681 }
 0x19a   : > { %9308 = vst [vmem:[#allocation220_spill] sm:$0xff] %v6772_v14  ;;  %v6774_v3 = vpop.permute.xlu0 %1679 }
 0x19b   : > { %9309 = vst [vmem:[#allocation221_spill] sm:$0xff] %v6774_v3  ;;  %1828 = vrot.lane.b32.xlu1 %v6023_v26, %s5376_s26 }
 0x19c   : > { %1826 = vrot.lane.b32.xlu0 %v4549_v18, %s5376_s26 }
 0x19d   : > { %v6779_v22 = vpop.permute.xlu1 %1685 }
 0x19e   : > { %9310 = vst [vmem:[#allocation222_spill] sm:$0xff] %v6779_v22  ;;  %v6781_v21 = vpop.permute.xlu0 %1683 }
 0x19f   : > { %9311 = vst [vmem:[#allocation223_spill] sm:$0xff] %v6781_v21  ;;  %1832 = vrot.lane.b32.xlu1 %v6039_v55, %s5376_s26  ;;  %v5274_v21 = vld [vmem:[%s5431_s22 + $0x90] sm:$0xf] }
 0x1a0   : > { %1830 = vrot.lane.b32.xlu0 %v6018_v12, %s5376_s26 }
 0x1a1   : > { %v6787_v47 = vpop.permute.xlu1 %1689 }
 0x1a2   : > { %9312 = vst [vmem:[#allocation224_spill] sm:$0xff] %v6787_v47  ;;  %v6789_v39 = vpop.permute.xlu0 %1687  ;;  %v4550_v47 = vcombine.low %v5274_v21, %v5274_v21 }
 0x1a3   : > { %9313 = vst [vmem:[#allocation225_spill] sm:$0xff] %v6789_v39  ;;  %1836 = vrot.lane.b32.xlu1 %v6055_v6, %s5376_s26 }
 0x1a4   : > { %1834 = vrot.lane.b32.xlu0 %v6033_v37, %s5376_s26 }
 0x1a5   : > { %v6795_v18 = vpop.permute.xlu1 %1693 }
 0x1a6   : > { %9314 = vst [vmem:[#allocation226_spill] sm:$0xff] %v6795_v18  ;;  %v6797_v22 = vpop.permute.xlu0 %1691 }
 0x1a7   : > { %9315 = vst [vmem:[#allocation227_spill] sm:$0xff] %v6797_v22  ;;  %1840 = vrot.lane.b32.xlu1 %v6074_v4, %s5376_s26 }
 0x1a8   : > { %1838 = vrot.lane.b32.xlu0 %v6049_v45, %s5376_s26 }
 0x1a9   : > { %v6804_v1 = vpop.permute.xlu1 %1697 }
 0x1aa   : > { %9316 = vst [vmem:[#allocation228_spill] sm:$0xff] %v6804_v1  ;;  %v6806_v39 = vpop.permute.xlu0 %1695 }
 0x1ab   : > { %9317 = vst [vmem:[#allocation229_spill] sm:$0xff] %v6806_v39  ;;  %1844 = vrot.lane.b32.xlu1 %v6090_v59, %s5376_s26 }
 0x1ac   : > { %1842 = vrot.lane.b32.xlu0 %v4550_v47, %s5376_s26 }
 0x1ad   : > { %v6811_v18 = vpop.permute.xlu1 %1701 }
 0x1ae   : > { %9318 = vst [vmem:[#allocation230_spill] sm:$0xff] %v6811_v18  ;;  %v6813_v22 = vpop.permute.xlu0 %1699 }
 0x1af   : > { %9319 = vst [vmem:[#allocation231_spill] sm:$0xff] %v6813_v22  ;;  %1848 = vrot.lane.b32.xlu1 %v6106_v57, %s5376_s26  ;;  %v5275_v22 = vld [vmem:[%s5431_s22 + $0xd8] sm:$0xf] }
 0x1b0   : > { %1846 = vrot.lane.b32.xlu0 %v6084_v40, %s5376_s26 }
 0x1b1   : > { %v6819_v21 = vpop.permute.xlu1 %1705 }
 0x1b2   : > { %9320 = vst [vmem:[#allocation232_spill] sm:$0xff] %v6819_v21  ;;  %v6821_v1 = vpop.permute.xlu0 %1703  ;;  %v4551_v21 = vcombine.low %v5275_v22, %v5275_v22 }
 0x1b3   : > { %9321 = vst [vmem:[#allocation233_spill] sm:$0xff] %v6821_v1  ;;  %1852 = vrot.lane.b32.xlu1 %v6122_v11, %s5376_s26 }
 0x1b4   : > { %1850 = vrot.lane.b32.xlu0 %v6100_v10, %s5376_s26 }
 0x1b5   : > { %v6827_v47 = vpop.permute.xlu1 %1709 }
 0x1b6   : > { %9322 = vst [vmem:[#allocation234_spill] sm:$0xff] %v6827_v47  ;;  %v6829_v18 = vpop.permute.xlu0 %1707 }
 0x1b7   : > { %9323 = vst [vmem:[#allocation235_spill] sm:$0xff] %v6829_v18  ;;  %1856 = vrot.lane.b32.xlu1 %v6141_v8, %s5376_s26 }
 0x1b8   : > { %1854 = vrot.lane.b32.xlu0 %v6116_v48, %s5376_s26 }
 0x1b9   : > { %v6836_v39 = vpop.permute.xlu1 %1713 }
 0x1ba   : > { %9324 = vst [vmem:[#allocation236_spill] sm:$0xff] %v6836_v39  ;;  %v6838_v1 = vpop.permute.xlu0 %1711 }
 0x1bb   : > { %9325 = vst [vmem:[#allocation237_spill] sm:$0xff] %v6838_v1  ;;  %1860 = vrot.lane.b32.xlu1 %v6157_v19, %s5376_s26  ;;  %v9406_v19 = vld [vmem:[#allocation18_spill] sm:$0xff] }
 0x1bc   : > { %1858 = vrot.lane.b32.xlu0 %v4551_v21, %s5376_s26 }
 0x1bd   : > { %v6843_v47 = vpop.permute.xlu1 %1717 }
 0x1be   : > { %9326 = vst [vmem:[#allocation238_spill] sm:$0xff] %v6843_v47  ;;  %v6845_v18 = vpop.permute.xlu0 %1715 }
 0x1bf   : > { %9327 = vst [vmem:[#allocation239_spill] sm:$0xff] %v6845_v18  ;;  %1864 = vrot.lane.b32.xlu1 %v6173_v20, %s5376_s26  ;;  %v6868_v18 = vld [vmem:[%s5431_s22 + $0x120] sm:$0xf] }
 0x1c0   : > { %1862 = vrot.lane.b32.xlu0 %v6151_v29, %s5376_s26 }
 0x1c1   : > { %v6851_v22 = vpop.permute.xlu1 %1721 }
 0x1c2   : > { %9328 = vst [vmem:[#allocation240_spill] sm:$0xff] %v6851_v22  ;;  %v6853_v39 = vpop.permute.xlu0 %1719 }
 0x1c3   : > { %9329 = vst [vmem:[#allocation241_spill] sm:$0xff] %v6853_v39  ;;  %1868 = vrot.lane.b32.xlu1 %v6189_v54, %s5376_s26  ;;  %v4552_v39 = vcombine.low %v6868_v18, %v6868_v18  ;;  %v9350_v54 = vld [vmem:[#allocation46_spill] sm:$0xff] }
 0x1c4   : > { %1866 = vrot.lane.b32.xlu0 %v6167_v0, %s5376_s26  ;;  %v7002_v0 = vld [vmem:[%s6990_s30] sm:$0xf] }
 0x1c5   : > { %v6859_v21 = vpop.permute.xlu1 %1725  ;;  %9372 = vst [vmem:[#allocation267_spill] sm:$0xff] %v7002_v0 }
 0x1c6   : > { %9330 = vst [vmem:[#allocation242_spill] sm:$0xff] %v6859_v21  ;;  %v6861_v47 = vpop.permute.xlu0 %1723 }
 0x1c7   : > { %9331 = vst [vmem:[#allocation243_spill] sm:$0xff] %v6861_v47  ;;  %1872 = vrot.lane.b32.xlu1 %v6208_v42, %s5376_s26 }
 0x1c8   : > { %1870 = vrot.lane.b32.xlu0 %v6183_v31, %s5376_s26 }
 0x1c9   : > { %v6872_v22 = vpop.permute.xlu1 %1729 }
 0x1ca   : > { %9332 = vst [vmem:[#allocation244_spill] sm:$0xff] %v6872_v22  ;;  %v6874_v1 = vpop.permute.xlu0 %1727 }
 0x1cb   : > { %9333 = vst [vmem:[#allocation245_spill] sm:$0xff] %v6874_v1  ;;  %1876 = vrot.lane.b32.xlu1 %v6224_v23, %s5376_s26 }
 0x1cc   : > { %1874 = vrot.lane.b32.xlu0 %v4552_v39, %s5376_s26 }
 0x1cd   : > { %v6879_v47 = vpop.permute.xlu1 %1733 }
 0x1ce   : > { %v6881_v21 = vpop.permute.xlu0 %1731 }
 0x1cf   : > { %1880 = vrot.lane.b32.xlu1 %v6240_v30, %s5376_s26  ;;  %v5277_v30 = vld [vmem:[%s5431_s22 + $0x168] sm:$0xf] }
 0x1d0   : > { %1878 = vrot.lane.b32.xlu0 %v6218_v2, %s5376_s26  ;;  %v4553_v2 = vcombine.low %v5277_v30, %v5277_v30 }
 0x1d1   : > { %v6887_v42 = vpop.permute.xlu1 %1737 }
 0x1d2   : > { %9334 = vst [vmem:[#allocation246_spill] sm:$0xff] %v6887_v42  ;;  %v6889_v22 = vpop.permute.xlu0 %1735  ;;  %v9413_v42 = vld [vmem:[#allocation22_spill] sm:$0xff] }
 0x1d3   : > { %9335 = vst [vmem:[#allocation247_spill] sm:$0xff] %v6889_v22  ;;  %1884 = vrot.lane.b32.xlu1 %v6256_v5, %s5376_s26 }
 0x1d4   : > { %1882 = vrot.lane.b32.xlu0 %v6234_v43, %s5376_s26 }
 0x1d5   : > { %v6895_v39 = vpop.permute.xlu1 %1741 }
 0x1d6   : > { %9336 = vst [vmem:[#allocation248_spill] sm:$0xff] %v6895_v39  ;;  %v6897_v1 = vpop.permute.xlu0 %1739  ;;  %v9365_v39 = vld [vmem:[#allocation61_spill] sm:$0xff] }
 0x1d7   : > { %9337 = vst [vmem:[#allocation249_spill] sm:$0xff] %v6897_v1  ;;  %1888 = vrot.lane.b32.xlu1 %v6275_v49, %s5376_s26  ;;  %v9362_v1 = vld [vmem:[#allocation57_spill] sm:$0xff] }
 0x1d8   : > { %1886 = vrot.lane.b32.xlu0 %v6250_v7, %s5376_s26 }
 0x1d9   : > { %v6904_v23 = vpop.permute.xlu1 %1745 }
 0x1da   : > { %9338 = vst [vmem:[#allocation250_spill] sm:$0xff] %v6904_v23  ;;  %v6906_v31 = vpop.permute.xlu0 %1743  ;;  %v9359_v23 = vld [vmem:[#allocation55_spill] sm:$0xff] }
 0x1db   : > { %9339 = vst [vmem:[#allocation251_spill] sm:$0xff] %v6906_v31  ;;  %1892 = vrot.lane.b32.xlu1 %v6291_v24, %s5376_s26  ;;  %v9358_v31 = vld [vmem:[#allocation54_spill] sm:$0xff] }
 0x1dc   : > { %1890 = vrot.lane.b32.xlu0 %v4553_v2, %s5376_s26 }
 0x1dd   : > { %v6911_v5 = vpop.permute.xlu1 %1749 }
 0x1de   : > { %9340 = vst [vmem:[#allocation252_spill] sm:$0xff] %v6911_v5  ;;  %v6913_v43 = vpop.permute.xlu0 %1747 }
 0x1df   : > { %9341 = vst [vmem:[#allocation253_spill] sm:$0xff] %v6913_v43  ;;  %1896 = vrot.lane.b32.xlu1 %v6307_v60, %s5376_s26  ;;  %v5278_v43 = vld [vmem:[%s5431_s22 + $0x1b0] sm:$0xf] }
 0x1e0   : > { %1894 = vrot.lane.b32.xlu0 %v6285_v63, %s5376_s26 }
 0x1e1   : > { %v6919_v30 = vpop.permute.xlu1 %1753 }
 0x1e2   : > { %9342 = vst [vmem:[#allocation254_spill] sm:$0xff] %v6919_v30  ;;  %v6921_v49 = vpop.permute.xlu0 %1751  ;;  %v4554_v30 = vcombine.low %v5278_v43, %v5278_v43 }
 0x1e3   : > { %9343 = vst [vmem:[#allocation255_spill] sm:$0xff] %v6921_v49  ;;  %1900 = vrot.lane.b32.xlu1 %v6323_v36, %s5376_s26 }
 0x1e4   : > { %1898 = vrot.lane.b32.xlu0 %v6301_v46, %s5376_s26 }
 0x1e5   : > { %v6927_v2 = vpop.permute.xlu1 %1757 }
 0x1e6   : > { %9344 = vst [vmem:[#allocation256_spill] sm:$0xff] %v6927_v2  ;;  %v6929_v7 = vpop.permute.xlu0 %1755 }
 0x1e7   : > { %9345 = vst [vmem:[#allocation257_spill] sm:$0xff] %v6929_v7  ;;  %1904 = vrot.lane.b32.xlu1 %v6342_v38, %s5376_s26 }
 0x1e8   : > { %1902 = vrot.lane.b32.xlu0 %v6317_v56, %s5376_s26 }
 0x1e9   : > { %v6936_v5 = vpop.permute.xlu1 %1761 }
 0x1ea   : > { %9346 = vst [vmem:[#allocation258_spill] sm:$0xff] %v6936_v5  ;;  %v6938_v49 = vpop.permute.xlu0 %1759 }
 0x1eb   : > { %9347 = vst [vmem:[#allocation259_spill] sm:$0xff] %v6938_v49  ;;  %1908 = vrot.lane.b32.xlu1 %v6358_v34, %s5376_s26  ;;  %v9354_v49 = vld [vmem:[#allocation49_spill] sm:$0xff] }
 0x1ec   : > { %1906 = vrot.lane.b32.xlu0 %v4554_v30, %s5376_s26  ;;  %v9355_v30 = vld [vmem:[#allocation51_spill] sm:$0xff] }
 0x1ed   : > { %v6943_v2 = vpop.permute.xlu1 %1765 }
 0x1ee   : > { %9348 = vst [vmem:[#allocation260_spill] sm:$0xff] %v6943_v2  ;;  %v6945_v7 = vpop.permute.xlu0 %1763 }
 0x1ef   : > { %9349 = vst [vmem:[#allocation261_spill] sm:$0xff] %v6945_v7  ;;  %1912 = vrot.lane.b32.xlu1 %v9350_v54, %s5376_s26 }
 0x1f0   : > { %1910 = vrot.lane.b32.xlu0 %v9351_v44, %s5376_s26 }
 0x1f1   : > { %v6951_v43 = vpop.permute.xlu1 %1769 }
 0x1f2   : > { %9352 = vst [vmem:[#allocation46_spill] sm:$0xff] %v6951_v43  ;;  %v6953_v5 = vpop.permute.xlu0 %1767  ;;  %v5279_v43 = vld [vmem:[%s5431_s22 + $0x1f8] sm:$0xf] }
 0x1f3   : > { %9353 = vst [vmem:[#allocation47_spill] sm:$0xff] %v6953_v5  ;;  %1916 = vrot.lane.b32.xlu1 %v9354_v49, %s5376_s26  ;;  %v4555_v3 = vcombine.low %v5279_v43, %v5279_v43  ;;  %v9366_v43 = vld [vmem:[#allocation62_spill] sm:$0xff] }
 0x1f4   : > { %1914 = vrot.lane.b32.xlu0 %v9355_v30, %s5376_s26 }
 0x1f5   : > { %v6959_v2 = vpop.permute.xlu1 %1773 }
 0x1f6   : > { %9356 = vst [vmem:[#allocation49_spill] sm:$0xff] %v6959_v2  ;;  %v6961_v7 = vpop.permute.xlu0 %1771 }
 0x1f7   : > { %9357 = vst [vmem:[#allocation51_spill] sm:$0xff] %v6961_v7  ;;  %1920 = vrot.lane.b32.xlu1 %v9358_v31, %s5376_s26 }
 0x1f8   : > { %1918 = vrot.lane.b32.xlu0 %v9359_v23, %s5376_s26 }
 0x1f9   : > { %v6968_v14 = vpop.permute.xlu1 %1777 }
 0x1fa   : > { %9360 = vst [vmem:[#allocation54_spill] sm:$0xff] %v6968_v14  ;;  %v6970_v5 = vpop.permute.xlu0 %1775 }
 0x1fb   : > { %9361 = vst [vmem:[#allocation55_spill] sm:$0xff] %v6970_v5  ;;  %1924 = vrot.lane.b32.xlu1 %v9362_v1, %s5376_s26  ;;  %v467_v5 = vld [vmem:[%s6990_s30 + $0x8] sm:$0xf] }
 0x1fc   : > { %1922 = vrot.lane.b32.xlu0 %v4555_v3, %s5376_s26  ;;  %v7008_v25 = vcombine.low %v467_v5, %v467_v5 }
 0x1fd   : > { %v6975_v2 = vpop.permute.xlu1 %1781 }
 0x1fe   : > { %9363 = vst [vmem:[#allocation262_spill] sm:$0xff] %v6975_v2  ;;  %v6977_v7 = vpop.permute.xlu0 %1779  ;;  %v9370_v2 = vld [vmem:[#allocation158_spill] sm:$0xff]  ;;  %9375 = vst [vmem:[#allocation269_spill] sm:$0xff] %v7008_v25 }
 0x1ff   : > { %9364 = vst [vmem:[#allocation263_spill] sm:$0xff] %v6977_v7  ;;  %1928 = vrot.lane.b32.xlu1 %v9365_v39, %s5376_s26  ;;  %v9369_v7 = vld [vmem:[#allocation65_spill] sm:$0xff] }
 0x200   : > { %1926 = vrot.lane.b32.xlu0 %v9366_v43, %s5376_s26 }
 0x201   : > { %v6985_v14 = vpop.permute.xlu1 %1785 }
 0x202   : > { %9367 = vst [vmem:[#allocation264_spill] sm:$0xff] %v6985_v14  ;;  %v6992_v3 = vpop.permute.xlu0 %1783 }
 0x203   : > { %9368 = vst [vmem:[#allocation265_spill] sm:$0xff] %v6992_v3  ;;  %1932 = vrot.lane.b32.xlu1 %v9369_v7, %s5376_s26  ;;  %v9376_v3 = vld [vmem:[#allocation161_spill] sm:$0xff]  ;;  %v4556_v7 = vcombine.low %v7002_v0, %v7002_v0  ;;  %v475_v0 = vld [vmem:[%s6990_s30 + $0x28] sm:$0xf] }
 0x204   : > { %1930 = vrot.lane.b32.xlu0 %v9370_v2, %s5376_s26  ;;  %v471_v2 = vld [vmem:[%s6990_s30 + $0x18] sm:$0xf] }
 0x205   : > { %v6999_v14 = vpop.permute.xlu1 %1789  ;;  %v7024_v5 = vcombine.low %v471_v2, %v471_v2 }
 0x206   : > { %9371 = vst [vmem:[#allocation266_spill] sm:$0xff] %v6999_v14  ;;  %v7004_v39 = vpop.permute.xlu0 %1787  ;;  %v7018_v14 = vld [vmem:[%s6990_s30 + $0x10] sm:$0xf] }
 0x207   : > { %9373 = vst [vmem:[#allocation268_spill] sm:$0xff] %v7004_v39  ;;  %1936 = vrot.lane.b32.xlu1 %v9374_v28, %s5376_s26  ;;  %9378 = vst [vmem:[#allocation271_spill] sm:$0xff] %v7018_v14  ;;  %v7029_v39 = vcombine.low %v7018_v14, %v7018_v14  ;;  %v477_v14 = vld [vmem:[%s6990_s30 + $0x30] sm:$0xf] }
 0x208   : > { %1934 = vrot.lane.b32.xlu0 %v9376_v3, %s5376_s26  ;;  %9380 = vst [vmem:[#allocation273_spill] sm:$0xff] %v7024_v5 }
 0x209   : > { %v7015_v43 = vpop.permute.xlu1 %1793  ;;  %9381 = vst [vmem:[#allocation274_spill] sm:$0xff] %v7029_v39 }
 0x20a   : > { %9377 = vst [vmem:[#allocation270_spill] sm:$0xff] %v7015_v43  ;;  %v7020_v20 = vpop.permute.xlu0 %1791  ;;  %v473_v43 = vld [vmem:[%s6990_s30 + $0x20] sm:$0xf] }
 0x20b   : > { %9379 = vst [vmem:[#allocation272_spill] sm:$0xff] %v7020_v20  ;;  %1940 = vrot.lane.b32.xlu1 %v7008_v25, %s5376_s26  ;;  %v7039_v20 = vcombine.low %v475_v0, %v475_v0  ;;  %v7043_v2 = vcombine.low %v473_v43, %v473_v43  ;;  %v7057_v0 = vcombine.low %v477_v14, %v477_v14  ;;  %v9392_v14 = vld [vmem:[#allocation10_spill] sm:$0xff] }
 0x20c   : > { %1938 = vrot.lane.b32.xlu0 %v4556_v7, %s5376_s26  ;;  %v479_v7 = vld [vmem:[%s6990_s30 + $0x38] sm:$0xf] }
 0x20d   : > { %v7032_v28 = vpop.permute.xlu1 %1828  ;;  %9382 = vst [vmem:[#allocation275_spill] sm:$0xff] %v7039_v20  ;;  %9383 = vst [vmem:[#allocation276_spill] sm:$0xff] %v7043_v2  ;;  %v7053_v1 = vcombine.low %v479_v7, %v479_v7 }
 0x20e   : > { %v7035_v3 = vpop.permute.xlu0 %1826  ;;  %9387 = vst [vmem:[#allocation280_spill] sm:$0xff] %v7057_v0 }
 0x20f   : > { %1944 = vrot.lane.b32.xlu1 %v7024_v5, %s5376_s26  ;;  %9386 = vst [vmem:[#allocation279_spill] sm:$0xff] %v7053_v1 }
 0x210   : > { %1942 = vrot.lane.b32.xlu0 %v7029_v39, %s5376_s26 }
 0x211   : > { %v7046_v25 = vpop.permute.xlu1 %1832 }
 0x212   : > { %9384 = vst [vmem:[#allocation277_spill] sm:$0xff] %v7046_v25  ;;  %v7049_v29 = vpop.permute.xlu0 %1830 }
 0x213   : > { %9385 = vst [vmem:[#allocation278_spill] sm:$0xff] %v7049_v29  ;;  %1948 = vrot.lane.b32.xlu1 %v7039_v20, %s5376_s26  ;;  %v9417_v29 = vld [vmem:[#allocation24_spill] sm:$0xff] }
 0x214   : > { %1946 = vrot.lane.b32.xlu0 %v7043_v2, %s5376_s26 }
 0x215   : > { %v7059_v5 = vpop.permute.xlu1 %1836 }
 0x216   : > { %9388 = vst [vmem:[#allocation281_spill] sm:$0xff] %v7059_v5  ;;  %v7061_v43 = vpop.permute.xlu0 %1834 }
 0x217   : > { %9389 = vst [vmem:[#allocation282_spill] sm:$0xff] %v7061_v43  ;;  %1952 = vrot.lane.b32.xlu1 %v7053_v1, %s5376_s26  ;;  %v9402_v43 = vld [vmem:[#allocation16_spill] sm:$0xff] }
 0x218   : > { %1950 = vrot.lane.b32.xlu0 %v7057_v0, %s5376_s26 }
 0x219   : > { %v7067_v39 = vpop.permute.xlu1 %1840 }
 0x21a   : > { %9390 = vst [vmem:[#allocation283_spill] sm:$0xff] %v7067_v39  ;;  %v7069_v20 = vpop.permute.xlu0 %1838  ;;  %v9398_v39 = vld [vmem:[#allocation14_spill] sm:$0xff] }
 0x21b   : > { %9391 = vst [vmem:[#allocation284_spill] sm:$0xff] %v7069_v20  ;;  %2036 = vrot.lane.b32.xlu1 %v9209_v41, %s5377_s5  ;;  %v9397_v20 = vld [vmem:[#allocation13_spill] sm:$0xff] }
 0x21c   : > { %2034 = vrot.lane.b32.xlu0 %v9392_v14, %s5377_s5 }
 0x21d   : > { %v7075_v7 = vpop.permute.xlu1 %1844 }
 0x21e   : > { %9393 = vst [vmem:[#allocation10_spill] sm:$0xff] %v7075_v7  ;;  %v7077_v2 = vpop.permute.xlu0 %1842 }
 0x21f   : > { %9394 = vst [vmem:[#allocation285_spill] sm:$0xff] %v7077_v2  ;;  %2040 = vrot.lane.b32.xlu1 %v9213_v35, %s5377_s5  ;;  %v9401_v2 = vld [vmem:[#allocation15_spill] sm:$0xff] }
 0x220   : > { %2038 = vrot.lane.b32.xlu0 %v9208_v58, %s5377_s5 }
 0x221   : > { %v7083_v1 = vpop.permute.xlu1 %1848 }
 0x222   : > { %9395 = vst [vmem:[#allocation286_spill] sm:$0xff] %v7083_v1  ;;  %v7085_v0 = vpop.permute.xlu0 %1846 }
 0x223   : > { %9396 = vst [vmem:[#allocation287_spill] sm:$0xff] %v7085_v0  ;;  %2044 = vrot.lane.b32.xlu1 %v9397_v20, %s5377_s5  ;;  %v9405_v0 = vld [vmem:[#allocation17_spill] sm:$0xff] }
 0x224   : > { %2042 = vrot.lane.b32.xlu0 %v9398_v39, %s5377_s5 }
 0x225   : > { %v7091_v14 = vpop.permute.xlu1 %1852 }
 0x226   : > { %9399 = vst [vmem:[#allocation13_spill] sm:$0xff] %v7091_v14  ;;  %v7093_v7 = vpop.permute.xlu0 %1850 }
 0x227   : > { %9400 = vst [vmem:[#allocation14_spill] sm:$0xff] %v7093_v7  ;;  %2048 = vrot.lane.b32.xlu1 %v9401_v2, %s5377_s5  ;;  %v9409_v7 = vld [vmem:[#allocation20_spill] sm:$0xff] }
 0x228   : > { %2046 = vrot.lane.b32.xlu0 %v9402_v43, %s5377_s5 }
 0x229   : > { %v7099_v5 = vpop.permute.xlu1 %1856 }
 0x22a   : > { %9403 = vst [vmem:[#allocation15_spill] sm:$0xff] %v7099_v5  ;;  %v7101_v1 = vpop.permute.xlu0 %1854 }
 0x22b   : > { %9404 = vst [vmem:[#allocation16_spill] sm:$0xff] %v7101_v1  ;;  %2052 = vrot.lane.b32.xlu1 %v9405_v0, %s5377_s5  ;;  %v9412_v1 = vld [vmem:[#allocation21_spill] sm:$0xff] }
 0x22c   : > { %2050 = vrot.lane.b32.xlu0 %v9406_v19, %s5377_s5 }
 0x22d   : > { %v7107_v9 = vpop.permute.xlu1 %1860 }
 0x22e   : > { %9407 = vst [vmem:[#allocation17_spill] sm:$0xff] %v7107_v9  ;;  %v7109_v14 = vpop.permute.xlu0 %1858 }
 0x22f   : > { %9408 = vst [vmem:[#allocation18_spill] sm:$0xff] %v7109_v14  ;;  %2056 = vrot.lane.b32.xlu1 %v9229_v17, %s5377_s5  ;;  %v9416_v14 = vld [vmem:[#allocation23_spill] sm:$0xff] }
 0x230   : > { %2054 = vrot.lane.b32.xlu0 %v9409_v7, %s5377_s5 }
 0x231   : > { %v7115_v22 = vpop.permute.xlu1 %1864 }
 0x232   : > { %9410 = vst [vmem:[#allocation20_spill] sm:$0xff] %v7115_v22  ;;  %v7117_v5 = vpop.permute.xlu0 %1862 }
 0x233   : > { %9411 = vst [vmem:[#allocation288_spill] sm:$0xff] %v7117_v5  ;;  %2060 = vrot.lane.b32.xlu1 %v9412_v1, %s5377_s5  ;;  %v9420_v5 = vld [vmem:[#allocation25_spill] sm:$0xff] }
 0x234   : > { %2058 = vrot.lane.b32.xlu0 %v9413_v42, %s5377_s5 }
 0x235   : > { %v7123_v19 = vpop.permute.xlu1 %1868 }
 0x236   : > { %9414 = vst [vmem:[#allocation21_spill] sm:$0xff] %v7123_v19  ;;  %v7125_v9 = vpop.permute.xlu0 %1866 }
 0x237   : > { %9415 = vst [vmem:[#allocation22_spill] sm:$0xff] %v7125_v9  ;;  %2064 = vrot.lane.b32.xlu1 %v9416_v14, %s5377_s5  ;;  %v9424_v9 = vld [vmem:[#allocation27_spill] sm:$0xff]  ;;  %v9425_v14 = vld [vmem:[#allocation28_spill] sm:$0xff] }
 0x238   : > { %2062 = vrot.lane.b32.xlu0 %v9417_v29, %s5377_s5 }
 0x239   : > { %v7131_v25 = vpop.permute.xlu1 %1872 }
 0x23a   : > { %9418 = vst [vmem:[#allocation289_spill] sm:$0xff] %v7131_v25  ;;  %v7133_v22 = vpop.permute.xlu0 %1870 }
 0x23b   : > { %9419 = vst [vmem:[#allocation290_spill] sm:$0xff] %v7133_v22  ;;  %2068 = vrot.lane.b32.xlu1 %v9420_v5, %s5377_s5  ;;  %v9428_v22 = vld [vmem:[#allocation29_spill] sm:$0xff]  ;;  %v9429_v5 = vld [vmem:[#allocation30_spill] sm:$0xff] }
 0x23c   : > { %2066 = vrot.lane.b32.xlu0 %v9421_v15, %s5377_s5 }
 0x23d   : > { %v7139_v52 = vpop.permute.xlu1 %1876 }
 0x23e   : > { %9422 = vst [vmem:[#allocation26_spill] sm:$0xff] %v7139_v52  ;;  %v7141_v19 = vpop.permute.xlu0 %1874 }
 0x23f   : > { %9423 = vst [vmem:[#allocation291_spill] sm:$0xff] %v7141_v19  ;;  %2072 = vrot.lane.b32.xlu1 %v9424_v9, %s5377_s5  ;;  %v9432_v19 = vld [vmem:[#allocation31_spill] sm:$0xff]  ;;  %v9433_v9 = vld [vmem:[#allocation32_spill] sm:$0xff] }
 0x240   : > { %2070 = vrot.lane.b32.xlu0 %v9425_v14, %s5377_s5 }
 0x241   : > { %v7147_v29 = vpop.permute.xlu1 %1880 }
 0x242   : > { %9426 = vst [vmem:[#allocation292_spill] sm:$0xff] %v7147_v29  ;;  %v7149_v25 = vpop.permute.xlu0 %1878 }
 0x243   : > { %9427 = vst [vmem:[#allocation293_spill] sm:$0xff] %v7149_v25  ;;  %2076 = vrot.lane.b32.xlu1 %v9428_v22, %s5377_s5  ;;  %v9436_v25 = vld [vmem:[#allocation33_spill] sm:$0xff]  ;;  %v9437_v22 = vld [vmem:[#allocation34_spill] sm:$0xff] }
 0x244   : > { %2074 = vrot.lane.b32.xlu0 %v9429_v5, %s5377_s5 }
 0x245   : > { %v7155_v15 = vpop.permute.xlu1 %1884 }
 0x246   : > { %9430 = vst [vmem:[#allocation294_spill] sm:$0xff] %v7155_v15  ;;  %v7157_v52 = vpop.permute.xlu0 %1882 }
 0x247   : > { %9431 = vst [vmem:[#allocation295_spill] sm:$0xff] %v7157_v52  ;;  %2080 = vrot.lane.b32.xlu1 %v9432_v19, %s5377_s5  ;;  %v9439_v52 = vld [vmem:[#allocation36_spill] sm:$0xff] }
 0x248   : > { %2078 = vrot.lane.b32.xlu0 %v9433_v9, %s5377_s5 }
 0x249   : > { %v7163_v14 = vpop.permute.xlu1 %1888 }
 0x24a   : > { %9434 = vst [vmem:[#allocation296_spill] sm:$0xff] %v7163_v14  ;;  %v7165_v29 = vpop.permute.xlu0 %1886 }
 0x24b   : > { %9435 = vst [vmem:[#allocation297_spill] sm:$0xff] %v7165_v29  ;;  %2084 = vrot.lane.b32.xlu1 %v9436_v25, %s5377_s5  ;;  %v9442_v29 = vld [vmem:[#allocation37_spill] sm:$0xff]  ;;  %v9443_v25 = vld [vmem:[#allocation38_spill] sm:$0xff] }
 0x24c   : > { %2082 = vrot.lane.b32.xlu0 %v9437_v22, %s5377_s5 }
 0x24d   : > { %v7171_v5 = vpop.permute.xlu1 %1892 }
 0x24e   : > { %v7173_v15 = vpop.permute.xlu0 %1890 }
 0x24f   : > { %9438 = vst [vmem:[#allocation34_spill] sm:$0xff] %v7173_v15  ;;  %2088 = vrot.lane.b32.xlu1 %v9261_v27, %s5377_s5  ;;  %v9445_v15 = vld [vmem:[#allocation42_spill] sm:$0xff]  ;;  %v9446_v27 = vld [vmem:[#allocation40_spill] sm:$0xff] }
 0x250   : > { %2086 = vrot.lane.b32.xlu0 %v9439_v52, %s5377_s5 }
 0x251   : > { %v7179_v19 = vpop.permute.xlu1 %1896 }
 0x252   : > { %9440 = vst [vmem:[#allocation298_spill] sm:$0xff] %v7179_v19  ;;  %v7181_v14 = vpop.permute.xlu0 %1894 }
 0x253   : > { %9441 = vst [vmem:[#allocation299_spill] sm:$0xff] %v7181_v14  ;;  %2092 = vrot.lane.b32.xlu1 %v9442_v29, %s5377_s5  ;;  %v9447_v14 = vld [vmem:[#allocation45_spill] sm:$0xff] }
 0x254   : > { %2090 = vrot.lane.b32.xlu0 %v9443_v25, %s5377_s5  ;;  %v9448_v29 = vld [vmem:[#allocation41_spill] sm:$0xff] }
 0x255   : > { %v7187_v22 = vpop.permute.xlu1 %1900 }
 0x256   : > { %9444 = vst [vmem:[#allocation300_spill] sm:$0xff] %v7187_v22  ;;  %v7189_v9 = vpop.permute.xlu0 %1898 }
 0x257   : > { %2098 = vrot.lane.b32.xlu1 %v9445_v15, %s5377_s5 }
 0x258   : > { %2094 = vrot.lane.b32.xlu0 %v9446_v27, %s5377_s5 }
 0x259   : > { %v7195_v52 = vpop.permute.xlu1 %1904 }
 0x25a   : > { %v7197_v19 = vpop.permute.xlu0 %1902 }
 0x25b   : > { %2102 = vrot.lane.b32.xlu1 %v9447_v14, %s5377_s5 }
 0x25c   : > { %2100 = vrot.lane.b32.xlu0 %v9448_v29, %s5377_s5 }
 0x25d   : > { %v7203_v25 = vpop.permute.xlu1 %1908 }
 0x25e   : > { %9449 = vst [vmem:[#allocation42_spill] sm:$0xff] %v7203_v25  ;;  %v7205_v22 = vpop.permute.xlu0 %1906 }
 0x25f   : > { %9450 = vst [vmem:[#allocation45_spill] sm:$0xff] %v7205_v22  ;;  %2165 = vrot.lane.b32.xlu1 %v6023_v26, %s5378_s6  ;;  %v5264_v26 = vld [vmem:[%s8815_s2 + $0x8] sm:$0xff]  }
 0x260   : > { %2104 = vrot.lane.b32.xlu0 %v9277_v32, %s5377_s5  ;;  %4999 = vmatprep.subr.bf16.mxu0 %v5264_v26 }
 0x261   : > { %v7211_v15 = vpop.permute.xlu1 %1912  ;;  %5067 = vmatprep.subr.bf16.mxu1 %v5264_v26  ;;  %5000 = vmatpush3.bf16.msra.mxu0 %v5264_v26 }
 0x262   : > { %v7213_v27 = vpop.permute.xlu0 %1910  ;;  %5069 = vmatpush3.bf16.msra.mxu1 %v5264_v26 }
 0x263   : > { %9451 = vst [vmem:[#allocation41_spill] sm:$0xff] %v7213_v27  ;;  %2229 = vrot.lane.b32.xlu1 %v6291_v24, %s5378_s6 }
 0x264   : > { %2167 = vrot.lane.b32.xlu0 %v6018_v12, %s5378_s6  ;;  %v5265_v12 = vld [vmem:[%s8815_s2] sm:$0xff]  }
 0x265   : > { %v7219_v25 = vpop.permute.xlu1 %1916  ;;  %5001 = vmatprep.subr.bf16.mxu0 %v5265_v12  ;;  %5068 = vmatprep.subr.bf16.mxu1 %v5265_v12 }
 0x266   : > { %v7221_v22 = vpop.permute.xlu0 %1914  ;;  %5002 = vmatpush3.bf16.msra.mxu0 %v5265_v12  ;;  %5070 = vmatpush3.bf16.msra.mxu1 %v5265_v12  ;;  %v9464_v12 = vld [vmem:[#allocation53_spill] sm:$0xff] }
 0x267   : > { %2169 = vrot.lane.b32.xlu1 %v6039_v55, %s5378_s6 }
 0x268   : > { %2231 = vrot.lane.b32.xlu0 %v6285_v63, %s5378_s6 }
 0x269   : > { %v7230_v27 = vpop.permute.xlu1 %1920 }
 0x26a   : > { %v7232_v24 = vpop.permute.xlu0 %1918 }
 0x26b   : > { %2233 = vrot.lane.b32.xlu1 %v6307_v60, %s5378_s6 }
 0x26c   : > { %2171 = vrot.lane.b32.xlu0 %v6033_v37, %s5378_s6 }
 0x26d   : > { %v7241_v55 = vpop.permute.xlu1 %1924 }
 0x26e   : > { %9452 = vst [vmem:[#allocation301_spill] sm:$0xff] %v7241_v55  ;;  %v7243_v63 = vpop.permute.xlu0 %1922 }
 0x26f   : > { %9453 = vst [vmem:[#allocation302_spill] sm:$0xff] %v7243_v63  ;;  %2303 = vrot.lane.b32.xlu1 %v9209_v41, %s5379_s11 }
 0x270   : > { %2235 = vrot.lane.b32.xlu0 %v6301_v46, %s5378_s6 }
 0x271   : > { %v7249_v37 = vpop.permute.xlu1 %1928 }
 0x272   : > { %9454 = vst [vmem:[#allocation303_spill] sm:$0xff] %v7249_v37  ;;  %v7251_v60 = vpop.permute.xlu0 %1926 }
 0x273   : > { %9455 = vst [vmem:[#allocation304_spill] sm:$0xff] %v7251_v60  ;;  %2367 = vrot.lane.b32.xlu1 %v9448_v29, %s5379_s11 }
 0x274   : > { %2305 = vrot.lane.b32.xlu0 %v9208_v58, %s5379_s11 }
 0x275   : > { %v7257_v26 = vpop.permute.xlu1 %1932 }
 0x276   : > { %9456 = vst [vmem:[#allocation305_spill] sm:$0xff] %v7257_v26  ;;  %v7259_v63 = vpop.permute.xlu0 %1930  ;;  %v9476_v26 = vld [vmem:[#allocation60_spill] sm:$0xff] }
 0x277   : > { %9457 = vst [vmem:[#allocation306_spill] sm:$0xff] %v7259_v63  ;;  %2307 = vrot.lane.b32.xlu1 %v9213_v35, %s5379_s11 }
 0x278   : > { %2369 = vrot.lane.b32.xlu0 %v9447_v14, %s5379_s11 }
 0x279   : > { %v7265_v46 = vpop.permute.xlu1 %1936 }
 0x27a   : > { %9458 = vst [vmem:[#allocation307_spill] sm:$0xff] %v7265_v46  ;;  %v7267_v41 = vpop.permute.xlu0 %1934 }
 0x27b   : > { %9459 = vst [vmem:[#allocation308_spill] sm:$0xff] %v7267_v41  ;;  %2371 = vrot.lane.b32.xlu1 %v9277_v32, %s5379_s11  ;;  %v9465_v32 = vld [vmem:[#allocation48_spill] sm:$0xff]  ;;  %v9474_v41 = vld [vmem:[#allocation58_spill] sm:$0xff] }
 0x27c   : > { %2309 = vrot.lane.b32.xlu0 %v9398_v39, %s5379_s11 }
 0x27d   : > { %v7273_v29 = vpop.permute.xlu1 %1940 }
 0x27e   : > { %9460 = vst [vmem:[#allocation309_spill] sm:$0xff] %v7273_v29  ;;  %v7275_v58 = vpop.permute.xlu0 %1938 }
 0x27f   : > { %9461 = vst [vmem:[#allocation310_spill] sm:$0xff] %v7275_v58  ;;  %2106 = vrot.lane.b32.xlu1 %v9276_v13, %s5377_s5  ;;  %v9468_v58 = vld [vmem:[#allocation52_spill] sm:$0xff] }
 0x280   : > { %2373 = vrot.lane.b32.xlu0 %v9276_v13, %s5379_s11 }
 0x281   : > { %v7281_v35 = vpop.permute.xlu1 %1944 }
 0x282   : > { %9462 = vst [vmem:[#allocation311_spill] sm:$0xff] %v7281_v35  ;;  %v7283_v14 = vpop.permute.xlu0 %1942 }
 0x283   : > { %9463 = vst [vmem:[#allocation312_spill] sm:$0xff] %v7283_v14  ;;  %2110 = vrot.lane.b32.xlu1 %v9464_v12, %s5377_s5 }
 0x284   : > { %2108 = vrot.lane.b32.xlu0 %v9465_v32, %s5377_s5 }
 0x285   : > { %v7289_v39 = vpop.permute.xlu1 %1948 }
 0x286   : > { %9466 = vst [vmem:[#allocation53_spill] sm:$0xff] %v7289_v39  ;;  %v7291_v29 = vpop.permute.xlu0 %1946 }
 0x287   : > { %9467 = vst [vmem:[#allocation48_spill] sm:$0xff] %v7291_v29  ;;  %2173 = vrot.lane.b32.xlu1 %v6055_v6, %s5378_s6 }
 0x288   : > { %2112 = vrot.lane.b32.xlu0 %v9468_v58, %s5377_s5 }
 0x289   : > { %v7297_v13 = vpop.permute.xlu1 %1952 }
 0x28a   : > { %9469 = vst [vmem:[#allocation52_spill] sm:$0xff] %v7297_v13  ;;  %v7299_v35 = vpop.permute.xlu0 %1950 }
 0x28b   : > { %9470 = vst [vmem:[#allocation313_spill] sm:$0xff] %v7299_v35  ;;  %2237 = vrot.lane.b32.xlu1 %v6323_v36, %s5378_s6  ;;  %v9471_v36 = vld [vmem:[#allocation95_spill] sm:$0xff] }
 0x28c   : > { %2175 = vrot.lane.b32.xlu0 %v6049_v45, %s5378_s6 }
 0x28d   : > { %v7305_v14 = vpop.permute.xlu1 %2036 }
 0x28e   : > { %v7307_v39 = vpop.permute.xlu0 %2034 }
 0x28f   : > { %2177 = vrot.lane.b32.xlu1 %v6074_v4, %s5378_s6  ;;  %v9472_v4 = vld [vmem:[#allocation145_spill] sm:$0xff] }
 0x290   : > { %2239 = vrot.lane.b32.xlu0 %v6317_v56, %s5378_s6 }
 0x291   : > { %v7313_v6 = vpop.permute.xlu1 %2040 }
 0x292   : > { %v7315_v13 = vpop.permute.xlu0 %2038 }
 0x293   : > { %2241 = vrot.lane.b32.xlu1 %v6342_v38, %s5378_s6 }
 0x294   : > { %2179 = vrot.lane.b32.xlu0 %v9471_v36, %s5378_s6 }
 0x295   : > { %v7321_v45 = vpop.permute.xlu1 %2044 }
 0x296   : > { %v7323_v35 = vpop.permute.xlu0 %2042 }
 0x297   : > { %2311 = vrot.lane.b32.xlu1 %v9397_v20, %s5379_s11 }
 0x298   : > { %2243 = vrot.lane.b32.xlu0 %v9472_v4, %s5378_s6 }
 0x299   : > { %v7329_v56 = vpop.permute.xlu1 %2048 }
 0x29a   : > { %v7331_v29 = vpop.permute.xlu0 %2046 }
 0x29b   : > { %2375 = vrot.lane.b32.xlu1 %v9465_v32, %s5379_s11  ;;  %v9473_v32 = vld [vmem:[#allocation172_spill] sm:$0xff] }
 0x29c   : > { %2313 = vrot.lane.b32.xlu0 %v9402_v43, %s5379_s11 }
 0x29d   : > { %v7337_v38 = vpop.permute.xlu1 %2052 }
 0x29e   : > { %v7339_v36 = vpop.permute.xlu0 %2050 }
 0x29f   : > { %2315 = vrot.lane.b32.xlu1 %v9401_v2, %s5379_s11  ;;  %v9475_v2 = vld [vmem:[#allocation205_spill] sm:$0xff] }
 0x2a0   : > { %2377 = vrot.lane.b32.xlu0 %v9464_v12, %s5379_s11 }
 0x2a1   : > { %v7345_v20 = vpop.permute.xlu1 %2056 }
 0x2a2   : > { %v7347_v4 = vpop.permute.xlu0 %2054 }
 0x2a3   : > { %2379 = vrot.lane.b32.xlu1 %v9468_v58, %s5379_s11  ;;  %v9477_v58 = vld [vmem:[#allocation56_spill] sm:$0xff] }
 0x2a4   : > { %2317 = vrot.lane.b32.xlu0 %v9473_v32, %s5379_s11 }
 0x2a5   : > { %v7353_v43 = vpop.permute.xlu1 %2060 }
 0x2a6   : > { %v7355_v46 = vpop.permute.xlu0 %2058 }
 0x2a7   : > { %2114 = vrot.lane.b32.xlu1 %v9474_v41, %s5377_s5 }
 0x2a8   : > { %2381 = vrot.lane.b32.xlu0 %v9475_v2, %s5379_s11 }
 0x2a9   : > { %v7361_v12 = vpop.permute.xlu1 %2064 }
 0x2aa   : > { %v7363_v63 = vpop.permute.xlu0 %2062 }
 0x2ab   : > { %2118 = vrot.lane.b32.xlu1 %v9476_v26, %s5377_s5 }
 0x2ac   : > { %2116 = vrot.lane.b32.xlu0 %v9477_v58, %s5377_s5 }
 0x2ad   : > { %v7369_v32 = vpop.permute.xlu1 %2068 }
 0x2ae   : > { %v7371_v60 = vpop.permute.xlu0 %2066 }
 0x2af   : > { %2181 = vrot.lane.b32.xlu1 %v6090_v59, %s5378_s6 }
 0x2b0   : > { %2120 = vrot.lane.b32.xlu0 %v9293_v53, %s5377_s5 }
 0x2b1   : > { %v7377_v41 = vpop.permute.xlu1 %2072 }
 0x2b2   : > { %9478 = vst [vmem:[#allocation95_spill] sm:$0xff] %v7377_v41  ;;  %v7379_v2 = vpop.permute.xlu0 %2070 }
 0x2b3   : > { %2245 = vrot.lane.b32.xlu1 %v6358_v34, %s5378_s6 }
 0x2b4   : > { %2183 = vrot.lane.b32.xlu0 %v6084_v40, %s5378_s6 }
 0x2b5   : > { %v7385_v37 = vpop.permute.xlu1 %2076 }
 0x2b6   : > { %9479 = vst [vmem:[#allocation145_spill] sm:$0xff] %v7385_v37  ;;  %v7387_v55 = vpop.permute.xlu0 %2074 }
 0x2b7   : > { %9480 = vst [vmem:[#allocation172_spill] sm:$0xff] %v7387_v55  ;;  %2185 = vrot.lane.b32.xlu1 %v6106_v57, %s5378_s6  ;;  %v9493_v55 = vld [vmem:[#allocation160_spill] sm:$0xff] }
 0x2b8   : > { %2247 = vrot.lane.b32.xlu0 %v9351_v44, %s5378_s6 }
 0x2b9   : > { %v7393_v59 = vpop.permute.xlu1 %2080 }
 0x2ba   : > { %9481 = vst [vmem:[#allocation58_spill] sm:$0xff] %v7393_v59  ;;  %v7395_v41 = vpop.permute.xlu0 %2078 }
 0x2bb   : > { %9482 = vst [vmem:[#allocation205_spill] sm:$0xff] %v7395_v41  ;;  %2249 = vrot.lane.b32.xlu1 %v9350_v54, %s5378_s6  ;;  %v9492_v41 = vld [vmem:[#allocation159_spill] sm:$0xff] }
 0x2bc   : > { %2187 = vrot.lane.b32.xlu0 %v6100_v10, %s5378_s6 }
 0x2bd   : > { %v7401_v40 = vpop.permute.xlu1 %2084 }
 0x2be   : > { %9483 = vst [vmem:[#allocation60_spill] sm:$0xff] %v7401_v40  ;;  %v7403_v34 = vpop.permute.xlu0 %2082 }
 0x2bf   : > { %9484 = vst [vmem:[#allocation56_spill] sm:$0xff] %v7403_v34  ;;  %2319 = vrot.lane.b32.xlu1 %v9405_v0, %s5379_s11 }
 0x2c0   : > { %2251 = vrot.lane.b32.xlu0 %v9355_v30, %s5378_s6 }
 0x2c1   : > { %v7409_v44 = vpop.permute.xlu1 %2088 }
 0x2c2   : > { %9485 = vst [vmem:[#allocation314_spill] sm:$0xff] %v7409_v44  ;;  %v7411_v57 = vpop.permute.xlu0 %2086  ;;  %v5281_v44 = vld [vmem:[%s5431_s22 + $0x8] sm:$0xf] }
 0x2c3   : > { %9486 = vst [vmem:[#allocation315_spill] sm:$0xff] %v7411_v57  ;;  %2383 = vrot.lane.b32.xlu1 %v9477_v58, %s5379_s11  ;;  %v9490_v57 = vld [vmem:[#allocation72_spill] sm:$0xff] }
 0x2c4   : > { %2321 = vrot.lane.b32.xlu0 %v9409_v7, %s5379_s11 }
 0x2c5   : > { %v7417_v10 = vpop.permute.xlu1 %2092 }
 0x2c6   : > { %9487 = vst [vmem:[#allocation316_spill] sm:$0xff] %v7417_v10  ;;  %v7419_v54 = vpop.permute.xlu0 %2090 }
 0x2c7   : > { %9488 = vst [vmem:[#allocation317_spill] sm:$0xff] %v7419_v54  ;;  %2323 = vrot.lane.b32.xlu1 %v9229_v17, %s5379_s11 }
 0x2c8   : > { %2385 = vrot.lane.b32.xlu0 %v9476_v26, %s5379_s11 }
 0x2c9   : > { %v7425_v30 = vpop.permute.xlu1 %2098 }
 0x2ca   : > { %v7427_v0 = vpop.permute.xlu0 %2094 }
 0x2cb   : > { %9489 = vst [vmem:[#allocation318_spill] sm:$0xff] %v7427_v0  ;;  %2387 = vrot.lane.b32.xlu1 %v9293_v53, %s5379_s11 }
 0x2cc   : > { %2325 = vrot.lane.b32.xlu0 %v9413_v42, %s5379_s11 }
 0x2cd   : > { %v7433_v7 = vpop.permute.xlu1 %2102 }
 0x2ce   : > { %v7435_v58 = vpop.permute.xlu0 %2100 }
 0x2cf   : > { %2122 = vrot.lane.b32.xlu1 %v9292_v62, %s5377_s5 }
 0x2d0   : > { %2389 = vrot.lane.b32.xlu0 %v9292_v62, %s5379_s11 }
 0x2d1   : > { %v2166_v17 = vpop.permute.xlu1 %2165 }
 0x2d2   : > { %v7441_v26 = vpop.permute.xlu0 %2104 }
 0x2d3   : > { %2126 = vrot.lane.b32.xlu1 %v5918_v33, %s5377_s5 }
 0x2d4   : > { %2124 = vrot.lane.b32.xlu0 %v9297_v50, %s5377_s5 }
 0x2d5   : > { %v7447_v42 = vpop.permute.xlu1 %2229 }
 0x2d6   : > { %v2168_v53 = vpop.permute.xlu0 %2167 }
 0x2d7   : > { %2189 = vrot.lane.b32.xlu1 %v6122_v11, %s5378_s6  ;;  %v5280_v11 = vld [vmem:[%s5431_s22] sm:$0xf] }
 0x2d8   : > { %2128 = vrot.lane.b32.xlu0 %v9300_v51, %s5377_s5 }
 0x2d9   : > { %v7453_v62 = vpop.permute.xlu1 %2169 }
 0x2da   : > { %v2232_v0 = vpop.permute.xlu0 %2231 }
 0x2db   : > { %2253 = vrot.lane.b32.xlu1 %v9354_v49, %s5378_s6  ;;  %v2434_v49 = vsel %vm2431_vm0, %v5280_v11, %v9490_v57  ;;  %v9494_v11 = vld [vmem:[#allocation113_spill] sm:$0xff] }
 0x2dc   : > { %2191 = vrot.lane.b32.xlu0 %v6116_v48, %s5378_s6  ;;  %v9491_v48 = vld [vmem:[#allocation76_spill] sm:$0xff] }
 0x2dd   : > { %v7459_v54 = vpop.permute.xlu1 %2233  ;;  %v2437_v34 = vsel %vm2431_vm0, %v5281_v44, %v9491_v48  ;;  %v5282_v44 = vld [vmem:[%s5431_s22 + $0x128] sm:$0xf] }
 0x2de   : > { %v7461_v10 = vpop.permute.xlu0 %2171  ;;  %v2628_v59 = vsel %vm2624_vm1, %v2437_v34, %v9492_v41  ;;  %v2533_v41 = vsel %vm2431_vm0, %v5282_v44, %v9494_v11 }
 0x2df   : > { %2193 = vrot.lane.b32.xlu1 %v6141_v8, %s5378_s6  ;;  %v2626_v8 = vsel %vm2624_vm1, %v2434_v49, %v9493_v55  ;;  %v9497_v49 = vld [vmem:[#allocation185_spill] sm:$0xff] }
 0x2e0   : > { %2255 = vrot.lane.b32.xlu0 %v9359_v23, %s5378_s6  ;;  %v2757_v23 = vsel %vm2753_vm2, %v2628_v59, %v6745_v61  ;;  %v2755_v57 = vsel %vm2753_vm2, %v2626_v8, %v6747_v16  ;;  %v9495_v61 = vld [vmem:[#allocation104_spill] sm:$0xff]  ;;  %v9496_v59 = vld [vmem:[#allocation114_spill] sm:$0xff] }
 0x2e1   : > { %v2304_v40 = vpop.permute.xlu1 %2303  ;;  %v2886_v55 = vsel %vm2882_vm3, %v2757_v23, %v7032_v28  ;;  %v2884_v34 = vsel %vm2882_vm3, %v2755_v57, %v7035_v3  ;;  %v2530_v16 = vsel %vm2431_vm0, %v6868_v18, %v9496_v59  ;;  %v9498_v3 = vld [vmem:[#allocation186_spill] sm:$0xff]  ;;  %v5284_v59 = vld [vmem:[%s5431_s22 + $0x18] sm:$0xf] }
 0x2e2   : > { %v7477_v37 = vpop.permute.xlu0 %2235  ;;  %v3015_v48 = vsel %vm3011_vm4, %v2886_v55, %v7305_v14  ;;  %v3013_v28 = vsel %vm3011_vm4, %v2884_v34, %v7307_v39  ;;  %v2690_v23 = vsel %vm2624_vm1, %v2530_v16, %v9498_v3  ;;  %v9502_v16 = vld [vmem:[#allocation75_spill] sm:$0xff] }
 0x2e3   : > { %2257 = vrot.lane.b32.xlu1 %v9358_v31, %s5378_s6  ;;  %v2692_v31 = vsel %vm2624_vm1, %v2533_v41, %v9497_v49  ;;  %v3142_v18 = vsel %vm3140_vm5, %v3013_v28, %v2166_v17  ;;  %v3144_v44 = vsel %vm3140_vm5, %v3015_v48, %v2168_v53  ;;  %v2819_v14 = vsel %vm2753_vm2, %v2690_v23, %v6881_v21  ;;  %v9500_v53 = vld [vmem:[#allocation153_spill] sm:$0xff]  ;;  %v9501_v21 = vld [vmem:[#allocation71_spill] sm:$0xff]  ;;  %v9503_v48 = vld [vmem:[#allocation162_spill] sm:$0xff] }
 0x2e4   : > { %2195 = vrot.lane.b32.xlu0 %v9495_v61, %s5378_s6  ;;  %v2821_v57 = vsel %vm2753_vm2, %v2692_v31, %v6879_v47  ;;  %v3271_v41 = vsel %vm3269_vm6, %v3142_v18, %v2304_v40  ;;  %v9499_v47 = vld [vmem:[#allocation34_spill] sm:$0xff]  ;;  %v5283_v61 = vld [vmem:[%s5431_s22 + $0x10] sm:$0xf]  ;;  %v2443_v49 = vsel %vm2431_vm0, %v5284_v59, %v9502_v16  ;;  %v9504_v3 = vld [vmem:[#allocation163_spill] sm:$0xff] }
 0x2e5   : > { %v2368_v8 = vpop.permute.xlu1 %2367  ;;  %v2950_v55 = vsel %vm2882_vm3, %v2821_v57, %v7171_v5  ;;  %v2948_v17 = vsel %vm2882_vm3, %v2819_v14, %v9499_v47  ;;  %v2440_v40 = vsel %vm2431_vm0, %v5283_v61, %v9501_v21  ;;  %v2632_v28 = vsel %vm2624_vm1, %v2443_v49, %v9503_v48  ;;  %v9510_v61 = vld [vmem:[#allocation117_spill] sm:$0xff]  ;;  %v9513_v48 = vld [vmem:[#allocation188_spill] sm:$0xff] }
 0x2e6   : > { %v2306_v11 = vpop.permute.xlu0 %2305  ;;  %v3079_v5 = vsel %vm3011_vm4, %v2950_v55, %v7435_v58  ;;  %v2630_v23 = vsel %vm2624_vm1, %v2440_v40, %v9504_v3  ;;  %v9507_v55 = vld [vmem:[#allocation277_spill] sm:$0xff]  ;;  %v9511_v40 = vld [vmem:[#allocation118_spill] sm:$0xff] }
 0x2e7   : > { %v3273_v39 = vsel %vm3269_vm6, %v3144_v44, %v2306_v11  ;;  %2327 = vrot.lane.b32.xlu1 %v9412_v1, %s5379_s11  ;;  %v3077_v1 = vsel %vm3011_vm4, %v2948_v17, %v7425_v30  ;;  %v3208_v18 = vsel %vm3140_vm5, %v3079_v5, %v2232_v0  ;;  %v9505_v44 = vld [vmem:[#allocation215_spill] sm:$0xff]  ;;  %v9506_v11 = vld [vmem:[#allocation216_spill] sm:$0xff]  ;;  %v9508_v0 = vld [vmem:[#allocation278_spill] sm:$0xff] }
 0x2e8   : > { %2259 = vrot.lane.b32.xlu0 %v9500_v53, %s5378_s6  ;;  %v4575_v34 = vcombine.low %v3271_v41, %v3273_v39  ;;  %v3206_v57 = vsel %vm3140_vm5, %v3077_v1, %v7447_v42  ;;  %v2761_v58 = vsel %vm2753_vm2, %v2632_v28, %v9505_v44  ;;  %v2759_v14 = vsel %vm2753_vm2, %v2630_v23, %v9506_v11  ;;  %v9509_v17 = vld [vmem:[#allocation24_spill] sm:$0xff]  ;;  %v9512_v1 = vld [vmem:[#allocation187_spill] sm:$0xff] }
 0x2e9   : > { %v2308_v31 = vpop.permute.xlu1 %2307  ;;  %v3335_v41 = vsel %vm3269_vm6, %v3206_v57, %v2368_v8  ;;  %v2890_v42 = vsel %vm2882_vm3, %v2761_v58, %v9507_v55  ;;  %v2888_v47 = vsel %vm2882_vm3, %v2759_v14, %v9508_v0  ;;  %v5286_v8 = vld [vmem:[%s5431_s22 + $0x130] sm:$0xf]  ;;  %v9516_v11 = vld [vmem:[#allocation23_spill] sm:$0xff] }
 0x2ea   : > { %5003 = vmatprep.mubr.msk.bf16.mxu0 %vm3581_vm7, %v4575_v34  ;;  %v2370_v30 = vpop.permute.xlu0 %2369  ;;  %v5285_v34 = vld [vmem:[%s5431_s22 + $0x138] sm:$0xf]  ;;  %v2536_v59 = vsel %vm2431_vm0, %v5286_v8, %v9511_v40  ;;  %v3017_v16 = vsel %vm3011_vm4, %v2888_v47, %v7315_v13  ;;  %v9515_v13 = vld [vmem:[#allocation247_spill] sm:$0xff] }
 0x2eb   : > { %v3337_v39 = vsel %vm3269_vm6, %v3208_v18, %v2370_v30  ;;  %2391 = vrot.lane.b32.xlu1 %v9297_v50, %s5379_s11  ;;  %v2539_v21 = vsel %vm2431_vm0, %v5285_v34, %v9510_v61  ;;  %v3019_v50 = vsel %vm3011_vm4, %v2890_v42, %v7313_v6  ;;  %v2694_v28 = vsel %vm2624_vm1, %v2536_v59, %v9513_v48  ;;  %v9514_v6 = vld [vmem:[#allocation246_spill] sm:$0xff]  ;;  %v9521_v61 = vld [vmem:[#allocation212_spill] sm:$0xff]  ;;  %v9523_v40 = vld [vmem:[#allocation67_spill] sm:$0xff] }
 0x2ec   : > { %2329 = vrot.lane.b32.xlu0 %v9509_v17, %s5379_s11  ;;  %v4591_v53 = vcombine.low %v3335_v41, %v3337_v39  ;;  %v2696_v5 = vsel %vm2624_vm1, %v2539_v21, %v9512_v1  ;;  %v3146_v3 = vsel %vm3140_vm5, %v3017_v16, %v7453_v62  ;;  %v3148_v23 = vsel %vm3140_vm5, %v3019_v50, %v7461_v10  ;;  %v9517_v62 = vld [vmem:[#allocation298_spill] sm:$0xff]  ;;  %v9518_v10 = vld [vmem:[#allocation299_spill] sm:$0xff]  ;;  %v9524_v16 = vld [vmem:[#allocation108_spill] sm:$0xff] }
 0x2ed   : > { %v2372_v49 = vpop.permute.xlu1 %2371  ;;  %v2825_v18 = vsel %vm2753_vm2, %v2696_v5, %v9514_v6  ;;  %v2823_v30 = vsel %vm2753_vm2, %v2694_v28, %v9515_v13  ;;  %v3275_v44 = vsel %vm3269_vm6, %v3146_v3, %v2308_v31  ;;  %v9526_v48 = vld [vmem:[#allocation57_spill] sm:$0xff]  ;;  %v9527_v28 = vld [vmem:[#allocation107_spill] sm:$0xff]  ;;  %v9529_v6 = vld [vmem:[#allocation62_spill] sm:$0xff] }
 0x2ee   : > { %5035 = vmatprep.mubr.msk.bf16.mxu1 %vm3581_vm7, %v4591_v53  ;;  %v2310_v57 = vpop.permute.xlu0 %2309  ;;  %v2954_v14 = vsel %vm2882_vm3, %v2825_v18, %v9517_v62  ;;  %v2952_v41 = vsel %vm2882_vm3, %v2823_v30, %v9518_v10  ;;  %v5287_v18 = vld [vmem:[%s5431_s22 + $0x28] sm:$0xf] }
 0x2ef   : > { %v3277_v58 = vsel %vm3269_vm6, %v3148_v23, %v2310_v57  ;;  %2331 = vrot.lane.b32.xlu1 %v9516_v11, %s5379_s11  ;;  %v3081_v55 = vsel %vm3011_vm4, %v2952_v41, %v7433_v7  ;;  %v3083_v31 = vsel %vm3011_vm4, %v2954_v14, %v7441_v26  ;;  %v9519_v26 = vld [vmem:[#allocation180_spill] sm:$0xff]  ;;  %v9530_v13 = vld [vmem:[#allocation79_spill] sm:$0xff]  ;;  %v9532_v14 = vld [vmem:[#allocation166_spill] sm:$0xff] }
 0x2f0   : > { %v4576_v39 = vcombine.low %v3275_v44, %v3277_v58  ;;  %2393 = vrot.lane.b32.xlu0 %v5918_v33, %s5379_s11  ;;  %v3210_v0 = vsel %vm3140_vm5, %v3081_v55, %v7459_v54  ;;  %v3212_v47 = vsel %vm3140_vm5, %v3083_v31, %v7477_v37  ;;  %v9520_v37 = vld [vmem:[#allocation68_spill] sm:$0xff]  ;;  %v2449_v30 = vsel %vm2431_vm0, %v5287_v18, %v9530_v13  ;;  %v5288_v44 = vld [vmem:[%s5431_s22 + $0x20] sm:$0xf]  ;;  %v9533_v41 = vld [vmem:[#allocation167_spill] sm:$0xff] }
 0x2f1   : > { %v7590_v42 = vpop.permute.xlu1 %2106  ;;  %v3339_v53 = vsel %vm3269_vm6, %v3210_v0, %v2372_v49  ;;  %v9525_v49 = vld [vmem:[#allocation69_spill] sm:$0xff]  ;;  %v9528_v57 = vld [vmem:[#allocation112_spill] sm:$0xff]  ;;  %v2636_v10 = vsel %vm2624_vm1, %v2449_v30, %v9532_v14  ;;  %v9534_v31 = vld [vmem:[#allocation218_spill] sm:$0xff] }
 0x2f2   : > { %5004 = vmatmul.mubr.msk.bf16.vlgmr.msra.gmra.mxu0 %vm3581_vm7, %v4576_v39  ;;  %v2374_v17 = vpop.permute.xlu0 %2373  ;;  %v9531_v58 = vld [vmem:[#allocation80_spill] sm:$0xff]  ;;  %v2765_v0 = vsel %vm2753_vm2, %v2636_v10, %v9534_v31  ;;  %v9543_v14 = vld [vmem:[#allocation191_spill] sm:$0xff] }
 0x2f3   : > { %v3341_v33 = vsel %vm3269_vm6, %v3212_v47, %v2374_v17  ;;  %2395 = vrot.lane.b32.xlu1 %v9300_v51, %s5379_s11  ;;  %v9522_v51 = vld [vmem:[#allocation70_spill] sm:$0xff]  ;;  %v2446_v11 = vsel %vm2431_vm0, %v5288_v44, %v9531_v58  ;;  %v9535_v47 = vld [vmem:[#allocation219_spill] sm:$0xff] }
 0x2f4   : > { %v4592_v7 = vcombine.low %v3339_v53, %v3341_v33  ;;  %2333 = vrot.lane.b32.xlu0 %v9519_v26, %s5379_s11  ;;  %v2634_v39 = vsel %vm2624_vm1, %v2446_v11, %v9533_v41  ;;  %v9536_v53 = vld [vmem:[#allocation61_spill] sm:$0xff]  ;;  %v9538_v26 = vld [vmem:[#allocation282_spill] sm:$0xff] }
 0x2f5   : > { %v7603_v34 = vpop.permute.xlu1 %2110  ;;  %v2763_v17 = vsel %vm2753_vm2, %v2634_v39, %v9535_v47  ;;  %v9537_v33 = vld [vmem:[#allocation281_spill] sm:$0xff]  ;;  %v9542_v58 = vld [vmem:[#allocation190_spill] sm:$0xff] }
 0x2f6   : > { %5036 = vmatmul.mubr.msk.bf16.vlgmr.msra.gmra.mxu1 %vm3581_vm7, %v4592_v7  ;;  %v2109_v54 = vpop.permute.xlu0 %2108  ;;  %v2894_v7 = vsel %vm2882_vm3, %v2765_v0, %v9537_v33  ;;  %v9544_v0 = vld [vmem:[#allocation248_spill] sm:$0xff]  ;;  %v9545_v47 = vld [vmem:[#allocation249_spill] sm:$0xff] }
 0x2f7   : > { %2130 = vrot.lane.b32.xlu1 %v9520_v37, %s5377_s5  ;;  %v2892_v37 = vsel %vm2882_vm3, %v2763_v17, %v9538_v26  ;;  %v3023_v13 = vsel %vm3011_vm4, %v2894_v7, %v7321_v45  ;;  %v9546_v33 = vld [vmem:[#allocation25_spill] sm:$0xff]  ;;  %v9547_v7 = vld [vmem:[#allocation300_spill] sm:$0xff] }
 0x2f8   : > { %2397 = vrot.lane.b32.xlu0 %v9521_v61, %s5379_s11  ;;  %v9539_v61 = vld [vmem:[#allocation111_spill] sm:$0xff]  ;;  %v3021_v30 = vsel %vm3011_vm4, %v2892_v37, %v7323_v35  ;;  %v9548_v37 = vld [vmem:[#allocation158_spill] sm:$0xff] }
 0x2f9   : > { %v2174_v21 = vpop.permute.xlu1 %2173 }
 0x2fa   : > { %v7610_v8 = vpop.permute.xlu0 %2112  ;;  %v3150_v41 = vsel %vm3140_vm5, %v3021_v30, %v2174_v21  ;;  %v9551_v30 = vld [vmem:[#allocation168_spill] sm:$0xff] }
 0x2fb   : > { %2134 = vrot.lane.b32.xlu1 %v9522_v51, %s5377_s5 }
 0x2fc   : > { %2132 = vrot.lane.b32.xlu0 %v9523_v40, %s5377_s5 }
 0x2fd   : > { %v2238_v59 = vpop.permute.xlu1 %2237 }
 0x2fe   : > { %v2176_v50 = vpop.permute.xlu0 %2175 }
 0x2ff   : > { %2197 = vrot.lane.b32.xlu1 %v9524_v16, %s5378_s6  ;;  %v5289_v16 = vld [vmem:[%s5431_s22 + $0x148] sm:$0xf]  ;;  %v3152_v39 = vsel %vm3140_vm5, %v3023_v13, %v2176_v50 }
 0x300   : > { %2136 = vrot.lane.b32.xlu0 %v9525_v49, %s5377_s5 }
 0x301   : > { %v7620_v1 = vpop.permute.xlu1 %2177 }
 0x302   : > { %v2240_v5 = vpop.permute.xlu0 %2239 }
 0x303   : > { %2261 = vrot.lane.b32.xlu1 %v9526_v48, %s5378_s6  ;;  %v9540_v48 = vld [vmem:[#allocation121_spill] sm:$0xff] }
 0x304   : > { %2199 = vrot.lane.b32.xlu0 %v9527_v28, %s5378_s6  ;;  %v2545_v28 = vsel %vm2431_vm0, %v5289_v16, %v9540_v48  ;;  %v9549_v16 = vld [vmem:[#allocation81_spill] sm:$0xff] }
 0x305   : > { %v7626_v3 = vpop.permute.xlu1 %2241  ;;  %v2700_v11 = vsel %vm2624_vm1, %v2545_v28, %v9542_v58  ;;  %v9550_v28 = vld [vmem:[#allocation82_spill] sm:$0xff]  ;;  %v9552_v58 = vld [vmem:[#allocation169_spill] sm:$0xff] }
 0x306   : > { %v7628_v23 = vpop.permute.xlu0 %2179  ;;  %v2829_v45 = vsel %vm2753_vm2, %v2700_v11, %v9544_v0 }
 0x307   : > { %2201 = vrot.lane.b32.xlu1 %v9528_v57, %s5378_s6  ;;  %v5290_v57 = vld [vmem:[%s5431_s22 + $0x140] sm:$0xf]  ;;  %v2958_v26 = vsel %vm2882_vm3, %v2829_v45, %v9547_v7  ;;  %v9558_v7 = vld [vmem:[#allocation125_spill] sm:$0xff] }
 0x308   : > { %2263 = vrot.lane.b32.xlu0 %v9529_v6, %s5378_s6  ;;  %v9541_v6 = vld [vmem:[#allocation122_spill] sm:$0xff] }
 0x309   : > { %v2312_v62 = vpop.permute.xlu1 %2311  ;;  %v2542_v18 = vsel %vm2431_vm0, %v5290_v57, %v9541_v6 }
 0x30a   : > { %v7644_v55 = vpop.permute.xlu0 %2243  ;;  %v2698_v10 = vsel %vm2624_vm1, %v2542_v18, %v9543_v14  ;;  %v3279_v17 = vsel %vm3269_vm6, %v3150_v41, %v2312_v62  ;;  %v5292_v62 = vld [vmem:[%s5431_s22 + $0x30] sm:$0xf]  ;;  %v3087_v18 = vsel %vm3011_vm4, %v2958_v26, %v2109_v54  ;;  %v9554_v54 = vld [vmem:[#allocation221_spill] sm:$0xff] }
 0x30b   : > { %2265 = vrot.lane.b32.xlu1 %v9536_v53, %s5378_s6  ;;  %v2827_v35 = vsel %vm2753_vm2, %v2698_v10, %v9545_v47  ;;  %v2452_v57 = vsel %vm2431_vm0, %v5292_v62, %v9550_v28  ;;  %v3216_v10 = vsel %vm3140_vm5, %v3087_v18, %v2240_v5  ;;  %v9555_v47 = vld [vmem:[#allocation283_spill] sm:$0xff]  ;;  %v9556_v5 = vld [vmem:[#allocation284_spill] sm:$0xff]  ;;  %v9561_v62 = vld [vmem:[#allocation193_spill] sm:$0xff] }
 0x30c   : > { %2203 = vrot.lane.b32.xlu0 %v9539_v61, %s5378_s6  ;;  %v2956_v21 = vsel %vm2882_vm3, %v2827_v35, %v7189_v9  ;;  %v5291_v61 = vld [vmem:[%s5431_s22 + $0x38] sm:$0xf]  ;;  %v2638_v11 = vsel %vm2624_vm1, %v2452_v57, %v9552_v58 }
 0x30d   : > { %v2376_v44 = vpop.permute.xlu1 %2375  ;;  %v2455_v48 = vsel %vm2431_vm0, %v5291_v61, %v9549_v16  ;;  %v3085_v6 = vsel %vm3011_vm4, %v2956_v21, %v7590_v42  ;;  %v9559_v21 = vld [vmem:[#allocation126_spill] sm:$0xff]  ;;  %v9560_v16 = vld [vmem:[#allocation192_spill] sm:$0xff] }
 0x30e   : > { %v2314_v31 = vpop.permute.xlu0 %2313  ;;  %v2640_v9 = vsel %vm2624_vm1, %v2455_v48, %v9551_v30  ;;  %v3214_v14 = vsel %vm3140_vm5, %v3085_v6, %v2238_v59 }
 0x30f   : > { %v3281_v53 = vsel %vm3269_vm6, %v3152_v39, %v2314_v31  ;;  %2335 = vrot.lane.b32.xlu1 %v9546_v33, %s5379_s11  ;;  %v9553_v39 = vld [vmem:[#allocation220_spill] sm:$0xff]  ;;  %v2767_v31 = vsel %vm2753_vm2, %v2638_v11, %v9554_v54  ;;  %v3343_v0 = vsel %vm3269_vm6, %v3214_v14, %v2376_v44  ;;  %v5293_v33 = vld [vmem:[%s5431_s22 + $0x158] sm:$0xf]  ;;  %v9564_v14 = vld [vmem:[#allocation27_spill] sm:$0xff] }
 0x310   : > { %v4577_v50 = vcombine.low %v3279_v17, %v3281_v53  ;;  %2267 = vrot.lane.b32.xlu0 %v9548_v37, %s5378_s6  ;;  %v2769_v42 = vsel %vm2753_vm2, %v2640_v9, %v9553_v39  ;;  %v2896_v35 = vsel %vm2882_vm3, %v2767_v31, %v9556_v5  ;;  %v9557_v53 = vld [vmem:[#allocation28_spill] sm:$0xff]  ;;  %v2551_v26 = vsel %vm2431_vm0, %v5293_v33, %v9558_v7  ;;  %v9571_v7 = vld [vmem:[#allocation65_spill] sm:$0xff] }
 0x311   : > { %v2316_v13 = vpop.permute.xlu1 %2315  ;;  %v2898_v59 = vsel %vm2882_vm3, %v2769_v42, %v9555_v47  ;;  %v5294_v44 = vld [vmem:[%s5431_s22 + $0x150] sm:$0xf]  ;;  %v3025_v37 = vsel %vm3011_vm4, %v2896_v35, %v7331_v29  ;;  %v2704_v48 = vsel %vm2624_vm1, %v2551_v26, %v9560_v16  ;;  %v9563_v29 = vld [vmem:[#allocation251_spill] sm:$0xff]  ;;  %v9568_v47 = vld [vmem:[#allocation73_spill] sm:$0xff] }
 0x312   : > { %5007 = vmatprep.mubr.msk.bf16.mxu0 %vm3581_vm7, %v4577_v50  ;;  %v2378_v41 = vpop.permute.xlu0 %2377  ;;  %v2548_v50 = vsel %vm2431_vm0, %v5294_v44, %v9559_v21  ;;  %v3154_v57 = vsel %vm3140_vm5, %v3025_v37, %v7620_v1  ;;  %v9569_v35 = vld [vmem:[#allocation116_spill] sm:$0xff]  ;;  %v9572_v26 = vld [vmem:[#allocation115_spill] sm:$0xff] }
 0x313   : > { %v3345_v45 = vsel %vm3269_vm6, %v3216_v10, %v2378_v41  ;;  %2399 = vrot.lane.b32.xlu1 %v9523_v40, %s5379_s11  ;;  %v3027_v40 = vsel %vm3011_vm4, %v2898_v59, %v7329_v56  ;;  %v2702_v28 = vsel %vm2624_vm1, %v2548_v50, %v9561_v62  ;;  %v9562_v56 = vld [vmem:[#allocation250_spill] sm:$0xff]  ;;  %v3283_v58 = vsel %vm3269_vm6, %v3154_v57, %v2316_v13  ;;  %v9573_v50 = vld [vmem:[#allocation120_spill] sm:$0xff] }
 0x314   : > { %v4593_v17 = vcombine.low %v3343_v0, %v3345_v45  ;;  %2337 = vrot.lane.b32.xlu0 %v9557_v53, %s5379_s11  ;;  %v3156_v6 = vsel %vm3140_vm5, %v3027_v40, %v7628_v23  ;;  %v2833_v30 = vsel %vm2753_vm2, %v2704_v48, %v9562_v56  ;;  %v2831_v9 = vsel %vm2753_vm2, %v2702_v28, %v9563_v29  ;;  %v9574_v40 = vld [vmem:[#allocation161_spill] sm:$0xff]  ;;  %v5295_v37 = vld [vmem:[%s5431_s22 + $0x50] sm:$0xf]  ;;  %v5296_v48 = vld [vmem:[%s5431_s22 + $0x48] sm:$0xf] }
 0x315   : > { %v2380_v61 = vpop.permute.xlu1 %2379  ;;  %v2962_v1 = vsel %vm2882_vm3, %v2833_v30, %v7195_v52  ;;  %v2960_v23 = vsel %vm2882_vm3, %v2831_v9, %v7197_v19  ;;  %v9576_v62 = vld [vmem:[#allocation84_spill] sm:$0xff]  ;;  %v5298_v30 = vld [vmem:[%s5431_s22 + $0x58] sm:$0xf]  ;;  %v9578_v29 = vld [vmem:[#allocation86_spill] sm:$0xff] }
 0x316   : > { %5039 = vmatprep.mubr.msk.bf16.mxu1 %vm3581_vm7, %v4593_v17  ;;  %v2318_v18 = vpop.permute.xlu0 %2317  ;;  %v3089_v41 = vsel %vm3011_vm4, %v2960_v23, %v7603_v34  ;;  %v3091_v13 = vsel %vm3011_vm4, %v2962_v1, %v7610_v8  ;;  %v9565_v8 = vld [vmem:[#allocation30_spill] sm:$0xff]  ;;  %v9570_v17 = vld [vmem:[#allocation77_spill] sm:$0xff]  ;;  %v2458_v28 = vsel %vm2431_vm0, %v5296_v48, %v9576_v62  ;;  %v2464_v9 = vsel %vm2431_vm0, %v5298_v30, %v9578_v29 }
 0x317   : > { %v3285_v11 = vsel %vm3269_vm6, %v3156_v6, %v2318_v18  ;;  %2339 = vrot.lane.b32.xlu1 %v9564_v14, %s5379_s11  ;;  %v3218_v42 = vsel %vm3140_vm5, %v3089_v41, %v7626_v3  ;;  %v3220_v52 = vsel %vm3140_vm5, %v3091_v13, %v7644_v55  ;;  %v9566_v55 = vld [vmem:[#allocation74_spill] sm:$0xff]  ;;  %v9577_v18 = vld [vmem:[#allocation85_spill] sm:$0xff]  ;;  %v9580_v14 = vld [vmem:[#allocation4_spill] sm:$0xff] }
 0x318   : > { %v4578_v10 = vcombine.low %v3283_v58, %v3285_v11  ;;  %2401 = vrot.lane.b32.xlu0 %v9522_v51, %s5379_s11  ;;  %v3347_v54 = vsel %vm3269_vm6, %v3218_v42, %v2380_v61  ;;  %v9575_v61 = vld [vmem:[#allocation83_spill] sm:$0xff]  ;;  %v5297_v6 = vld [vmem:[%s5431_s22 + $0x60] sm:$0xf]  ;;  %v2642_v1 = vsel %vm2624_vm1, %v2458_v28, %v9580_v14  ;;  %v9581_v41 = vld [vmem:[#allocation129_spill] sm:$0xff] }
 0x319   : > { %v7755_v39 = vpop.permute.xlu1 %2114  ;;  %v2461_v16 = vsel %vm2431_vm0, %v5295_v37, %v9575_v61  ;;  %v2467_v56 = vsel %vm2431_vm0, %v5297_v6, %v9577_v18  ;;  %v9579_v58 = vld [vmem:[#allocation2_spill] sm:$0xff]  ;;  %v5300_v42 = vld [vmem:[%s5431_s22 + $0x168] sm:$0xf]  ;;  %v9589_v62 = vld [vmem:[#allocation285_spill] sm:$0xff] }
 0x31a   : > { %5008 = vmatmul.mubr.msk.bf16.gmra.mxu0 %vm3581_vm7, %v4578_v10  ;;  %v2382_v19 = vpop.permute.xlu0 %2381  ;;  %v2644_v11 = vsel %vm2624_vm1, %v2461_v16, %v9579_v58  ;;  %v5299_v10 = vld [vmem:[%s5431_s22 + $0x170] sm:$0xf]  ;;  %v9587_v37 = vld [vmem:[#allocation134_spill] sm:$0xff]  ;;  %v9590_v6 = vld [vmem:[#allocation119_spill] sm:$0xff] }
 0x31b   : > { %v3349_v51 = vsel %vm3269_vm6, %v3220_v52, %v2382_v19  ;;  %2403 = vrot.lane.b32.xlu1 %v9525_v49, %s5379_s11  ;;  %v9567_v49 = vld [vmem:[#allocation78_spill] sm:$0xff]  ;;  %v2557_v13 = vsel %vm2431_vm0, %v5299_v10, %v9581_v41  ;;  %v9593_v10 = vld [vmem:[#allocation195_spill] sm:$0xff] }
 0x31c   : > { %v4594_v34 = vcombine.low %v3347_v54, %v3349_v51  ;;  %2341 = vrot.lane.b32.xlu0 %v9565_v8, %s5379_s11  ;;  %v9582_v52 = vld [vmem:[#allocation130_spill] sm:$0xff] }
 0x31d   : > { %v7768_v31 = vpop.permute.xlu1 %2118  ;;  %v2554_v19 = vsel %vm2431_vm0, %v5300_v42, %v9582_v52  ;;  %v9583_v54 = vld [vmem:[#allocation222_spill] sm:$0xff]  ;;  %v9594_v42 = vld [vmem:[#allocation267_spill] sm:$0xff] }
 0x31e   : > { %5040 = vmatmul.mubr.msk.bf16.gmra.mxu1 %vm3581_vm7, %v4594_v34  ;;  %v7771_v3 = vpop.permute.xlu0 %2116  ;;  %v2773_v51 = vsel %vm2753_vm2, %v2644_v11, %v9583_v54  ;;  %v9584_v34 = vld [vmem:[#allocation223_spill] sm:$0xff]  ;;  %v9588_v16 = vld [vmem:[#allocation10_spill] sm:$0xff]  ;;  %v2706_v41 = vsel %vm2624_vm1, %v2554_v19, %v9593_v10 }
 0x31f   : > { %2138 = vrot.lane.b32.xlu1 %v9566_v55, %s5377_s5  ;;  %v2771_v8 = vsel %vm2753_vm2, %v2642_v1, %v9584_v34  ;;  %v2902_v48 = vsel %vm2882_vm3, %v2773_v51, %v9588_v16  ;;  %v9591_v18 = vld [vmem:[#allocation6_spill] sm:$0xff] }
 0x320   : > { %2405 = vrot.lane.b32.xlu0 %v9566_v55, %s5379_s11  ;;  %v466_v55 = vld [vmem:[%s6990_s30 + $0x4] sm:$0x1]  ;;  %v2900_v28 = vsel %vm2882_vm3, %v2771_v8, %v9589_v62  ;;  %v2648_v30 = vsel %vm2624_vm1, %v2467_v56, %v9591_v18  ;;  %v3031_v11 = vsel %vm3011_vm4, %v2902_v48, %v7337_v38  ;;  %v9596_v38 = vld [vmem:[#allocation253_spill] sm:$0xff]  ;;  %v9601_v48 = vld [vmem:[#allocation164_spill] sm:$0xff] }
 0x321   : > { %v2182_v0 = vpop.permute.xlu1 %2181  ;;  %v9592_v29 = vld [vmem:[#allocation194_spill] sm:$0xff]  ;;  %v3029_v14 = vsel %vm3011_vm4, %v2900_v28, %v7339_v36  ;;  %v7859_v52 = vcombine.low %v9594_v42, %v466_v55  ;;  %v2835_v8 = vsel %vm2753_vm2, %v2706_v41, %v9596_v38  ;;  %v470_v36 = vld [vmem:[%s6990_s30 + $0x14] sm:$0x1]  ;;  %v9597_v55 = vld [vmem:[#allocation29_spill] sm:$0xff] }
 0x322   : > { %v7777_v45 = vpop.permute.xlu0 %2120  ;;  %v2708_v58 = vsel %vm2624_vm1, %v2557_v13, %v9592_v29  ;;  %v3158_v54 = vsel %vm3140_vm5, %v3029_v14, %v2182_v0  ;;  %v9595_v13 = vld [vmem:[#allocation252_spill] sm:$0xff]  ;;  %v9598_v0 = vld [vmem:[#allocation3_spill] sm:$0xff]  ;;  %v9603_v28 = vld [vmem:[#allocation197_spill] sm:$0xff] }
 0x323   : > { %2142 = vrot.lane.b32.xlu1 %v9567_v49, %s5377_s5  ;;  %v2837_v34 = vsel %vm2753_vm2, %v2708_v58, %v9595_v13  ;;  %v9602_v62 = vld [vmem:[#allocation196_spill] sm:$0xff]  ;;  %v468_v18 = vld [vmem:[%s6990_s30 + $0xc] sm:$0x1]  ;;  %v1981_v42 = vshll.u32 %v7859_v52, 16 }
 0x324   : > { %2140 = vrot.lane.b32.xlu0 %v9568_v47, %s5377_s5  ;;  %v9604_v14 = vld [vmem:[#allocation271_spill] sm:$0xff] }
 0x325   : > { %v7783_v59 = vpop.permute.xlu1 %2245  ;;  %v4566_v10 = vcombine.low %v9604_v14, %v470_v36 }
 0x326   : > { %v2184_v5 = vpop.permute.xlu0 %2183 }
 0x327   : > { %2205 = vrot.lane.b32.xlu1 %v9569_v35, %s5378_s6  ;;  %v9585_v35 = vld [vmem:[#allocation165_spill] sm:$0xff]  ;;  %v3160_v56 = vsel %vm3140_vm5, %v3031_v11, %v2184_v5  ;;  %v9599_v5 = vld [vmem:[#allocation42_spill] sm:$0xff] }
 0x328   : > { %2144 = vrot.lane.b32.xlu0 %v9570_v17, %s5377_s5  ;;  %v472_v11 = vld [vmem:[%s6990_s30 + $0x1c] sm:$0x1] }
 0x329   : > { %v7789_v53 = vpop.permute.xlu1 %2185 }
 0x32a   : > { %v7791_v33 = vpop.permute.xlu0 %2247 }
 0x32b   : > { %2269 = vrot.lane.b32.xlu1 %v9571_v7, %s5378_s6  ;;  %v5301_v7 = vld [vmem:[%s5431_s22 + $0x180] sm:$0xf] }
 0x32c   : > { %2207 = vrot.lane.b32.xlu0 %v9572_v26, %s5378_s6  ;;  %v9586_v26 = vld [vmem:[#allocation133_spill] sm:$0xff] }
 0x32d   : > { %v7797_v44 = vpop.permute.xlu1 %2249 }
 0x32e   : > { %v7799_v21 = vpop.permute.xlu0 %2187 }
 0x32f   : > { %2209 = vrot.lane.b32.xlu1 %v9573_v50, %s5378_s6  ;;  %v2563_v50 = vsel %vm2431_vm0, %v5301_v7, %v9586_v26  ;;  %v2646_v7 = vsel %vm2624_vm1, %v2464_v9, %v9598_v0  ;;  %v2966_v26 = vsel %vm2882_vm3, %v2837_v34, %v9599_v5  ;;  %v9607_v34 = vld [vmem:[#allocation286_spill] sm:$0xff] }
 0x330   : > { %2271 = vrot.lane.b32.xlu0 %v9574_v40, %s5378_s6  ;;  %v5302_v40 = vld [vmem:[%s5431_s22 + $0x178] sm:$0xf]  ;;  %v3095_v29 = vsel %vm3011_vm4, %v2966_v26, %v7771_v3 }
 0x331   : > { %v2320_v57 = vpop.permute.xlu1 %2319  ;;  %v2560_v61 = vsel %vm2431_vm0, %v5302_v40, %v9587_v37  ;;  %v9600_v40 = vld [vmem:[#allocation45_spill] sm:$0xff] }
 0x332   : > { %v7821_v23 = vpop.permute.xlu0 %2251  ;;  %v2964_v37 = vsel %vm2882_vm3, %v2835_v8, %v9600_v40  ;;  %v9606_v3 = vld [vmem:[#allocation225_spill] sm:$0xff]  ;;  %v9608_v8 = vld [vmem:[#allocation287_spill] sm:$0xff] }
 0x333   : > { %2273 = vrot.lane.b32.xlu1 %v9585_v35, %s5378_s6  ;;  %v3287_v35 = vsel %vm3269_vm6, %v3158_v54, %v2320_v57  ;;  %v2712_v57 = vsel %vm2624_vm1, %v2563_v50, %v9602_v62  ;;  %v3093_v9 = vsel %vm3011_vm4, %v2964_v37, %v7755_v39  ;;  %v3224_v50 = vsel %vm3140_vm5, %v3095_v29, %v7791_v33  ;;  %v9605_v39 = vld [vmem:[#allocation224_spill] sm:$0xff]  ;;  %v9611_v62 = vld [vmem:[#allocation255_spill] sm:$0xff] }
 0x334   : > { %2211 = vrot.lane.b32.xlu0 %v9590_v6, %s5378_s6  ;;  %v2710_v6 = vsel %vm2624_vm1, %v2560_v61, %v9603_v28  ;;  %v3222_v41 = vsel %vm3140_vm5, %v3093_v9, %v7783_v59  ;;  %v2777_v54 = vsel %vm2753_vm2, %v2648_v30, %v9605_v39  ;;  %v5303_v59 = vld [vmem:[%s6990_s30 + $0x8] sm:$0xf]  ;;  %v9609_v30 = vld [vmem:[#allocation32_spill] sm:$0xff]  ;;  %v9614_v39 = vld [vmem:[#allocation189_spill] sm:$0xff] }
 0x335   : > { %v2384_v1 = vpop.permute.xlu1 %2383  ;;  %v4565_v33 = vcombine.low %v5303_v59, %v468_v18  ;;  %v2906_v38 = vsel %vm2882_vm3, %v2777_v54, %v9607_v34  ;;  %v9612_v28 = vld [vmem:[#allocation31_spill] sm:$0xff]  ;;  %v9613_v18 = vld [vmem:[#allocation41_spill] sm:$0xff] }
 0x336   : > { %v2322_v51 = vpop.permute.xlu0 %2321 }
 0x337   : > { %v3289_v19 = vsel %vm3269_vm6, %v3160_v56, %v2322_v51  ;;  %2343 = vrot.lane.b32.xlu1 %v9597_v55, %s5379_s11  ;;  %v2775_v56 = vsel %vm2753_vm2, %v2646_v7, %v9606_v3  ;;  %v3351_v51 = vsel %vm3269_vm6, %v3222_v41, %v2384_v1  ;;  %v5304_v55 = vld [vmem:[%s6990_s30 + $0x18] sm:$0xf] }
 0x338   : > { %v4579_v16 = vcombine.low %v3287_v35, %v3289_v19  ;;  %2275 = vrot.lane.b32.xlu0 %v9601_v48, %s5378_s6  ;;  %v2904_v36 = vsel %vm2882_vm3, %v2775_v56, %v9608_v8  ;;  %v9610_v19 = vld [vmem:[#allocation254_spill] sm:$0xff]  ;;  %v4567_v0 = vcombine.low %v5304_v55, %v472_v11  ;;  %v1983_v48 = vrot.slane %v1981_v42, 1  ;;  %v9618_v55 = vld [vmem:[#allocation123_spill] sm:$0xff] }
 0x339   : > { %v2324_v58 = vpop.permute.xlu1 %2323  ;;  %v2841_v1 = vsel %vm2753_vm2, %v2712_v57, %v9610_v19  ;;  %v3033_v7 = vsel %vm3011_vm4, %v2904_v36, %v7347_v4  ;;  %v2839_v57 = vsel %vm2753_vm2, %v2710_v6, %v9611_v62 }
 0x33a   : > { %5011 = vmatprep.mubr.msk.bf16.mxu0 %vm3581_vm7, %v4579_v16  ;;  %v2386_v61 = vpop.permute.xlu0 %2385  ;;  %v3162_v26 = vsel %vm3140_vm5, %v3033_v7, %v7789_v53  ;;  %v1979_v16 = vshrl.u32 %v7859_v52, 16  ;;  %v1995_v53 = vshll.u32 %v4566_v10, 16  ;;  %v2968_v9 = vsel %vm2882_vm3, %v2839_v57, %v9613_v18  ;;  %v9619_v7 = vld [vmem:[#allocation128_spill] sm:$0xff]  ;;  %v9625_v18 = vld [vmem:[#allocation5_spill] sm:$0xff] }
 0x33b   : > { %v3353_v13 = vsel %vm3269_vm6, %v3224_v50, %v2386_v61  ;;  %2407 = vrot.lane.b32.xlu1 %v9568_v47, %s5379_s11  ;;  %v3035_v47 = vsel %vm3011_vm4, %v2906_v38, %v7345_v20  ;;  %v3291_v20 = vsel %vm3269_vm6, %v3162_v26, %v2324_v58  ;;  %v1988_v52 = vshll.u32 %v4565_v33, 16  ;;  %v5305_v26 = vld [vmem:[%s5431_s22 + $0x70] sm:$0xf] }
 0x33c   : > { %v4595_v35 = vcombine.low %v3351_v51, %v3353_v13  ;;  %2345 = vrot.lane.b32.xlu0 %v9609_v30, %s5379_s11  ;;  %v3164_v40 = vsel %vm3140_vm5, %v3035_v47, %v7799_v21  ;;  %v2970_v21 = vsel %vm2882_vm3, %v2841_v1, %v7211_v15  ;;  %v3097_v6 = vsel %vm3011_vm4, %v2968_v9, %v7768_v31  ;;  %v9617_v1 = vld [vmem:[#allocation269_spill] sm:$0xff] }
 0x33d   : > { %v2388_v5 = vpop.permute.xlu1 %2387  ;;  %v3099_v58 = vsel %vm3011_vm4, %v2970_v21, %v7777_v45  ;;  %v3226_v14 = vsel %vm3140_vm5, %v3097_v6, %v7797_v44  ;;  %v1984_v50 = vor.u32 %v1983_v48, %v1979_v16  ;;  %v1993_v31 = vshrl.u32 %v4566_v10, 16  ;;  %v5306_v16 = vld [vmem:[%s5431_s22 + $0x68] sm:$0xf]  ;;  %v9622_v48 = vld [vmem:[#allocation88_spill] sm:$0xff]  ;;  %v9626_v6 = vld [vmem:[#allocation90_spill] sm:$0xff] }
 0x33e   : > { %5043 = vmatprep.mubr.msk.bf16.mxu1 %vm3581_vm7, %v4595_v35  ;;  %v2326_v37 = vpop.permute.xlu0 %2325  ;;  %v3228_v15 = vsel %vm3140_vm5, %v3099_v58, %v7821_v23  ;;  %v1997_v45 = vrot.slane %v1995_v53, 1  ;;  %v1986_v44 = vshrl.u32 %v4565_v33, 16  ;;  %v1990_v54 = vrot.slane %v1988_v52, 1  ;;  %v9616_v35 = vld [vmem:[#allocation124_spill] sm:$0xff]  ;;  %v5308_v52 = vld [vmem:[%s5431_s22 + $0x78] sm:$0xf] }
 0x33f   : > { %v3293_v4 = vsel %vm3269_vm6, %v3164_v40, %v2326_v37  ;;  %2347 = vrot.lane.b32.xlu1 %v9612_v28, %s5379_s11  ;;  %v2002_v23 = vshll.u32 %v4567_v0, 16  ;;  %v2000_v13 = vshrl.u32 %v4567_v0, 16  ;;  %v9621_v40 = vld [vmem:[#allocation87_spill] sm:$0xff]  ;;  %v2470_v62 = vsel %vm2431_vm0, %v5306_v16, %v9622_v48  ;;  %v9624_v53 = vld [vmem:[#allocation8_spill] sm:$0xff] }
 0x340   : > { %v4580_v29 = vcombine.low %v3291_v20, %v3293_v4  ;;  %2409 = vrot.lane.b32.xlu0 %v9567_v49, %s5379_s11  ;;  %v3355_v49 = vsel %vm3269_vm6, %v3226_v14, %v2388_v5  ;;  %v7960_v51 = vor.u32 %v1997_v45, %v1993_v31  ;;  %v7964_v10 = vor.u32 %v1990_v54, %v1986_v44  ;;  %v9620_v5 = vld [vmem:[#allocation274_spill] sm:$0xff]  ;;  %v9623_v4 = vld [vmem:[#allocation89_spill] sm:$0xff]  ;;  %v5309_v14 = vld [vmem:[%s5431_s22 + $0x190] sm:$0xf] }
 0x341   : > { %v7941_v11 = vpop.permute.xlu1 %2122  ;;  %v2004_v59 = vrot.slane %v2002_v23, 1  ;;  %v2473_v37 = vsel %vm2431_vm0, %v5305_v26, %v9621_v40  ;;  %v5307_v20 = vld [vmem:[%s5431_s22 + $0x80] sm:$0xf]  ;;  %v2650_v9 = vsel %vm2624_vm1, %v2470_v62, %v9625_v18  ;;  %v2476_v58 = vsel %vm2431_vm0, %v5308_v52, %v9626_v6  ;;  %v474_v45 = vld [vmem:[%s6990_s30 + $0x24] sm:$0x1]  ;;  %v9636_v26 = vld [vmem:[#allocation140_spill] sm:$0xff] }
 0x342   : > { %5012 = vmatmul.mubr.msk.bf16.gmra.mxu0 %vm3581_vm7, %v4580_v29  ;;  %v2390_v41 = vpop.permute.xlu0 %2389  ;;  %v2479_v28 = vsel %vm2431_vm0, %v5307_v20, %v9623_v4  ;;  %v2652_v21 = vsel %vm2624_vm1, %v2473_v37, %v9624_v53  ;;  %v9631_v44 = vld [vmem:[#allocation138_spill] sm:$0xff]  ;;  %v9637_v37 = vld [vmem:[#allocation199_spill] sm:$0xff]  ;;  %v9638_v4 = vld [vmem:[#allocation200_spill] sm:$0xff] }
 0x343   : > { %v3357_v61 = vsel %vm3269_vm6, %v3228_v15, %v2390_v41  ;;  %2411 = vrot.lane.b32.xlu1 %v9570_v17, %s5379_s11  ;;  %v9615_v17 = vld [vmem:[#allocation217_spill] sm:$0xff]  ;;  %v7972_v38 = vor.u32 %v2004_v59, %v2000_v13  ;;  %v5311_v23 = vld [vmem:[%s5431_s22 + $0x1a0] sm:$0xf] }
 0x344   : > { %v4596_v42 = vcombine.low %v3355_v49, %v3357_v61  ;;  %2349 = vrot.lane.b32.xlu0 %v9614_v39, %s5379_s11  ;;  %v9627_v15 = vld [vmem:[#allocation137_spill] sm:$0xff]  ;;  %v9629_v61 = vld [vmem:[#allocation227_spill] sm:$0xff] }
 0x345   : > { %v7954_v3 = vpop.permute.xlu1 %2126  ;;  %v2569_v41 = vsel %vm2431_vm0, %v5309_v14, %v9627_v15  ;;  %v2779_v31 = vsel %vm2753_vm2, %v2650_v9, %v9629_v61  ;;  %v5310_v39 = vld [vmem:[%s5431_s22 + $0x188] sm:$0xf]  ;;  %v9633_v59 = vld [vmem:[#allocation13_spill] sm:$0xff]  ;;  %v9639_v14 = vld [vmem:[#allocation256_spill] sm:$0xff] }
 0x346   : > { %5044 = vmatmul.mubr.msk.bf16.gmra.mxu1 %vm3581_vm7, %v4596_v42  ;;  %v7957_v56 = vpop.permute.xlu0 %2124  ;;  %v9630_v42 = vld [vmem:[#allocation273_spill] sm:$0xff]  ;;  %v2566_v54 = vsel %vm2431_vm0, %v5310_v39, %v9631_v44  ;;  %v2716_v16 = vsel %vm2624_vm1, %v2569_v41, %v9637_v37  ;;  %v9642_v61 = vld [vmem:[#allocation7_spill] sm:$0xff] }
 0x347   : > { %2146 = vrot.lane.b32.xlu1 %v1984_v50, %s5377_s5  ;;  %v9628_v50 = vld [vmem:[#allocation226_spill] sm:$0xff]  ;;  %v2714_v53 = vsel %vm2624_vm1, %v2566_v54, %v9638_v4  ;;  %v2845_v15 = vsel %vm2753_vm2, %v2716_v16, %v9639_v14  ;;  %v9645_v44 = vld [vmem:[#allocation201_spill] sm:$0xff] }
 0x348   : > { %2413 = vrot.lane.b32.xlu0 %v9615_v17, %s5379_s11  ;;  %v2781_v49 = vsel %vm2753_vm2, %v2652_v21, %v9628_v50  ;;  %v9632_v17 = vld [vmem:[#allocation139_spill] sm:$0xff]  ;;  %v5313_v21 = vld [vmem:[%s6990_s30 + $0x20] sm:$0xf] }
 0x349   : > { %v2190_v33 = vpop.permute.xlu1 %2189  ;;  %v2575_v13 = vsel %vm2431_vm0, %v5311_v23, %v9632_v17  ;;  %v8048_v18 = vcombine.low %v5313_v21, %v474_v45  ;;  %v476_v23 = vld [vmem:[%s6990_s30 + $0x2c] sm:$0x1]  ;;  %v9651_v21 = vld [vmem:[#allocation36_spill] sm:$0xff] }
 0x34a   : > { %v7966_v34 = vpop.permute.xlu0 %2128  ;;  %v2720_v54 = vsel %vm2624_vm1, %v2575_v13, %v9645_v44 }
 0x34b   : > { %2150 = vrot.lane.b32.xlu1 %v7960_v51, %s5377_s5  ;;  %v2009_v37 = vshll.u32 %v8048_v18, 16 }
 0x34c   : > { %2148 = vrot.lane.b32.xlu0 %v7964_v10, %s5377_s5 }
 0x34d   : > { %v7974_v8 = vpop.permute.xlu1 %2253 }
 0x34e   : > { %v2192_v36 = vpop.permute.xlu0 %2191 }
 0x34f   : > { %2213 = vrot.lane.b32.xlu1 %v9616_v35, %s5378_s6  ;;  %v2910_v35 = vsel %vm2882_vm3, %v2781_v49, %v9633_v59  ;;  %v9641_v49 = vld [vmem:[#allocation33_spill] sm:$0xff] }
 0x350   : > { %2152 = vrot.lane.b32.xlu0 %v7972_v38, %s5377_s5  ;;  %v3039_v48 = vsel %vm3011_vm4, %v2910_v35, %v7353_v43  ;;  %v9640_v43 = vld [vmem:[#allocation257_spill] sm:$0xff]  ;;  %v9647_v35 = vld [vmem:[#allocation228_spill] sm:$0xff] }
 0x351   : > { %v7980_v30 = vpop.permute.xlu1 %2193  ;;  %v3168_v52 = vsel %vm3140_vm5, %v3039_v48, %v2192_v36  ;;  %v2843_v41 = vsel %vm2753_vm2, %v2714_v53, %v9640_v43  ;;  %v2974_v36 = vsel %vm2882_vm3, %v2845_v15, %v7219_v25  ;;  %v9649_v48 = vld [vmem:[#allocation15_spill] sm:$0xff]  ;;  %v9652_v43 = vld [vmem:[#allocation258_spill] sm:$0xff] }
 0x352   : > { %v7982_v19 = vpop.permute.xlu0 %2255  ;;  %v3103_v25 = vsel %vm3011_vm4, %v2974_v36, %v7957_v56  ;;  %v9654_v36 = vld [vmem:[#allocation35_spill] sm:$0xff] }
 0x353   : > { %2277 = vrot.lane.b32.xlu1 %v9617_v1, %s5378_s6  ;;  %v9634_v1 = vld [vmem:[#allocation14_spill] sm:$0xff] }
 0x354   : > { %2215 = vrot.lane.b32.xlu0 %v9618_v55, %s5378_s6  ;;  %v2908_v55 = vsel %vm2882_vm3, %v2779_v31, %v9634_v1  ;;  %v2972_v31 = vsel %vm2882_vm3, %v2843_v41, %v7221_v22  ;;  %v9646_v22 = vld [vmem:[#allocation202_spill] sm:$0xff]  ;;  %v2849_v41 = vsel %vm2753_vm2, %v2720_v54, %v9652_v43  ;;  %v9663_v43 = vld [vmem:[#allocation12_spill] sm:$0xff] }
 0x355   : > { %v7988_v0 = vpop.permute.xlu1 %2257  ;;  %v3037_v62 = vsel %vm3011_vm4, %v2908_v55, %v7355_v46  ;;  %v480_v55 = vld [vmem:[%s6990_s30 + $0x3c] sm:$0x1] }
 0x356   : > { %v7990_v47 = vpop.permute.xlu0 %2195  ;;  %v3166_v9 = vsel %vm3140_vm5, %v3037_v62, %v2190_v33  ;;  %v2656_v33 = vsel %vm2624_vm1, %v2479_v28, %v9642_v61  ;;  %v3101_v28 = vsel %vm3011_vm4, %v2972_v31, %v7941_v11  ;;  %v3232_v11 = vsel %vm3140_vm5, %v3103_v25, %v7982_v19  ;;  %v9650_v62 = vld [vmem:[#allocation16_spill] sm:$0xff]  ;;  %v9655_v25 = vld [vmem:[#allocation38_spill] sm:$0xff] }
 0x357   : > { %2217 = vrot.lane.b32.xlu1 %v9619_v7, %s5378_s6  ;;  %v9635_v7 = vld [vmem:[#allocation127_spill] sm:$0xff]  ;;  %v2785_v1 = vsel %vm2753_vm2, %v2656_v33, %v9647_v35  ;;  %v3230_v13 = vsel %vm3140_vm5, %v3101_v28, %v7974_v8  ;;  %v2007_v31 = vshrl.u32 %v8048_v18, 16 }
 0x358   : > { %2279 = vrot.lane.b32.xlu0 %v9620_v5, %s5378_s6  ;;  %v5312_v5 = vld [vmem:[%s5431_s22 + $0x198] sm:$0xf]  ;;  %v5314_v8 = vld [vmem:[%s6990_s30 + $0x28] sm:$0xf]  ;;  %v2914_v19 = vsel %vm2882_vm3, %v2785_v1, %v9649_v48  ;;  %v9658_v48 = vld [vmem:[#allocation132_spill] sm:$0xff] }
 0x359   : > { %v2328_v57 = vpop.permute.xlu1 %2327  ;;  %v2572_v40 = vsel %vm2431_vm0, %v5312_v5, %v9636_v26  ;;  %v4569_v16 = vcombine.low %v5314_v8, %v476_v23 }
 0x35a   : > { %v8009_v29 = vpop.permute.xlu0 %2259  ;;  %v3295_v46 = vsel %vm3269_vm6, %v3166_v9, %v2328_v57  ;;  %v9644_v57 = vld [vmem:[#allocation170_spill] sm:$0xff]  ;;  %v2718_v59 = vsel %vm2624_vm1, %v2572_v40, %v9646_v22 }
 0x35b   : > { %2281 = vrot.lane.b32.xlu1 %v9630_v42, %s5378_s6  ;;  %v9643_v42 = vld [vmem:[#allocation276_spill] sm:$0xff]  ;;  %v2654_v39 = vsel %vm2624_vm1, %v2476_v58, %v9644_v57  ;;  %v2016_v57 = vshll.u32 %v4569_v16, 16 }
 0x35c   : > { %2219 = vrot.lane.b32.xlu0 %v9635_v7, %s5378_s6  ;;  %v478_v58 = vld [vmem:[%s6990_s30 + $0x34] sm:$0x1]  ;;  %v9648_v7 = vld [vmem:[#allocation229_spill] sm:$0xff] }
 0x35d   : > { %v2392_v20 = vpop.permute.xlu1 %2391  ;;  %v2783_v5 = vsel %vm2753_vm2, %v2654_v39, %v9648_v7 }
 0x35e   : > { %v2330_v6 = vpop.permute.xlu0 %2329  ;;  %v3359_v26 = vsel %vm3269_vm6, %v3230_v13, %v2392_v20  ;;  %v2912_v4 = vsel %vm2882_vm3, %v2783_v5, %v9650_v62  ;;  %v5315_v20 = vld [vmem:[%s6990_s30 + $0x38] sm:$0xf] }
 0x35f   : > { %v3297_v50 = vsel %vm3269_vm6, %v3168_v52, %v2330_v6  ;;  %2351 = vrot.lane.b32.xlu1 %v9641_v49, %s5379_s11  ;;  %v4571_v9 = vcombine.low %v5315_v20, %v480_v55  ;;  %v5316_v52 = vld [vmem:[%s6990_s30 + $0x30] sm:$0xf]  ;;  %v3041_v14 = vsel %vm3011_vm4, %v2912_v4, %v7363_v63  ;;  %v5317_v20 = vld [vmem:[%s5431_s22 + $0x98] sm:$0xf] }
 0x360   : > { %v4581_v45 = vcombine.low %v3295_v46, %v3297_v50  ;;  %2283 = vrot.lane.b32.xlu0 %v9643_v42, %s5378_s6  ;;  %v4570_v6 = vcombine.low %v5316_v52, %v478_v58  ;;  %v9653_v46 = vld [vmem:[#allocation259_spill] sm:$0xff]  ;;  %v3170_v49 = vsel %vm3140_vm5, %v3041_v14, %v7980_v30  ;;  %v2978_v42 = vsel %vm2882_vm3, %v2849_v41, %v7230_v27  ;;  %v9659_v4 = vld [vmem:[#allocation280_spill] sm:$0xff] }
 0x361   : > { %v2332_v17 = vpop.permute.xlu1 %2331  ;;  %v2847_v50 = vsel %vm2753_vm2, %v2718_v59, %v9653_v46  ;;  %v3107_v44 = vsel %vm3011_vm4, %v2978_v42, %v7966_v34  ;;  %v2030_v34 = vshll.u32 %v4571_v9, 16  ;;  %v2028_v35 = vshrl.u32 %v4571_v9, 16  ;;  %v9661_v9 = vld [vmem:[#allocation91_spill] sm:$0xff]  ;;  %v9664_v46 = vld [vmem:[#allocation9_spill] sm:$0xff] }
 0x362   : > { %5015 = vmatprep.mubr.msk.bf16.mxu0 %vm3581_vm7, %v4581_v45  ;;  %v2394_v56 = vpop.permute.xlu0 %2393  ;;  %v2011_v45 = vrot.slane %v2009_v37, 1  ;;  %v2976_v30 = vsel %vm2882_vm3, %v2847_v50, %v7232_v24  ;;  %v3236_v27 = vsel %vm3140_vm5, %v3107_v44, %v8009_v29  ;;  %v2023_v22 = vshll.u32 %v4570_v6, 16  ;;  %v9668_v42 = vld [vmem:[#allocation93_spill] sm:$0xff] }
 0x363   : > { %v3361_v40 = vsel %vm3269_vm6, %v3232_v11, %v2394_v56  ;;  %2415 = vrot.lane.b32.xlu1 %v7964_v10, %s5379_s11  ;;  %v3043_v10 = vsel %vm3011_vm4, %v2914_v19, %v7361_v12  ;;  %v3299_v12 = vsel %vm3269_vm6, %v3170_v49, %v2332_v17  ;;  %v3105_v39 = vsel %vm3011_vm4, %v2976_v30, %v7954_v3  ;;  %v9656_v56 = vld [vmem:[#allocation39_spill] sm:$0xff]  ;;  %v9670_v44 = vld [vmem:[#allocation17_spill] sm:$0xff] }
 0x364   : > { %v4597_v53 = vcombine.low %v3359_v26, %v3361_v40  ;;  %2353 = vrot.lane.b32.xlu0 %v9651_v21, %s5379_s11  ;;  %v3172_v61 = vsel %vm3140_vm5, %v3043_v10, %v7990_v47  ;;  %v3234_v18 = vsel %vm3140_vm5, %v3105_v39, %v7988_v0  ;;  %v2012_v3 = vor.u32 %v2011_v45, %v2007_v31  ;;  %v481_v21 = vld [vmem:[%s6990_s30 + $0x40] sm:$0xf]  ;;  %v9662_v10 = vld [vmem:[#allocation92_spill] sm:$0xff]  ;;  %v5319_v45 = vld [vmem:[%s5431_s22 + $0xa8] sm:$0xf] }
 0x365   : > { %v2396_v15 = vpop.permute.xlu1 %2395  ;;  %v2014_v0 = vshrl.u32 %v4569_v16, 16  ;;  %v2018_v17 = vrot.slane %v2016_v57, 1  ;;  %v2032_v1 = vrot.slane %v2030_v34, 1  ;;  %v2021_v55 = vshrl.u32 %v4570_v6, 16  ;;  %v9657_v16 = vld [vmem:[#allocation131_spill] sm:$0xff]  ;;  %v9669_v57 = vld [vmem:[#allocation141_spill] sm:$0xff] }
 0x366   : > { %5047 = vmatprep.mubr.msk.bf16.mxu1 %vm3581_vm7, %v4597_v53  ;;  %v2334_v33 = vpop.permute.xlu0 %2333  ;;  %v2025_v58 = vrot.slane %v2023_v22, 1  ;;  %v9660_v53 = vld [vmem:[#allocation275_spill] sm:$0xff]  ;;  %v2485_v52 = vsel %vm2431_vm0, %v5317_v20, %v9661_v9  ;;  %v5318_v6 = vld [vmem:[%s5431_s22 + $0x90] sm:$0xf]  ;;  %v4572_v31 = vcombine.low %v481_v21, %v481_v21  ;;  %v2491_v30 = vsel %vm2431_vm0, %v5319_v45, %v9668_v42  ;;  %v9673_v34 = vld [vmem:[#allocation142_spill] sm:$0xff] }
 0x367   : > { %v3301_v63 = vsel %vm3269_vm6, %v3172_v61, %v2334_v33  ;;  %2355 = vrot.lane.b32.xlu1 %v9654_v36, %s5379_s11  ;;  %v8158_v7 = vor.u32 %v2032_v1, %v2028_v35  ;;  %v2482_v14 = vsel %vm2431_vm0, %v5318_v6, %v9662_v10  ;;  %v2660_v41 = vsel %vm2624_vm1, %v2485_v52, %v9663_v43  ;;  %v9665_v61 = vld [vmem:[#allocation230_spill] sm:$0xff]  ;;  %v9667_v36 = vld [vmem:[#allocation135_spill] sm:$0xff]  ;;  %v9675_v1 = vld [vmem:[#allocation204_spill] sm:$0xff] }
 0x368   : > { %v4582_v47 = vcombine.low %v3299_v12, %v3301_v63  ;;  %2417 = vrot.lane.b32.xlu0 %v7960_v51, %s5379_s11  ;;  %v3363_v51 = vsel %vm3269_vm6, %v3234_v18, %v2396_v15  ;;  %v8162_v5 = vor.u32 %v2025_v58, %v2021_v55  ;;  %v2658_v50 = vsel %vm2624_vm1, %v2482_v14, %v9664_v46  ;;  %v9666_v12 = vld [vmem:[#allocation231_spill] sm:$0xff]  ;;  %v9676_v58 = vld [vmem:[#allocation260_spill] sm:$0xff]  ;;  %v9677_v20 = vld [vmem:[#allocation261_spill] sm:$0xff] }
 0x369   : > { %v8132_v54 = vpop.permute.xlu1 %2130  ;;  %v2789_v33 = vsel %vm2753_vm2, %v2660_v41, %v9665_v61  ;;  %v2787_v63 = vsel %vm2753_vm2, %v2658_v50, %v9666_v12  ;;  %v5322_v6 = vld [vmem:[%s5431_s22 + $0xa0] sm:$0xf]  ;;  %v9679_v43 = vld [vmem:[#allocation301_spill] sm:$0xff]  ;;  %v9681_v50 = vld [vmem:[#allocation279_spill] sm:$0xff] }
 0x36a   : > { %5016 = vmatmul.mubr.msk.bf16.gmra.mxu0 %vm3581_vm7, %v4582_v47  ;;  %v2398_v24 = vpop.permute.xlu0 %2397  ;;  %v5320_v47 = vld [vmem:[%s5431_s22 + $0x1b8] sm:$0xf]  ;;  %v2918_v18 = vsel %vm2882_vm3, %v2789_v33, %v9670_v44  ;;  %v9678_v10 = vld [vmem:[#allocation94_spill] sm:$0xff]  ;;  %v9682_v61 = vld [vmem:[#allocation143_spill] sm:$0xff] }
 0x36b   : > { %v3365_v23 = vsel %vm3269_vm6, %v3236_v27, %v2398_v24  ;;  %2419 = vrot.lane.b32.xlu1 %v7972_v38, %s5379_s11  ;;  %v8152_v38 = vor.u32 %v2018_v17, %v2014_v0  ;;  %v2581_v39 = vsel %vm2431_vm0, %v5320_v47, %v9669_v57  ;;  %v9671_v27 = vld [vmem:[#allocation18_spill] sm:$0xff]  ;;  %v3047_v17 = vsel %vm3011_vm4, %v2918_v18, %v7369_v32  ;;  %v9683_v33 = vld [vmem:[#allocation11_spill] sm:$0xff]  ;;  %v9685_v47 = vld [vmem:[#allocation232_spill] sm:$0xff] }
 0x36c   : > { %v4598_v28 = vcombine.low %v3363_v51, %v3365_v23  ;;  %2357 = vrot.lane.b32.xlu0 %v9655_v25, %s5379_s11  ;;  %v2916_v24 = vsel %vm2882_vm3, %v2787_v63, %v9671_v27  ;;  %v9672_v51 = vld [vmem:[#allocation136_spill] sm:$0xff]  ;;  %v482_v23 = vld [vmem:[%s6990_s30 + $0x44] sm:$0x1]  ;;  %v9674_v25 = vld [vmem:[#allocation203_spill] sm:$0xff]  ;;  %v2488_v14 = vsel %vm2431_vm0, %v5322_v6, %v9678_v10  ;;  %v2664_v12 = vsel %vm2624_vm1, %v2491_v30, %v9683_v33 }
 0x36d   : > { %v8145_v29 = vpop.permute.xlu1 %2134  ;;  %v2724_v0 = vsel %vm2624_vm1, %v2581_v39, %v9674_v25  ;;  %v3045_v22 = vsel %vm3011_vm4, %v2916_v24, %v7371_v60  ;;  %v4573_v52 = vcombine.low %v481_v21, %v482_v23  ;;  %v9680_v41 = vld [vmem:[#allocation302_spill] sm:$0xff]  ;;  %v9684_v45 = vld [vmem:[#allocation171_spill] sm:$0xff]  ;;  %v2793_v57 = vsel %vm2753_vm2, %v2664_v12, %v9685_v47  ;;  %v9686_v18 = vld [vmem:[#allocation233_spill] sm:$0xff] }
 0x36e   : > { %5048 = vmatmul.mubr.msk.bf16.gmra.mxu1 %vm3581_vm7, %v4598_v28  ;;  %v8148_v59 = vpop.permute.xlu0 %2132  ;;  %v2662_v42 = vsel %vm2624_vm1, %v2488_v14, %v9684_v45  ;;  %v9687_v24 = vld [vmem:[#allocation40_spill] sm:$0xff]  ;;  %v5324_v23 = vld [vmem:[%s5431_s22 + $0x1c0] sm:$0xf] }
 0x36f   : > { %2154 = vrot.lane.b32.xlu1 %v2012_v3, %s5377_s5  ;;  %v9699_v12 = vld [vmem:[#allocation198_spill] sm:$0xff] }
 0x370   : > { %2421 = vrot.lane.b32.xlu0 %v2012_v3, %s5379_s11  ;;  %v5321_v3 = vld [vmem:[%s5431_s22 + $0x1b0] sm:$0xf] }
 0x371   : > { %v2198_v13 = vpop.permute.xlu1 %2197  ;;  %v2578_v28 = vsel %vm2431_vm0, %v5321_v3, %v9673_v34  ;;  %v9688_v3 = vld [vmem:[#allocation144_spill] sm:$0xff] }
 0x372   : > { %v8154_v11 = vpop.permute.xlu0 %2136  ;;  %v2722_v55 = vsel %vm2624_vm1, %v2578_v28, %v9675_v1  ;;  %v9689_v34 = vld [vmem:[#allocation20_spill] sm:$0xff] }
 0x373   : > { %2096 = vrot.lane.b32.xlu1 %v9656_v56, %s5377_s5  ;;  %v2851_v9 = vsel %vm2753_vm2, %v2722_v55, %v9677_v20  ;;  %v9690_v28 = vld [vmem:[#allocation288_spill] sm:$0xff] }
 0x374   : > { %2156 = vrot.lane.b32.xlu0 %v8152_v38, %s5377_s5  ;;  %v9693_v1 = vld [vmem:[#allocation44_spill] sm:$0xff] }
 0x375   : > { %v8164_v26 = vpop.permute.xlu1 %2261 }
 0x376   : > { %v2200_v40 = vpop.permute.xlu0 %2199 }
 0x377   : > { %2160 = vrot.lane.b32.xlu1 %v8158_v7, %s5377_s5 }
 0x378   : > { %2158 = vrot.lane.b32.xlu0 %v8162_v5, %s5377_s5 }
 0x379   : > { %v8170_v37 = vpop.permute.xlu1 %2201 }
 0x37a   : > { %v2264_v8 = vpop.permute.xlu0 %2263 }
 0x37b   : > { %2223 = vrot.lane.b32.xlu1 %v9657_v16, %s5378_s6  ;;  %v2853_v16 = vsel %vm2753_vm2, %v2724_v0, %v9676_v58  ;;  %v9694_v58 = vld [vmem:[#allocation95_spill] sm:$0xff] }
 0x37c   : > { %2221 = vrot.lane.b32.xlu0 %v9658_v48, %s5378_s6  ;;  %v3174_v48 = vsel %vm3140_vm5, %v3045_v22, %v2198_v13  ;;  %v2982_v13 = vsel %vm2882_vm3, %v2853_v16, %v9679_v43  ;;  %v9692_v22 = vld [vmem:[#allocation50_spill] sm:$0xff]  ;;  %v2297_v43 = vshrl.u32 %v4573_v52, 16 }
 0x37d   : > { %v8176_v19 = vpop.permute.xlu1 %2265 }
 0x37e   : > { %v8178_v62 = vpop.permute.xlu0 %2203 }
 0x37f   : > { %2287 = vrot.lane.b32.xlu1 %v9659_v4, %s5378_s6  ;;  %v3176_v4 = vsel %vm3140_vm5, %v3047_v17, %v2200_v40  ;;  %v2980_v40 = vsel %vm2882_vm3, %v2851_v9, %v9680_v41  ;;  %v9691_v17 = vld [vmem:[#allocation37_spill] sm:$0xff]  ;;  %v9696_v9 = vld [vmem:[#allocation47_spill] sm:$0xff] }
 0x380   : > { %2285 = vrot.lane.b32.xlu0 %v9660_v53, %s5378_s6  ;;  %v3109_v63 = vsel %vm3011_vm4, %v2980_v40, %v8132_v54  ;;  %v2791_v54 = vsel %vm2753_vm2, %v2662_v42, %v9686_v18  ;;  %v9697_v41 = vld [vmem:[#allocation303_spill] sm:$0xff]  ;;  %v5326_v18 = vld [vmem:[%s5431_s22 + $0xb0] sm:$0xf] }
 0x381   : > { %v2336_v15 = vpop.permute.xlu1 %2335  ;;  %v3238_v39 = vsel %vm3140_vm5, %v3109_v63, %v8164_v26  ;;  %v2584_v26 = vsel %vm2431_vm0, %v5324_v23, %v9688_v3  ;;  %v2920_v25 = vsel %vm2882_vm3, %v2791_v54, %v9690_v28 }
 0x382   : > { %v8195_v49 = vpop.permute.xlu0 %2267  ;;  %v3303_v32 = vsel %vm3269_vm6, %v3174_v48, %v2336_v15  ;;  %v5323_v15 = vld [vmem:[%s5431_s22 + $0x1c8] sm:$0xf]  ;;  %v2726_v55 = vsel %vm2624_vm1, %v2584_v26, %v9693_v1  ;;  %v3049_v48 = vsel %vm3011_vm4, %v2920_v25, %v7379_v2  ;;  %v9704_v26 = vld [vmem:[#allocation234_spill] sm:$0xff]  ;;  %v9706_v25 = vld [vmem:[#allocation21_spill] sm:$0xff] }
 0x383   : > { %2227 = vrot.lane.b32.xlu1 %v9667_v36, %s5378_s6  ;;  %v2587_v21 = vsel %vm2431_vm0, %v5323_v15, %v9682_v61  ;;  %v3111_v36 = vsel %vm3011_vm4, %v2982_v13, %v8148_v59  ;;  %v9708_v1 = vld [vmem:[#allocation146_spill] sm:$0xff] }
 0x384   : > { %2225 = vrot.lane.b32.xlu0 %v9672_v51, %s5378_s6  ;;  %v3240_v44 = vsel %vm3140_vm5, %v3111_v36, %v2264_v8  ;;  %v2299_v51 = vshll.u32 %v4573_v52, 16  ;;  %v2922_v8 = vsel %vm2882_vm3, %v2793_v57, %v9689_v34 }
 0x385   : > { %v2400_v35 = vpop.permute.xlu1 %2399  ;;  %v3051_v16 = vsel %vm3011_vm4, %v2922_v8, %v9694_v58  ;;  %v9705_v8 = vld [vmem:[#allocation235_spill] sm:$0xff]  ;;  %v5328_v58 = vld [vmem:[%s5431_s22 + $0x1d0] sm:$0xf] }
 0x386   : > { %v2338_v53 = vpop.permute.xlu0 %2337  ;;  %v3367_v59 = vsel %vm3269_vm6, %v3238_v39, %v2400_v35  ;;  %v2728_v35 = vsel %vm2624_vm1, %v2587_v21, %v9692_v22  ;;  %v3180_v6 = vsel %vm3140_vm5, %v3051_v16, %v8178_v62  ;;  %v2301_v13 = vrot.slane %v2299_v51, 1  ;;  %v5325_v39 = vld [vmem:[%s5431_s22 + $0xb8] sm:$0xf]  ;;  %v9703_v51 = vld [vmem:[#allocation174_spill] sm:$0xff]  ;;  %v9709_v16 = vld [vmem:[#allocation147_spill] sm:$0xff] }
 0x387   : > { %v3305_v60 = vsel %vm3269_vm6, %v3176_v4, %v2338_v53  ;;  %2291 = vrot.lane.b32.xlu1 %v4572_v31, %s5378_s6  ;;  %v9695_v53 = vld [vmem:[#allocation46_spill] sm:$0xff] }
 0x388   : > { %v4583_v46 = vcombine.low %v3303_v32, %v3305_v60  ;;  %2289 = vrot.lane.b32.xlu0 %v9681_v50, %s5378_s6  ;;  %v2857_v20 = vsel %vm2753_vm2, %v2728_v35, %v9695_v53  ;;  %v2855_v32 = vsel %vm2753_vm2, %v2726_v55, %v9696_v9  ;;  %v3178_v60 = vsel %vm3140_vm5, %v3049_v48, %v8170_v37  ;;  %v5327_v35 = vld [vmem:[%s5431_s22 + $0x1d8] sm:$0xf] }
 0x389   : > { %v2340_v31 = vpop.permute.xlu1 %2339  ;;  %v2986_v40 = vsel %vm2882_vm3, %v2857_v20, %v9697_v41  ;;  %v2593_v55 = vsel %vm2431_vm0, %v5327_v35, %v9708_v1  ;;  %v2590_v48 = vsel %vm2431_vm0, %v5328_v58, %v9709_v16  ;;  %v9711_v20 = vld [vmem:[#allocation172_spill] sm:$0xff]  ;;  %v9714_v41 = vld [vmem:[#allocation49_spill] sm:$0xff] }
 0x38a   : > { %5019 = vmatprep.mubr.msk.bf16.mxu0 %vm3581_vm7, %v4583_v46  ;;  %v2402_v30 = vpop.permute.xlu0 %2401  ;;  %v3307_v14 = vsel %vm3269_vm6, %v3178_v60, %v2340_v31  ;;  %v9698_v46 = vld [vmem:[#allocation304_spill] sm:$0xff]  ;;  %v3115_v15 = vsel %vm3011_vm4, %v2986_v40, %v8154_v11  ;;  %v9712_v60 = vld [vmem:[#allocation206_spill] sm:$0xff]  ;;  %v9726_v35 = vld [vmem:[#allocation237_spill] sm:$0xff] }
 0x38b   : > { %v3369_v27 = vsel %vm3269_vm6, %v3240_v44, %v2402_v30  ;;  %2361 = vrot.lane.b32.xlu1 %v9687_v24, %s5379_s11  ;;  %v2984_v37 = vsel %vm2882_vm3, %v2855_v32, %v9698_v46  ;;  %v3244_v52 = vsel %vm3140_vm5, %v3115_v15, %v8195_v49  ;;  %v9700_v44 = vld [vmem:[#allocation96_spill] sm:$0xff]  ;;  %v9715_v46 = vld [vmem:[#allocation51_spill] sm:$0xff]  ;;  %v9716_v15 = vld [vmem:[#allocation305_spill] sm:$0xff] }
 0x38c   : > { %v4599_v0 = vcombine.low %v3367_v59, %v3369_v27  ;;  %2359 = vrot.lane.b32.xlu0 %v9691_v17, %s5379_s11  ;;  %v3113_v62 = vsel %vm3011_vm4, %v2984_v37, %v8145_v29  ;;  %v2302_v29 = vor.u32 %v2301_v13, %v2297_v43  ;;  %v2497_v30 = vsel %vm2431_vm0, %v5325_v39, %v9700_v44  ;;  %v9702_v27 = vld [vmem:[#allocation173_spill] sm:$0xff]  ;;  %v9707_v17 = vld [vmem:[#allocation22_spill] sm:$0xff] }
 0x38d   : > { %v2404_v4 = vpop.permute.xlu1 %2403  ;;  %v2668_v24 = vsel %vm2624_vm1, %v2497_v30, %v9702_v27  ;;  %v9721_v27 = vld [vmem:[#allocation148_spill] sm:$0xff] }
 0x38e   : > { %5051 = vmatprep.mubr.msk.bf16.mxu1 %vm3581_vm7, %v4599_v0  ;;  %v2342_v10 = vpop.permute.xlu0 %2341  ;;  %v2797_v34 = vsel %vm2753_vm2, %v2668_v24, %v9704_v26 }
 0x38f   : > { %v3309_v2 = vsel %vm3269_vm6, %v3180_v6, %v2342_v10  ;;  %2425 = vrot.lane.b32.xlu1 %v8162_v5, %s5379_s11  ;;  %v3242_v5 = vsel %vm3140_vm5, %v3113_v62, %v8176_v19  ;;  %v2926_v0 = vsel %vm2882_vm3, %v2797_v34, %v9706_v25  ;;  %v2732_v6 = vsel %vm2624_vm1, %v2593_v55, %v9712_v60  ;;  %v9713_v10 = vld [vmem:[#allocation207_spill] sm:$0xff]  ;;  %v8411_v55 = vld [vmem:[%s8816_s3] ss:$0 sm:$0xff] }
 0x390   : > { %v4584_v50 = vcombine.low %v3307_v14, %v3309_v2  ;;  %2423 = vrot.lane.b32.xlu0 %v8152_v38, %s5379_s11  ;;  %v3371_v33 = vsel %vm3269_vm6, %v3242_v5, %v2404_v4  ;;  %v9710_v4 = vld [vmem:[#allocation145_spill] sm:$0xff]  ;;  %v2730_v14 = vsel %vm2624_vm1, %v2590_v48, %v9713_v10  ;;  %v2861_v40 = vsel %vm2753_vm2, %v2732_v6, %v9714_v41  ;;  %v9727_v48 = vld [vmem:[#allocation208_spill] sm:$0xff]  ;;  %v9730_v60 = vld [vmem:[#allocation290_spill] sm:$0xff] }
 0x391   : > { %v2139_v61 = vpop.permute.xlu1 %2138  ;;  %v3055_v53 = vsel %vm3011_vm4, %v2926_v0, %v9710_v4  ;;  %v2859_v37 = vsel %vm2753_vm2, %v2730_v14, %v9715_v46  ;;  %v2990_v5 = vsel %vm2882_vm3, %v2861_v40, %v9716_v15  ;;  %v9731_v14 = vld [vmem:[#allocation54_spill] sm:$0xff]  ;;  %v9734_v46 = vld [vmem:[#allocation205_spill] sm:$0xff] }
 0x392   : > { %5020 = vmatmul.mubr.msk.bf16.gmra.mxu0 %vm3581_vm7, %v4584_v50  ;;  %v2406_v21 = vpop.permute.xlu0 %2405  ;;  %v9733_v41 = vld [vmem:[#allocation58_spill] sm:$0xff] }
 0x393   : > { %v3373_v38 = vsel %vm3269_vm6, %v3244_v52, %v2406_v21  ;;  %2365 = vrot.lane.b32.xlu1 %v9699_v12, %s5379_s11  ;;  %v9717_v52 = vld [vmem:[#allocation306_spill] sm:$0xff] }
 0x394   : > { %v4600_v11 = vcombine.low %v3371_v33, %v3373_v38  ;;  %2363 = vrot.lane.b32.xlu0 %v9656_v56, %s5379_s11  ;;  %v2988_v21 = vsel %vm2882_vm3, %v2859_v37, %v9717_v52  ;;  %v5329_v38 = vld [vmem:[%s5431_s22 + $0xc8] sm:$0xf]  ;;  %v9718_v12 = vld [vmem:[#allocation98_spill] sm:$0xff] }
 0x395   : > { %v8319_v19 = vpop.permute.xlu1 %2142  ;;  %v3117_v39 = vsel %vm3011_vm4, %v2988_v21, %v2139_v61  ;;  %v9722_v61 = vld [vmem:[#allocation175_spill] sm:$0xff] }
 0x396   : > { %5052 = vmatmul.mubr.msk.bf16.gmra.mxu1 %vm3581_vm7, %v4600_v11  ;;  %v2141_v49 = vpop.permute.xlu0 %2140  ;;  %v5330_v11 = vld [vmem:[%s5431_s22 + $0xc0] sm:$0xf] }
 0x397   : > { %2429 = vrot.lane.b32.xlu1 %v2302_v29, %s5379_s11  ;;  %v2503_v29 = vsel %vm2431_vm0, %v5329_v38, %v9718_v12  ;;  %v3119_v44 = vsel %vm3011_vm4, %v2990_v5, %v2141_v49  ;;  %v9735_v38 = vld [vmem:[#allocation307_spill] sm:$0xff] }
 0x398   : > { %2427 = vrot.lane.b32.xlu0 %v8158_v7, %s5379_s11  ;;  %v9701_v7 = vld [vmem:[#allocation97_spill] sm:$0xff]  ;;  %v2672_v49 = vsel %vm2624_vm1, %v2503_v29, %v9722_v61 }
 0x399   : > { %v2206_v63 = vpop.permute.xlu1 %2205  ;;  %v2494_v54 = vsel %vm2431_vm0, %v5326_v18, %v9701_v7  ;;  %v5331_v18 = vld [vmem:[%s5431_s22 + $0x1e8] sm:$0xf] }
 0x39a   : > { %v8325_v36 = vpop.permute.xlu0 %2144  ;;  %v2666_v23 = vsel %vm2624_vm1, %v2494_v54, %v9703_v51  ;;  %v9720_v7 = vld [vmem:[#allocation43_spill] sm:$0xff] }
 0x39b   : > { %v2795_v28 = vsel %vm2753_vm2, %v2666_v23, %v9705_v8  ;;  %v2599_v54 = vsel %vm2431_vm0, %v5331_v18, %v9720_v7  ;;  %v9723_v8 = vld [vmem:[#allocation176_spill] sm:$0xff] }
 0x39c   : > { %v2924_v22 = vsel %vm2882_vm3, %v2795_v28, %v9707_v17  ;;  %v9724_v17 = vld [vmem:[#allocation209_spill] sm:$0xff]  ;;  %v2736_v4 = vsel %vm2624_vm1, %v2599_v54, %v9727_v48  ;;  %v5333_v48 = vld [vmem:[%s5431_s22 + $0xe0] sm:$0xf] }
 0x39d   : > { %v2270_v31 = vpop.permute.xlu1 %2269  ;;  %v3053_v9 = vsel %vm3011_vm4, %v2924_v22, %v9711_v20  ;;  %v9725_v22 = vld [vmem:[#allocation236_spill] sm:$0xff] }
 0x39e   : > { %v2208_v45 = vpop.permute.xlu0 %2207  ;;  %v3182_v2 = vsel %vm3140_vm5, %v3053_v9, %v2206_v63  ;;  %v9719_v63 = vld [vmem:[#allocation99_spill] sm:$0xff]  ;;  %v3246_v51 = vsel %vm3140_vm5, %v3117_v39, %v2270_v31  ;;  %v9729_v9 = vld [vmem:[#allocation289_spill] sm:$0xff] }
 0x39f   : > { %v3184_v43 = vsel %vm3140_vm5, %v3055_v53, %v2208_v45  ;;  %v2500_v45 = vsel %vm2431_vm0, %v5330_v11, %v9719_v63  ;;  %v9728_v53 = vld [vmem:[#allocation55_spill] sm:$0xff] }
 0x3a0   : > { %v2670_v28 = vsel %vm2624_vm1, %v2500_v45, %v9723_v8 }
 0x3a1   : > { %v8327_v42 = vpop.permute.xlu1 %2209  ;;  %v2799_v1 = vsel %vm2753_vm2, %v2670_v28, %v9726_v35 }
 0x3a2   : > { %v2272_v56 = vpop.permute.xlu0 %2271  ;;  %v2928_v6 = vsel %vm2882_vm3, %v2799_v1, %v9730_v60  ;;  %v9738_v60 = vld [vmem:[#allocation177_spill] sm:$0xff] }
 0x3a3   : > { %v3248_v23 = vsel %vm3140_vm5, %v3119_v44, %v2272_v56  ;;  %v2801_v56 = vsel %vm2753_vm2, %v2672_v49, %v9725_v22  ;;  %v3057_v37 = vsel %vm3011_vm4, %v2928_v6, %v9734_v46 }
 0x3a4   : > { %v3186_v15 = vsel %vm3140_vm5, %v3057_v37, %v8327_v42  ;;  %v9742_v37 = vld [vmem:[#allocation239_spill] sm:$0xff] }
 0x3a5   : > { %v8329_v47 = vpop.permute.xlu1 %2273 }
 0x3a6   : > { %v8331_v57 = vpop.permute.xlu0 %2211 }
 0x3a9   : > { %v2344_v59 = vpop.permute.xlu1 %2343 }
 0x3aa   : > { %v8343_v3 = vpop.permute.xlu0 %2275  ;;  %v3311_v50 = vsel %vm3269_vm6, %v3182_v2, %v2344_v59  ;;  %v5332_v59 = vld [vmem:[%s5431_s22 + $0x1e0] sm:$0xf]  ;;  %v2865_v2 = vsel %vm2753_vm2, %v2736_v4, %v9731_v14  ;;  %v9736_v4 = vld [vmem:[#allocation100_spill] sm:$0xff] }
 0x3ab   : > { %v2596_v24 = vsel %vm2431_vm0, %v5332_v59, %v9721_v27  ;;  %v2994_v12 = vsel %vm2882_vm3, %v2865_v2, %v9735_v38  ;;  %v9745_v38 = vld [vmem:[#allocation26_spill] sm:$0xff] }
 0x3ac   : > { %v2734_v31 = vsel %vm2624_vm1, %v2596_v24, %v9724_v17 }
 0x3ad   : > { %v2408_v32 = vpop.permute.xlu1 %2407  ;;  %v2863_v20 = vsel %vm2753_vm2, %v2734_v31, %v9728_v53  ;;  %v2509_v53 = vsel %vm2431_vm0, %v5333_v48, %v9736_v4  ;;  %v5340_v4 = vld [vmem:[%s5431_s22 + $0x208] sm:$0xf] }
 0x3ae   : > { %v2346_v13 = vpop.permute.xlu0 %2345  ;;  %v3375_v25 = vsel %vm3269_vm6, %v3246_v51, %v2408_v32  ;;  %v2930_v32 = vsel %vm2882_vm3, %v2801_v56, %v9729_v9  ;;  %v9737_v9 = vld [vmem:[#allocation101_spill] sm:$0xff]  ;;  %v2676_v6 = vsel %vm2624_vm1, %v2509_v53, %v9738_v60  ;;  %v9755_v53 = vld [vmem:[#allocation152_spill] sm:$0xff] }
 0x3af   : > { %v3313_v62 = vsel %vm3269_vm6, %v3184_v43, %v2346_v13  ;;  %v9732_v43 = vld [vmem:[#allocation308_spill] sm:$0xff]  ;;  %v3059_v40 = vsel %vm3011_vm4, %v2930_v32, %v9733_v41 }
 0x3b0   : > { %v4585_v33 = vcombine.low %v3311_v50, %v3313_v62  ;;  %v2992_v13 = vsel %vm2882_vm3, %v2863_v20, %v9732_v43  ;;  %v3188_v5 = vsel %vm3140_vm5, %v3059_v40, %v8331_v57  ;;  %v5334_v20 = vld [vmem:[%s5431_s22 + $0xd8] sm:$0xf]  ;;  %v5335_v43 = vld [vmem:[%s5431_s22 + $0xf0] sm:$0xf]  ;;  %v9741_v40 = vld [vmem:[#allocation238_spill] sm:$0xff] }
 0x3b1   : > { %v2348_v30 = vpop.permute.xlu1 %2347  ;;  %v3121_v29 = vsel %vm3011_vm4, %v2992_v13, %v8319_v19  ;;  %v2506_v32 = vsel %vm2431_vm0, %v5334_v20, %v9737_v9  ;;  %v9740_v13 = vld [vmem:[#allocation102_spill] sm:$0xff]  ;;  %v2805_v46 = vsel %vm2753_vm2, %v2676_v6, %v9741_v40  ;;  %v2608_v20 = vsel %vm2431_vm0, %v5340_v4, %v9755_v53  ;;  %v9756_v9 = vld [vmem:[#allocation309_spill] sm:$0xff] }
 0x3b2   : > { %v5005_v26 = vpop.f32.mrf.mxu0  ;;  %5023 = vmatprep.mubr.msk.bf16.mxu0 %vm3581_vm7, %v4585_v33  ;;  %v2410_v34 = vpop.permute.xlu0 %2409  ;;  %v3315_v11 = vsel %vm3269_vm6, %v3186_v15, %v2348_v30  ;;  %v3123_v30 = vsel %vm3011_vm4, %v2994_v12, %v8325_v36  ;;  %v3250_v7 = vsel %vm3140_vm5, %v3121_v29, %v8329_v47  ;;  %v2515_v41 = vsel %vm2431_vm0, %v5335_v43, %v9740_v13  ;;  %v9743_v15 = vld [vmem:[#allocation103_spill] sm:$0xff] }
 0x3b3   : > { %v3377_v0 = vsel %vm3269_vm6, %v3248_v23, %v2410_v34  ;;  %v3721_v52 = vadd.f32 %v5005_v26, %v8411_v55  ;;  %v3252_v59 = vsel %vm3140_vm5, %v3123_v30, %v8343_v3  ;;  %v2934_v12 = vsel %vm2882_vm3, %v2805_v46, %v9745_v38  ;;  %v9746_v29 = vld [vmem:[#allocation291_spill] sm:$0xff]  ;;  %v9749_v30 = vld [vmem:[#allocation60_spill] sm:$0xff] }
 0x3b4   : > { %v4601_v58 = vcombine.low %v3375_v25, %v3377_v0  ;;  %v3712_v16 = vpop.f32.mrf.mxu0  ;;  %v9759_v43 = vld [vmem:[#allocation179_spill] sm:$0xff] }
 0x3b5   : > { %v2412_v10 = vpop.permute.xlu1 %2411  ;;  %v3713_v45 = vadd.f32 %v8411_v55, %v3712_v16 }
 0x3b6   : > { %v5006_v50 = vpop.f32.mrf.mxu0  ;;  %v5037_v62 = vpop.f32.mrf.mxu1  ;;  %5055 = vmatprep.mubr.msk.bf16.mxu1 %vm3581_vm7, %v4601_v58  ;;  %v3379_v36 = vsel %vm3269_vm6, %v3250_v7, %v2412_v10  ;;  %v9739_v10 = vld [vmem:[#allocation178_spill] sm:$0xff]  ;;  %v3063_v7 = vsel %vm3011_vm4, %v2934_v12, %v9749_v30 }
 0x3b7   : > { %v3724_v21 = vadd.f32 %v5006_v50, %v8411_v55  ;;  %v2350_v33 = vpop.permute.xlu0 %2349  ;;  %v3849_v27 = vadd.f32 %v5037_v62, %v8411_v55  ;;  %v2674_v14 = vsel %vm2624_vm1, %v2506_v32, %v9739_v10  ;;  %v5336_v62 = vld [vmem:[%s5431_s22 + $0xe8] sm:$0xf]  ;;  %v9757_v32 = vld [vmem:[#allocation310_spill] sm:$0xff] }
 0x3b8   : > { %v3317_v42 = vsel %vm3269_vm6, %v3188_v5, %v2350_v33  ;;  %v3715_v57 = vpop.f32.mrf.mxu0  ;;  %v3840_v63 = vpop.f32.mrf.mxu1  ;;  %v2803_v50 = vsel %vm2753_vm2, %v2674_v14, %v9742_v37  ;;  %v2512_v5 = vsel %vm2431_vm0, %v5336_v62, %v9743_v15  ;;  %v9758_v10 = vld [vmem:[#allocation19_spill] sm:$0xff]  ;;  %v9760_v37 = vld [vmem:[#allocation64_spill] sm:$0xff] }
 0x3b9   : > { %v4782_v39 = vpack.c.bf16 %v3724_v21, %v3721_v52  ;;  %v4586_v44 = vcombine.low %v3315_v11, %v3317_v42  ;;  %v3716_v18 = vadd.f32 %v8411_v55, %v3715_v57  ;;  %v8450_v19 = vpop.permute.xlu1 %2146  ;;  %v3841_v34 = vadd.f32 %v8411_v55, %v3840_v63  ;;  %v5337_v52 = vld [vmem:[%s5431_s22 + $0x200] sm:$0xf]  ;;  %v9744_v21 = vld [vmem:[#allocation149_spill] sm:$0xff]  ;;  %v9761_v62 = vld [vmem:[#allocation59_spill] sm:$0xff] }
 0x3ba   : > { %v5038_v54 = vpop.f32.mrf.mxu1  ;;  %v2605_v33 = vsel %vm2431_vm0, %v5337_v52, %v9744_v21  ;;  %v2932_v11 = vsel %vm2882_vm3, %v2803_v50, %v9746_v29  ;;  %v5338_v57 = vld [vmem:[%s5431_s22 + $0x1f8] sm:$0xf]  ;;  %v9747_v63 = vld [vmem:[#allocation150_spill] sm:$0xff]  ;;  %v2680_v14 = vsel %vm2624_vm1, %v2515_v41, %v9758_v10  ;;  %v2742_v15 = vsel %vm2624_vm1, %v2608_v20, %v9761_v62 }
 0x3bb   : > { %4934 = vst [vmem:[%s8445_s20 + $0x8] sm:$0xff] %v4782_v39   ;;  %v4777_v24 = vpack.c.bf16 %v3716_v18, %v3713_v45  ;;  %5024 = vmatmul.mubr.msk.bf16.gmra.mxu0 %vm3581_vm7, %v4586_v44  ;;  %v3852_v51 = vadd.f32 %v5038_v54, %v8411_v55  ;;  %v2414_v23 = vpop.permute.xlu0 %2413  ;;  %v2602_v45 = vsel %vm2431_vm0, %v5338_v57, %v9747_v63  ;;  %v5339_v39 = vld [vmem:[%s5431_s22 + $0x210] sm:$0xf]  ;;  %v9748_v44 = vld [vmem:[#allocation151_spill] sm:$0xff]  ;;  %v9766_v63 = vld [vmem:[#allocation293_spill] sm:$0xff] }
 0x3bc   : > { %v3381_v26 = vsel %vm3269_vm6, %v3252_v59, %v2414_v23  ;;  %v3843_v47 = vpop.f32.mrf.mxu1  ;;  %v2611_v18 = vsel %vm2431_vm0, %v5339_v39, %v9748_v44  ;;  %v9750_v54 = vld [vmem:[#allocation56_spill] sm:$0xff] }
 0x3bd   : > { %4778 = vst [vmem:[%s8445_s20] sm:$0xff] %v4777_v24   ;;  %v4862_v3 = vpack.c.bf16 %v3852_v51, %v3849_v27  ;;  %v4602_v61 = vcombine.low %v3379_v36, %v3381_v26  ;;  %v3844_v49 = vadd.f32 %v8411_v55, %v3843_v47  ;;  %v8467_v8 = vpop.permute.xlu1 %2150  ;;  %v3061_v59 = vsel %vm3011_vm4, %v2932_v11, %v9750_v54  ;;  %v9751_v27 = vld [vmem:[#allocation210_spill] sm:$0xff]  ;;  %v9752_v51 = vld [vmem:[#allocation211_spill] sm:$0xff]  ;;  %v9764_v11 = vld [vmem:[#allocation265_spill] sm:$0xff] }
 0x3be   : > { %v2740_v24 = vsel %vm2624_vm1, %v2605_v33, %v9751_v27  ;;  %v2738_v23 = vsel %vm2624_vm1, %v2602_v45, %v9752_v51  ;;  %v2744_v50 = vsel %vm2624_vm1, %v2611_v18, %v9760_v37  ;;  %v2871_v57 = vsel %vm2753_vm2, %v2742_v15, %v9764_v11  ;;  %v9767_v18 = vld [vmem:[#allocation264_spill] sm:$0xff]  ;;  %v9769_v54 = vld [vmem:[#allocation314_spill] sm:$0xff]  ;;  %v9770_v27 = vld [vmem:[#allocation315_spill] sm:$0xff] }
 0x3bf   : > { %4950 = vst [vmem:[%s8445_s20 + $0x88] sm:$0xff] %v4862_v3   ;;  %v4857_v28 = vpack.c.bf16 %v3844_v49, %v3841_v34  ;;  %5056 = vmatmul.mubr.msk.bf16.gmra.mxu1 %vm3581_vm7, %v4602_v61  ;;  %v2149_v25 = vpop.permute.xlu0 %2148  ;;  %v9753_v34 = vld [vmem:[#allocation262_spill] sm:$0xff]  ;;  %v9754_v61 = vld [vmem:[#allocation263_spill] sm:$0xff]  ;;  %v2873_v30 = vsel %vm2753_vm2, %v2744_v50, %v9767_v18 }
 0x3c0   : > { %v2869_v3 = vsel %vm2753_vm2, %v2740_v24, %v9753_v34  ;;  %v2867_v49 = vsel %vm2753_vm2, %v2738_v23, %v9754_v61  ;;  %v9771_v61 = vld [vmem:[#allocation311_spill] sm:$0xff] }
 0x3c1   : > { %4949 = vst [vmem:[%s8445_s20 + $0x80] sm:$0xff] %v4857_v28   ;;  %v2214_v0 = vpop.permute.xlu1 %2213 }
 0x3c2   : > { %v3190_v36 = vsel %vm3140_vm5, %v3061_v59, %v2214_v0  ;;  %v2998_v0 = vsel %vm2882_vm3, %v2869_v3, %v9756_v9 }
 0x3c3   : > { %v8472_v17 = vpop.permute.xlu0 %2152  ;;  %v3127_v40 = vsel %vm3011_vm4, %v2998_v0, %v2149_v25 }
 0x3c5   : > { %v2278_v31 = vpop.permute.xlu1 %2277 }
 0x3c7   : > { %v2216_v22 = vpop.permute.xlu0 %2215 }
 0x3c8   : > { %v3192_v26 = vsel %vm3140_vm5, %v3063_v7, %v2216_v22  ;;  %v2996_v22 = vsel %vm2882_vm3, %v2867_v49, %v9757_v32  ;;  %v9768_v7 = vld [vmem:[#allocation312_spill] sm:$0xff]  ;;  %v3002_v49 = vsel %vm2882_vm3, %v2873_v30, %v9771_v61  ;;  %v9776_v30 = vld [vmem:[#allocation182_spill] sm:$0xff] }
 0x3c9   : > { %v8474_v56 = vpop.permute.xlu1 %2217  ;;  %v3125_v13 = vsel %vm3011_vm4, %v2996_v22, %v8450_v19  ;;  %v9763_v19 = vld [vmem:[#allocation241_spill] sm:$0xff]  ;;  %v3131_v22 = vsel %vm3011_vm4, %v3002_v49, %v8472_v17  ;;  %v9782_v49 = vld [vmem:[#allocation63_spill] sm:$0xff] }
 0x3ca   : > { %v3254_v52 = vsel %vm3140_vm5, %v3125_v13, %v2278_v31  ;;  %v9765_v31 = vld [vmem:[#allocation292_spill] sm:$0xff] }
 0x3cb   : > { %v2280_v35 = vpop.permute.xlu0 %2279 }
 0x3cc   : > { %v3256_v21 = vsel %vm3140_vm5, %v3127_v40, %v2280_v35 }
 0x3cd   : > { %v8476_v1 = vpop.permute.xlu1 %2281 }
 0x3cf   : > { %v8478_v58 = vpop.permute.xlu0 %2219 }
 0x3d1   : > { %v2352_v16 = vpop.permute.xlu1 %2351 }
 0x3d2   : > { %v3319_v28 = vsel %vm3269_vm6, %v3190_v36, %v2352_v16  ;;  %v2678_v16 = vsel %vm2624_vm1, %v2512_v5, %v9759_v43  ;;  %v9762_v5 = vld [vmem:[#allocation240_spill] sm:$0xff] }
 0x3d3   : > { %v8490_v2 = vpop.permute.xlu0 %2283  ;;  %v2809_v33 = vsel %vm2753_vm2, %v2680_v14, %v9762_v5  ;;  %v2807_v25 = vsel %vm2753_vm2, %v2678_v16, %v9763_v19 }
 0x3d4   : > { %v2938_v35 = vsel %vm2882_vm3, %v2809_v33, %v9765_v31  ;;  %v2936_v45 = vsel %vm2882_vm3, %v2807_v25, %v9766_v63  ;;  %v5342_v63 = vld [vmem:[%s5431_s22 + $0xf8] sm:$0xf] }
 0x3d5   : > { %v2416_v42 = vpop.permute.xlu1 %2415  ;;  %v3067_v59 = vsel %vm3011_vm4, %v2938_v35, %v9769_v54  ;;  %v3065_v24 = vsel %vm3011_vm4, %v2936_v45, %v9770_v27  ;;  %v9774_v45 = vld [vmem:[#allocation106_spill] sm:$0xff] }
 0x3d6   : > { %v3383_v38 = vsel %vm3269_vm6, %v3254_v52, %v2416_v42  ;;  %v3000_v42 = vsel %vm2882_vm3, %v2871_v57, %v9768_v7  ;;  %v3194_v36 = vsel %vm3140_vm5, %v3065_v24, %v8474_v56  ;;  %v9773_v57 = vld [vmem:[#allocation181_spill] sm:$0xff]  ;;  %v5343_v27 = vld [vmem:[%s5431_s22 + $0x220] sm:$0xf] }
 0x3d7   : > { %v2354_v47 = vpop.permute.xlu0 %2353  ;;  %v9778_v24 = vld [vmem:[#allocation154_spill] sm:$0xff] }
 0x3d8   : > { %v3321_v48 = vsel %vm3269_vm6, %v3192_v26, %v2354_v47  ;;  %v3196_v26 = vsel %vm3140_vm5, %v3067_v59, %v8478_v58 }
 0x3d9   : > { %v4587_v60 = vcombine.low %v3319_v28, %v3321_v48  ;;  %v2356_v6 = vpop.permute.xlu1 %2355  ;;  %v3129_v28 = vsel %vm3011_vm4, %v3000_v42, %v8467_v8  ;;  %v9777_v42 = vld [vmem:[#allocation294_spill] sm:$0xff] }
 0x3da   : > { %v5009_v46 = vpop.f32.mrf.mxu0  ;;  %v3323_v48 = vsel %vm3269_vm6, %v3194_v36, %v2356_v6  ;;  %v3258_v8 = vsel %vm3140_vm5, %v3129_v28, %v8476_v1  ;;  %v3260_v6 = vsel %vm3140_vm5, %v3131_v22, %v8490_v2 }
 0x3db   : > { %5027 = vmatprep.mubr.msk.bf16.mxu0 %vm3581_vm7, %v4587_v60  ;;  %v2418_v41 = vpop.permute.xlu0 %2417  ;;  %v3737_v47 = vadd.f32 %v5009_v46, %v8411_v55 }
 0x3dc   : > { %v3385_v12 = vsel %vm3269_vm6, %v3256_v21, %v2418_v41  ;;  %v3728_v29 = vpop.f32.mrf.mxu0 }
 0x3dd   : > { %v4603_v39 = vcombine.low %v3383_v38, %v3385_v12  ;;  %v2420_v44 = vpop.permute.xlu1 %2419  ;;  %v3729_v53 = vadd.f32 %v8411_v55, %v3728_v29  ;;  %v5341_v12 = vld [vmem:[%s5431_s22 + $0x100] sm:$0xf]  ;;  %v9772_v29 = vld [vmem:[#allocation105_spill] sm:$0xff] }
 0x3de   : > { %v5010_v51 = vpop.f32.mrf.mxu0  ;;  %v5041_v23 = vpop.f32.mrf.mxu1  ;;  %v3387_v17 = vsel %vm3269_vm6, %v3258_v8, %v2420_v44  ;;  %v2521_v11 = vsel %vm2431_vm0, %v5341_v12, %v9772_v29  ;;  %v9775_v44 = vld [vmem:[#allocation242_spill] sm:$0xff]  ;;  %v9786_v8 = vld [vmem:[#allocation317_spill] sm:$0xff] }
 0x3df   : > { %v3740_v34 = vadd.f32 %v5010_v51, %v8411_v55  ;;  %5059 = vmatprep.mubr.msk.bf16.mxu1 %vm3581_vm7, %v4603_v39  ;;  %v2358_v3 = vpop.permute.xlu0 %2357  ;;  %v3865_v10 = vadd.f32 %v5041_v23, %v8411_v55  ;;  %v2684_v31 = vsel %vm2624_vm1, %v2521_v11, %v9773_v57  ;;  %v2518_v39 = vsel %vm2431_vm0, %v5342_v63, %v9774_v45  ;;  %v9779_v23 = vld [vmem:[#allocation243_spill] sm:$0xff]  ;;  %v9793_v63 = vld [vmem:[#allocation48_spill] sm:$0xff] }
 0x3e0   : > { %v3325_v56 = vsel %vm3269_vm6, %v3196_v26, %v2358_v3  ;;  %v3731_v4 = vpop.f32.mrf.mxu0  ;;  %v3856_v58 = vpop.f32.mrf.mxu1  ;;  %v2813_v18 = vsel %vm2753_vm2, %v2684_v31, %v9775_v44  ;;  %v2682_v7 = vsel %vm2624_vm1, %v2518_v39, %v9776_v30  ;;  %v2617_v51 = vsel %vm2431_vm0, %v5343_v27, %v9778_v24  ;;  %v9780_v26 = vld [vmem:[#allocation316_spill] sm:$0xff]  ;;  %v9781_v3 = vld [vmem:[#allocation109_spill] sm:$0xff]  ;;  %v9792_v57 = vld [vmem:[#allocation183_spill] sm:$0xff] }
 0x3e1   : > { %v4792_v20 = vpack.c.bf16 %v3740_v34, %v3737_v47  ;;  %v4588_v9 = vcombine.low %v3323_v48, %v3325_v56  ;;  %v3732_v0 = vadd.f32 %v8411_v55, %v3731_v4  ;;  %v8587_v32 = vpop.permute.xlu1 %2154  ;;  %v3857_v40 = vadd.f32 %v8411_v55, %v3856_v58  ;;  %v5344_v34 = vld [vmem:[%s5431_s22 + $0x110] sm:$0xf]  ;;  %v9783_v48 = vld [vmem:[#allocation295_spill] sm:$0xff]  ;;  %v9794_v30 = vld [vmem:[#allocation157_spill] sm:$0xff] }
 0x3e2   : > { %v5042_v60 = vpop.f32.mrf.mxu1  ;;  %v2942_v54 = vsel %vm2882_vm3, %v2813_v18, %v9777_v42  ;;  %v2811_v36 = vsel %vm2753_vm2, %v2682_v7, %v9779_v23  ;;  %v2527_v61 = vsel %vm2431_vm0, %v5344_v34, %v9781_v3  ;;  %v2748_v28 = vsel %vm2624_vm1, %v2617_v51, %v9782_v49  ;;  %v5348_v18 = vld [vmem:[%s5431_s22 + $0x228] sm:$0xf]  ;;  %v9795_v42 = vld [vmem:[#allocation244_spill] sm:$0xff]  ;;  %v9800_v49 = vld [vmem:[#allocation245_spill] sm:$0xff] }
 0x3e3   : > { %4936 = vst [vmem:[%s8445_s20 + $0x18] sm:$0xff] %v4792_v20   ;;  %v4787_v14 = vpack.c.bf16 %v3732_v0, %v3729_v53  ;;  %5028 = vmatmul.mubr.msk.bf16.gmra.mxu0 %vm3581_vm7, %v4588_v9  ;;  %v3868_v43 = vadd.f32 %v5042_v60, %v8411_v55  ;;  %v2422_v16 = vpop.permute.xlu0 %2421  ;;  %v3071_v47 = vsel %vm3011_vm4, %v2942_v54, %v9780_v26  ;;  %v5345_v53 = vld [vmem:[%s5431_s22 + $0x218] sm:$0xf]  ;;  %v9784_v20 = vld [vmem:[#allocation155_spill] sm:$0xff]  ;;  %v9785_v0 = vld [vmem:[#allocation266_spill] sm:$0xff] }
 0x3e4   : > { %v3389_v13 = vsel %vm3269_vm6, %v3260_v6, %v2422_v16  ;;  %v3859_v1 = vpop.f32.mrf.mxu1  ;;  %v2940_v56 = vsel %vm2882_vm3, %v2811_v36, %v9783_v48  ;;  %v2614_v9 = vsel %vm2431_vm0, %v5345_v53, %v9784_v20  ;;  %v2877_v22 = vsel %vm2753_vm2, %v2748_v28, %v9785_v0  ;;  %v9788_v16 = vld [vmem:[#allocation213_spill] sm:$0xff]  ;;  %v9796_v51 = vld [vmem:[#allocation184_spill] sm:$0xff]  ;;  %v9797_v36 = vld [vmem:[#allocation66_spill] sm:$0xff] }
 0x3e5   : > { %4935 = vst [vmem:[%s8445_s20 + $0x10] sm:$0xff] %v4787_v14   ;;  %v4872_v2 = vpack.c.bf16 %v3868_v43, %v3865_v10  ;;  %v4604_v46 = vcombine.low %v3387_v17, %v3389_v13  ;;  %v3860_v37 = vadd.f32 %v8411_v55, %v3859_v1  ;;  %v8604_v50 = vpop.permute.xlu1 %2096  ;;  %v3069_v60 = vsel %vm3011_vm4, %v2940_v56, %v9786_v8  ;;  %v5346_v10 = vld [vmem:[%s5431_s22 + $0x108] sm:$0xf]  ;;  %v9787_v14 = vld [vmem:[#allocation110_spill] sm:$0xff]  ;;  %v9789_v13 = vld [vmem:[#allocation53_spill] sm:$0xff] }
 0x3e6   : > { %v2524_v43 = vsel %vm2431_vm0, %v5346_v10, %v9787_v14  ;;  %v2746_v17 = vsel %vm2624_vm1, %v2614_v9, %v9788_v16  ;;  %v3006_v1 = vsel %vm2882_vm3, %v2877_v22, %v9789_v13  ;;  %v2688_v31 = vsel %vm2624_vm1, %v2527_v61, %v9792_v57  ;;  %v9798_v26 = vld [vmem:[#allocation296_spill] sm:$0xff]  ;;  %v9799_v61 = vld [vmem:[#allocation214_spill] sm:$0xff]  ;;  %v9802_v20 = vld [vmem:[#allocation297_spill] sm:$0xff] }
 0x3e7   : > { %4952 = vst [vmem:[%s8445_s20 + $0x98] sm:$0xff] %v4872_v2   ;;  %v4867_v62 = vpack.c.bf16 %v3860_v37, %v3857_v40  ;;  %5060 = vmatmul.mubr.msk.bf16.gmra.mxu1 %vm3581_vm7, %v4604_v46  ;;  %v2157_v15 = vpop.permute.xlu0 %2156  ;;  %v5347_v46 = vld [vmem:[%s5431_s22 + $0x230] sm:$0xf]  ;;  %v2620_v7 = vsel %vm2431_vm0, %v5348_v18, %v9794_v30  ;;  %v2817_v54 = vsel %vm2753_vm2, %v2688_v31, %v9795_v42  ;;  %v9805_v10 = vld [vmem:[#allocation318_spill] sm:$0xff] }
 0x3e8   : > { %v9790_v37 = vld [vmem:[#allocation156_spill] sm:$0xff]  ;;  %v3135_v29 = vsel %vm3011_vm4, %v3006_v1, %v2157_v15  ;;  %v2686_v23 = vsel %vm2624_vm1, %v2524_v43, %v9796_v51 }
 0x3e9   : > { %4951 = vst [vmem:[%s8445_s20 + $0x90] sm:$0xff] %v4867_v62   ;;  %v8609_v52 = vpop.permute.xlu1 %2160  ;;  %v2623_v62 = vsel %vm2431_vm0, %v5347_v46, %v9790_v37  ;;  %v2815_v28 = vsel %vm2753_vm2, %v2686_v23, %v9800_v49  ;;  %v9803_v8 = vld [vmem:[#allocation272_spill] sm:$0xff]  ;;  %v9806_v46 = vld [vmem:[#allocation313_spill] sm:$0xff] }
 0x3eb   : > { %v8611_v21 = vpop.permute.xlu0 %2158 }
 0x3ed   : > { %v2224_v41 = vpop.permute.xlu1 %2223 }
 0x3ee   : > { %v3200_v4 = vsel %vm3140_vm5, %v3071_v47, %v2224_v41  ;;  %v9791_v41 = vld [vmem:[#allocation268_spill] sm:$0xff]  ;;  %v2946_v47 = vsel %vm2882_vm3, %v2817_v54, %v9798_v26 }
 0x3ef   : > { %v2222_v5 = vpop.permute.xlu0 %2221  ;;  %v2875_v12 = vsel %vm2753_vm2, %v2746_v17, %v9791_v41  ;;  %v3075_v48 = vsel %vm3011_vm4, %v2946_v47, %v8604_v50 }
 0x3f0   : > { %v3198_v40 = vsel %vm3140_vm5, %v3069_v60, %v2222_v5  ;;  %v3004_v45 = vsel %vm2882_vm3, %v2875_v12, %v9793_v63 }
 0x3f1   : > { %v2288_v33 = vpop.permute.xlu1 %2287  ;;  %v3133_v15 = vsel %vm3011_vm4, %v3004_v45, %v8587_v32  ;;  %v2750_v32 = vsel %vm2624_vm1, %v2620_v7, %v9799_v61 }
 0x3f2   : > { %v3264_v5 = vsel %vm3140_vm5, %v3135_v29, %v2288_v33  ;;  %v2752_v33 = vsel %vm2624_vm1, %v2623_v62, %v9797_v36  ;;  %v2879_v60 = vsel %vm2753_vm2, %v2750_v32, %v9803_v8 }
 0x3f3   : > { %v2286_v19 = vpop.permute.xlu0 %2285  ;;  %v3008_v37 = vsel %vm2882_vm3, %v2879_v60, %v9806_v46 }
 0x3f4   : > { %v3262_v34 = vsel %vm3140_vm5, %v3133_v15, %v2286_v19  ;;  %v2944_v19 = vsel %vm2882_vm3, %v2815_v28, %v9802_v20  ;;  %v3137_v63 = vsel %vm3011_vm4, %v3008_v37, %v8611_v21 }
 0x3f5   : > { %v8613_v25 = vpop.permute.xlu1 %2227  ;;  %v3073_v14 = vsel %vm3011_vm4, %v2944_v19, %v9805_v10 }
 0x3f6   : > { %v3204_v9 = vsel %vm3140_vm5, %v3075_v48, %v8613_v25 }
 0x3f7   : > { %v8615_v38 = vpop.permute.xlu0 %2225 }
 0x3f8   : > { %v3202_v25 = vsel %vm3140_vm5, %v3073_v14, %v8615_v38 }
 0x3f9   : > { %v8622_v35 = vpop.permute.xlu1 %2291 }
 0x3fb   : > { %v8633_v59 = vpop.permute.xlu0 %2289 }
 0x3fd   : > { %v2362_v58 = vpop.permute.xlu1 %2361 }
 0x3fe   : > { %v3329_v6 = vsel %vm3269_vm6, %v3200_v4, %v2362_v58  ;;  %v9801_v58 = vld [vmem:[#allocation270_spill] sm:$0xff] }
 0x3ff   : > { %v2360_v2 = vpop.permute.xlu0 %2359  ;;  %v2881_v53 = vsel %vm2753_vm2, %v2752_v33, %v9801_v58 }
 0x400   : > { %v3327_v11 = vsel %vm3269_vm6, %v3198_v40, %v2360_v2 }
 0x401   : > { %v4589_v39 = vcombine.low %v3327_v11, %v3329_v6  ;;  %v2426_v44 = vpop.permute.xlu1 %2425  ;;  %v9804_v6 = vld [vmem:[#allocation52_spill] sm:$0xff] }
 0x402   : > { %v3393_v27 = vsel %vm3269_vm6, %v3264_v5, %v2426_v44  ;;  %v5013_v24 = vpop.f32.mrf.mxu0  ;;  %v3010_v50 = vsel %vm2882_vm3, %v2881_v53, %v9804_v6 }
 0x403   : > { %5031 = vmatprep.mubr.msk.bf16.mxu0 %vm3581_vm7, %v4589_v39  ;;  %v2424_v3 = vpop.permute.xlu0 %2423  ;;  %v3139_v13 = vsel %vm3011_vm4, %v3010_v50, %v8609_v52  ;;  %v3753_v1 = vadd.f32 %v5013_v24, %v8411_v55 }
 0x404   : > { %v3391_v56 = vsel %vm3269_vm6, %v3262_v34, %v2424_v3  ;;  %v3744_v4 = vpop.f32.mrf.mxu0  ;;  %v3268_v62 = vsel %vm3140_vm5, %v3139_v13, %v8622_v35  ;;  %v3266_v35 = vsel %vm3140_vm5, %v3137_v63, %v8633_v59 }
 0x405   : > { %v4605_v0 = vcombine.low %v3391_v56, %v3393_v27  ;;  %v2366_v22 = vpop.permute.xlu1 %2365  ;;  %v3745_v38 = vadd.f32 %v8411_v55, %v3744_v4 }
 0x406   : > { %v3333_v43 = vsel %vm3269_vm6, %v3204_v9, %v2366_v22  ;;  %v5014_v16 = vpop.f32.mrf.mxu0  ;;  %v5045_v17 = vpop.f32.mrf.mxu1 }
 0x407   : > { %v3756_v40 = vadd.f32 %v5014_v16, %v8411_v55  ;;  %5063 = vmatprep.mubr.msk.bf16.mxu1 %vm3581_vm7, %v4605_v0  ;;  %v2364_v2 = vpop.permute.xlu0 %2363  ;;  %v3881_v39 = vadd.f32 %v5045_v17, %v8411_v55 }
 0x408   : > { %v3331_v41 = vsel %vm3269_vm6, %v3202_v25, %v2364_v2  ;;  %v3747_v52 = vpop.f32.mrf.mxu0  ;;  %v3872_v12 = vpop.f32.mrf.mxu1 }
 0x409   : > { %v4802_v29 = vpack.c.bf16 %v3756_v40, %v3753_v1  ;;  %v4590_v11 = vcombine.low %v3331_v41, %v3333_v43  ;;  %v3748_v57 = vadd.f32 %v8411_v55, %v3747_v52  ;;  %v2430_v31 = vpop.permute.xlu1 %2429  ;;  %v3873_v42 = vadd.f32 %v8411_v55, %v3872_v12 }
 0x40a   : > { %v3397_v45 = vsel %vm3269_vm6, %v3268_v62, %v2430_v31  ;;  %v5046_v5 = vpop.f32.mrf.mxu1 }
 0x40b   : > { %4938 = vst [vmem:[%s8445_s20 + $0x28] sm:$0xff] %v4802_v29   ;;  %v4797_v44 = vpack.c.bf16 %v3748_v57, %v3745_v38  ;;  %5032 = vmatmul.mubr.msk.bf16.gmra.mxu0 %vm3581_vm7, %v4590_v11  ;;  %v3884_v18 = vadd.f32 %v5046_v5, %v8411_v55  ;;  %v2428_v30 = vpop.permute.xlu0 %2427 }
 0x40c   : > { %v3395_v7 = vsel %vm3269_vm6, %v3266_v35, %v2428_v30  ;;  %v3875_v21 = vpop.f32.mrf.mxu1 }
 0x40d   : > { %4937 = vst [vmem:[%s8445_s20 + $0x20] sm:$0xff] %v4797_v44   ;;  %v4882_v54 = vpack.c.bf16 %v3884_v18, %v3881_v39  ;;  %v4606_v15 = vcombine.low %v3395_v7, %v3397_v45  ;;  %v3876_v59 = vadd.f32 %v8411_v55, %v3875_v21 }
 0x40f   : > { %4954 = vst [vmem:[%s8445_s20 + $0xa8] sm:$0xff] %v4882_v54   ;;  %v4877_v27 = vpack.c.bf16 %v3876_v59, %v3873_v42  ;;  %5064 = vmatmul.mubr.msk.bf16.gmra.mxu1 %vm3581_vm7, %v4606_v15 }
 0x411   : > { %4953 = vst [vmem:[%s8445_s20 + $0xa0] sm:$0xff] %v4877_v27  }
 0x42a   : > { %v5017_v24 = vpop.f32.mrf.mxu0 }
 0x42b   : > { %v3769_v33 = vadd.f32 %v5017_v24, %v8411_v55 }
 0x42c   : > { %v3760_v51 = vpop.f32.mrf.mxu0 }
 0x42d   : > { %v3761_v3 = vadd.f32 %v8411_v55, %v3760_v51 }
 0x42e   : > { %v5018_v23 = vpop.f32.mrf.mxu0  ;;  %v5049_v36 = vpop.f32.mrf.mxu1 }
 0x42f   : > { %v3772_v26 = vadd.f32 %v5018_v23, %v8411_v55  ;;  %v3897_v28 = vadd.f32 %v5049_v36, %v8411_v55 }
 0x430   : > { %v3763_v47 = vpop.f32.mrf.mxu0  ;;  %v3888_v34 = vpop.f32.mrf.mxu1 }
 0x431   : > { %v4812_v61 = vpack.c.bf16 %v3772_v26, %v3769_v33  ;;  %v3764_v32 = vadd.f32 %v8411_v55, %v3763_v47  ;;  %v3889_v58 = vadd.f32 %v8411_v55, %v3888_v34 }
 0x432   : > { %v5050_v49 = vpop.f32.mrf.mxu1 }
 0x433   : > { %4940 = vst [vmem:[%s8445_s20 + $0x38] sm:$0xff] %v4812_v61   ;;  %v4807_v48 = vpack.c.bf16 %v3764_v32, %v3761_v3  ;;  %v3900_v56 = vadd.f32 %v5050_v49, %v8411_v55 }
 0x434   : > { %v3891_v4 = vpop.f32.mrf.mxu1 }
 0x435   : > { %4939 = vst [vmem:[%s8445_s20 + $0x30] sm:$0xff] %v4807_v48   ;;  %v4892_v53 = vpack.c.bf16 %v3900_v56, %v3897_v28  ;;  %v3892_v20 = vadd.f32 %v8411_v55, %v3891_v4 }
 0x437   : > { %4956 = vst [vmem:[%s8445_s20 + $0xb8] sm:$0xff] %v4892_v53   ;;  %v4887_v19 = vpack.c.bf16 %v3892_v20, %v3889_v58 }
 0x439   : > { %4955 = vst [vmem:[%s8445_s20 + $0xb0] sm:$0xff] %v4887_v19  }
 0x452   : > { %v5021_v9 = vpop.f32.mrf.mxu0 }
 0x453   : > { %v3785_v60 = vadd.f32 %v5021_v9, %v8411_v55 }
 0x454   : > { %v3776_v0 = vpop.f32.mrf.mxu0 }
 0x455   : > { %v3777_v14 = vadd.f32 %v8411_v55, %v3776_v0 }
 0x456   : > { %v5022_v22 = vpop.f32.mrf.mxu0  ;;  %v5053_v8 = vpop.f32.mrf.mxu1 }
 0x457   : > { %v3788_v6 = vadd.f32 %v5022_v22, %v8411_v55  ;;  %v3913_v13 = vadd.f32 %v5053_v8, %v8411_v55 }
 0x458   : > { %v3779_v50 = vpop.f32.mrf.mxu0  ;;  %v3904_v10 = vpop.f32.mrf.mxu1 }
 0x459   : > { %v4822_v43 = vpack.c.bf16 %v3788_v6, %v3785_v60  ;;  %v3780_v16 = vadd.f32 %v8411_v55, %v3779_v50  ;;  %v3905_v2 = vadd.f32 %v8411_v55, %v3904_v10 }
 0x45a   : > { %v5054_v17 = vpop.f32.mrf.mxu1 }
 0x45b   : > { %4942 = vst [vmem:[%s8445_s20 + $0x48] sm:$0xff] %v4822_v43   ;;  %v4817_v25 = vpack.c.bf16 %v3780_v16, %v3777_v14  ;;  %v3916_v1 = vadd.f32 %v5054_v17, %v8411_v55 }
 0x45c   : > { %v3907_v40 = vpop.f32.mrf.mxu1 }
 0x45d   : > { %4941 = vst [vmem:[%s8445_s20 + $0x40] sm:$0xff] %v4817_v25   ;;  %v4902_v46 = vpack.c.bf16 %v3916_v1, %v3913_v13  ;;  %v3908_v37 = vadd.f32 %v8411_v55, %v3907_v40 }
 0x45f   : > { %4958 = vst [vmem:[%s8445_s20 + $0xc8] sm:$0xff] %v4902_v46   ;;  %v4897_v62 = vpack.c.bf16 %v3908_v37, %v3905_v2 }
 0x461   : > { %4957 = vst [vmem:[%s8445_s20 + $0xc0] sm:$0xff] %v4897_v62  }
 0x47b   : > { %v5025_v41 = vpop.f32.mrf.mxu0 }
 0x47c   : > { %v3801_v29 = vadd.f32 %v5025_v41, %v8411_v55 }
 0x47d   : > { %v3792_v52 = vpop.f32.mrf.mxu0 }
 0x47e   : > { %v3793_v63 = vadd.f32 %v8411_v55, %v3792_v52 }
 0x47f   : > { %v5026_v12 = vpop.f32.mrf.mxu0  ;;  %v5057_v38 = vpop.f32.mrf.mxu1 }
 0x480   : > { %v3804_v11 = vadd.f32 %v5026_v12, %v8411_v55  ;;  %v3929_v39 = vadd.f32 %v5057_v38, %v8411_v55 }
 0x481   : > { %v3795_v57 = vpop.f32.mrf.mxu0  ;;  %v3920_v31 = vpop.f32.mrf.mxu1 }
 0x482   : > { %v4832_v45 = vpack.c.bf16 %v3804_v11, %v3801_v29  ;;  %v3796_v5 = vadd.f32 %v8411_v55, %v3795_v57  ;;  %v3921_v7 = vadd.f32 %v8411_v55, %v3920_v31 }
 0x483   : > { %v5058_v35 = vpop.f32.mrf.mxu1 }
 0x484   : > { %4944 = vst [vmem:[%s8445_s20 + $0x58] sm:$0xff] %v4832_v45   ;;  %v4827_v44 = vpack.c.bf16 %v3796_v5, %v3793_v63  ;;  %v3932_v18 = vadd.f32 %v5058_v35, %v8411_v55 }
 0x485   : > { %v3923_v30 = vpop.f32.mrf.mxu1 }
 0x486   : > { %4943 = vst [vmem:[%s8445_s20 + $0x50] sm:$0xff] %v4827_v44   ;;  %v4912_v21 = vpack.c.bf16 %v3932_v18, %v3929_v39  ;;  %v3924_v42 = vadd.f32 %v8411_v55, %v3923_v30 }
 0x488   : > { %4960 = vst [vmem:[%s8445_s20 + $0xd8] sm:$0xff] %v4912_v21   ;;  %v4907_v54 = vpack.c.bf16 %v3924_v42, %v3921_v7 }
 0x48a   : > { %4959 = vst [vmem:[%s8445_s20 + $0xd0] sm:$0xff] %v4907_v54  }
 0x4a3   : > { %v5029_v15 = vpop.f32.mrf.mxu0 }
 0x4a4   : > { %v3817_v51 = vadd.f32 %v5029_v15, %v8411_v55 }
 0x4a5   : > { %v3808_v59 = vpop.f32.mrf.mxu0 }
 0x4a6   : > { %v3809_v26 = vadd.f32 %v8411_v55, %v3808_v59 }
 0x4a7   : > { %v5030_v27 = vpop.f32.mrf.mxu0  ;;  %v5061_v24 = vpop.f32.mrf.mxu1 }
 0x4a8   : > { %v3820_v23 = vadd.f32 %v5030_v27, %v8411_v55  ;;  %v3945_v61 = vadd.f32 %v5061_v24, %v8411_v55 }
 0x4a9   : > { %v3811_v36 = vpop.f32.mrf.mxu0  ;;  %v3936_v33 = vpop.f32.mrf.mxu1 }
 0x4aa   : > { %v4842_v47 = vpack.c.bf16 %v3820_v23, %v3817_v51  ;;  %v3812_v34 = vadd.f32 %v8411_v55, %v3811_v36  ;;  %v3937_v48 = vadd.f32 %v8411_v55, %v3936_v33 }
 0x4ab   : > { %v5062_v3 = vpop.f32.mrf.mxu1 }
 0x4ac   : > { %4946 = vst [vmem:[%s8445_s20 + $0x68] sm:$0xff] %v4842_v47   ;;  %v4837_v32 = vpack.c.bf16 %v3812_v34, %v3809_v26  ;;  %v3948_v49 = vadd.f32 %v5062_v3, %v8411_v55 }
 0x4ad   : > { %v3939_v28 = vpop.f32.mrf.mxu1 }
 0x4ae   : > { %4945 = vst [vmem:[%s8445_s20 + $0x60] sm:$0xff] %v4837_v32   ;;  %v4922_v56 = vpack.c.bf16 %v3948_v49, %v3945_v61  ;;  %v3940_v4 = vadd.f32 %v8411_v55, %v3939_v28 }
 0x4b0   : > { %4962 = vst [vmem:[%s8445_s20 + $0xe8] sm:$0xff] %v4922_v56   ;;  %v4917_v58 = vpack.c.bf16 %v3940_v4, %v3937_v48 }
 0x4b2   : > { %4961 = vst [vmem:[%s8445_s20 + $0xe0] sm:$0xff] %v4917_v58  }
 0x4cb   : > { %v5033_v53 = vpop.f32.mrf.mxu0 }
 0x4cc   : > { %v3833_v0 = vadd.f32 %v5033_v53, %v8411_v55 }
 0x4cd   : > { %v3824_v20 = vpop.f32.mrf.mxu0 }
 0x4ce   : > { %v3825_v6 = vadd.f32 %v8411_v55, %v3824_v20 }
 0x4cf   : > { %v5034_v19 = vpop.f32.mrf.mxu0  ;;  %v5065_v9 = vpop.f32.mrf.mxu1 }
 0x4d0   : > { %v3836_v22 = vadd.f32 %v5034_v19, %v8411_v55  ;;  %v3961_v43 = vadd.f32 %v5065_v9, %v8411_v55 }
 0x4d1   : > { %v3827_v8 = vpop.f32.mrf.mxu0  ;;  %v3952_v60 = vpop.f32.mrf.mxu1 }
 0x4d2   : > { %v4852_v50 = vpack.c.bf16 %v3836_v22, %v3833_v0  ;;  %v3828_v10 = vadd.f32 %v8411_v55, %v3827_v8  ;;  %v3953_v25 = vadd.f32 %v8411_v55, %v3952_v60 }
 0x4d3   : > { %v5066_v14 = vpop.f32.mrf.mxu1 }
 0x4d4   : > { %4948 = vst [vmem:[%s8445_s20 + $0x78] sm:$0xff] %v4852_v50   ;;  %v4847_v16 = vpack.c.bf16 %v3828_v10, %v3825_v6  ;;  %v3964_v17 = vadd.f32 %v5066_v14, %v8411_v55 }
 0x4d5   : > { %v3955_v13 = vpop.f32.mrf.mxu1 }
 0x4d6   : > { %4947 = vst [vmem:[%s8445_s20 + $0x70] sm:$0xff] %v4847_v16   ;;  %v4932_v1 = vpack.c.bf16 %v3964_v17, %v3961_v43  ;;  %v3956_v40 = vadd.f32 %v8411_v55, %v3955_v13 }
 0x4d8   : > { %4964 = vst [vmem:[%s8445_s20 + $0xf8] sm:$0xff] %v4932_v1   ;;  %v4927_v2 = vpack.c.bf16 %v3956_v40, %v3953_v25 }
 0x4da   : > { %4963 = vst [vmem:[%s8445_s20 + $0xf0] sm:$0xff] %v4927_v2  }
 0x4db PF: > { %s14_s17 = sadd.s32 1, %s5371_s17   ;;  %s9807_s15 = smov %s5367_s16 }
 0x4dc   : > { %p11_p5 = scmp.ge.s32.totalorder %s14_s17, 4   ;;  %s9808_s16 = smov %s9810_s18 }
 0x4de   :  { %13 = sbr.rel (!%p11_p5) target bundleno = 2 (0x2), region = 69 }

</bundles_post_ra>
